<compile_context>
chip_gen: v5e
topology: v5e:2x2
jax: 0.10.0
libtpu: 0.0.40
codegen_flags: <defaults>
</compile_context>

<pallas_src>
import functools

import jax
import jax.numpy as jnp
from jax import lax
from jax.experimental import pallas as pl
from jax.experimental.pallas import tpu as pltpu


# --------------------------------------------------------------------------
# Host-side weight packing / constant construction
# --------------------------------------------------------------------------
def _pack_deconv_weight(wt):
    """PyTorch ConvTranspose2d weight (Cin, Cout, 2, 2) -> (Cin, 4*Cout),
    output columns ordered (di, dj, cout)."""
    cin, cout = wt.shape[0], wt.shape[1]
    return jnp.transpose(wt, (0, 2, 3, 1)).reshape(cin, 4 * cout)


def _pack_conv_weight(w):
    """PyTorch Conv2d weight OIHW (Cout, Cin, k, k) -> (k*k*Cin, Cout),
    rows ordered (dy, dx, cin) to match the in-kernel im2col lane order."""
    cout, cin, k, _ = w.shape
    return jnp.transpose(w, (2, 3, 1, 0)).reshape(k * k * cin, cout)


def _subpixel_scatter_matrix(H, W):
    """Constant 0/1 matrix G (4*H*W, 4*H*W): G @ [y_g stacked over g] places the
    four (di, dj) deconv sub-pixel groups into interleaved (2H, 2W) raster
    order.  Keeps the interleave on the MXU (no strided / masked stores)."""
    di, dj, ii, jj = jnp.meshgrid(jnp.arange(2), jnp.arange(2),
                                  jnp.arange(H), jnp.arange(W), indexing="ij")
    rows = ((2 * ii + di) * (2 * W) + (2 * jj + dj)).ravel()
    cols = ((di * 2 + dj) * (H * W) + ii * W + jj).ravel()
    g = jnp.zeros((4 * H * W, 4 * H * W), jnp.float32)
    return g.at[rows, cols].set(1.0)
    # TODO(synk): G is O(spatial^2); for large feature maps switch to row-strip
    # grid tiling and do the interleave per strip instead.


# --------------------------------------------------------------------------
# Fused kernel: one batch element per grid step, everything resident in VMEM
# --------------------------------------------------------------------------
def _upconv_fused_kernel(x_ref, skip_ref, g_ref, wt_ref, bt_ref,
                         w1_ref, b1_ref, w2_ref, b2_ref, o_ref,
                         pad1, pad2, *, k, p):
    H, W, _ = x_ref.shape
    Hs, Ws, Csk = skip_ref.shape
    Cup = wt_ref.shape[1] // 4
    Ccat = Cup + Csk
    Ho1, Wo1 = Hs + 2 * p - k + 1, Ws + 2 * p - k + 1
    Ho2, Wo2 = Ho1 + 2 * p - k + 1, Wo1 + 2 * p - k + 1

    # Fresh zero halos each step (tiny VMEM memset; keeps the "parallel"
    # grid axis safe on multi-core parts).
    pad1[...] = jnp.zeros_like(pad1)
    pad2[...] = jnp.zeros_like(pad2)

    # ---- ConvTranspose2d(kernel=2, stride=2): single MXU contraction ----
    # y lanes are packed as (di, dj, cout).
    y = jnp.einsum("hwc,cd->hwd", x_ref[...], wt_ref[...],
                   preferred_element_type=jnp.float32).reshape(H * W, 4 * Cup)
    # Stack the four sub-pixel groups on the sublane axis, then scatter them
    # into interleaved (2H, 2W) raster order with one constant matmul.
    ystk = jnp.concatenate([y[:, g * Cup:(g + 1) * Cup] for g in range(4)],
                           axis=0)                                   # (4HW, Cup)
    up = jnp.dot(g_ref[...], ystk,
                 preferred_element_type=jnp.float32) + bt_ref[0, :]  # (2H*2W, Cup)
    up = up.reshape(Hs, Ws, Cup)

    # ---- channel concat (== torch.cat dim=1) + zero padding, VMEM only ----
    pad1[p:p + Hs, p:p + Ws, 0:Cup] = up
    pad1[p:p + Hs, p:p + Ws, Cup:Ccat] = skip_ref[...]

    def im2col(src, Ho, Wo):
        # (Ho, Wo, k*k*C): taps gathered on the lane axis, ordered (dy, dx, c)
        return jnp.concatenate(
            [src[dy:dy + Ho, dx:dx + Wo, :]
             for dy in range(k) for dx in range(k)], axis=-1)

    # ---- conv1 + ReLU: one MXU contraction, K = k*k*Ccat ----
    h1 = jnp.einsum("hwc,cd->hwd", im2col(pad1, Ho1, Wo1), w1_ref[...],
                    preferred_element_type=jnp.float32) + b1_ref[0, :]
    pad2[p:p + Ho1, p:p + Wo1, :] = jnp.maximum(h1, 0.0)

    # ---- conv2 + ReLU: one MXU contraction, K = k*k*C1 ----
    h2 = jnp.einsum("hwc,cd->hwd", im2col(pad2, Ho2, Wo2), w2_ref[...],
                    preferred_element_type=jnp.float32) + b2_ref[0, :]
    o_ref[...] = jnp.maximum(h2, 0.0).astype(o_ref.dtype)


# --------------------------------------------------------------------------
# Parameters (PyTorch shape conventions) and forward pass
# --------------------------------------------------------------------------
def init_params(key, in_channels, in_channels_skip, out_channels, kernel_size):
    ks = jax.random.split(key, 6)
    c_cat = in_channels + in_channels_skip
    return {
        # ConvTranspose2d weight: (in, out, kH, kW)
        "wt": 0.1 * jax.random.normal(ks[0], (in_channels, in_channels, 2, 2), jnp.float32),
        "bt": 0.1 * jax.random.normal(ks[1], (in_channels,), jnp.float32),
        # Conv2d weights: (out, in, kH, kW)
        "w1": 0.1 * jax.random.normal(ks[2], (out_channels, c_cat, kernel_size, kernel_size), jnp.float32),
        "b1": 0.1 * jax.random.normal(ks[3], (out_channels,), jnp.float32),
        "w2": 0.1 * jax.random.normal(ks[4], (out_channels, out_channels, kernel_size, kernel_size), jnp.float32),
        "b2": 0.1 * jax.random.normal(ks[5], (out_channels,), jnp.float32),
    }


def upconv_forward(params, x_nchw, x_skip_nchw, *, kernel_size, padding, stride):
    # Reproduce BaseConv's positional-argument swap:
    conv_stride, conv_padding = padding, stride
    # TODO(synk): only effective stride 1 is implemented (the module params imply it).
    assert conv_stride == 1, "only effective stride 1 supported"
    k, p = kernel_size, conv_padding

    N, Cin, H, W = x_nchw.shape
    Csk = x_skip_nchw.shape[1]
    Hs, Ws = 2 * H, 2 * W
    assert x_skip_nchw.shape[2:] == (Hs, Ws)

    Cup = params["wt"].shape[1]
    C1 = params["w1"].shape[0]
    C2 = params["w2"].shape[0]
    Ccat = Cup + Csk
    Ho1, Wo1 = Hs + 2 * p - k + 1, Ws + 2 * p - k + 1
    Ho2, Wo2 = Ho1 + 2 * p - k + 1, Wo1 + 2 * p - k + 1

    x = jnp.transpose(x_nchw, (0, 2, 3, 1))            # NCHW -> NHWC
    skip = jnp.transpose(x_skip_nchw, (0, 2, 3, 1))

    g = _subpixel_scatter_matrix(H, W)
    wt_p = _pack_deconv_weight(params["wt"])
    w1_p = _pack_conv_weight(params["w1"])
    w2_p = _pack_conv_weight(params["w2"])
    bt = params["bt"].reshape(1, Cup)
    b1 = params["b1"].reshape(1, C1)
    b2 = params["b2"].reshape(1, C2)

    const2 = lambda n: (0, 0)
    out = pl.pallas_call(
        functools.partial(_upconv_fused_kernel, k=k, p=p),
        out_shape=jax.ShapeDtypeStruct((N, Ho2, Wo2, C2), jnp.float32),
        grid=(N,),
        in_specs=[
            pl.BlockSpec((None, H, W, Cin), lambda n: (n, 0, 0, 0)),
            pl.BlockSpec((None, Hs, Ws, Csk), lambda n: (n, 0, 0, 0)),
            pl.BlockSpec((4 * H * W, 4 * H * W), const2),
            pl.BlockSpec((Cin, 4 * Cup), const2),
            pl.BlockSpec((1, Cup), const2),
            pl.BlockSpec((k * k * Ccat, C1), const2),
            pl.BlockSpec((1, C1), const2),
            pl.BlockSpec((k * k * C1, C2), const2),
            pl.BlockSpec((1, C2), const2),
        ],
        out_specs=pl.BlockSpec((None, Ho2, Wo2, C2), lambda n: (n, 0, 0, 0)),
        scratch_shapes=[
            pltpu.VMEM((Hs + 2 * p, Ws + 2 * p, Ccat), jnp.float32),   # padded concat input
            pltpu.VMEM((Ho1 + 2 * p, Wo1 + 2 * p, C1), jnp.float32),   # padded conv1 output
        ],
        compiler_params=pltpu.CompilerParams(
            dimension_semantics=("parallel",),
            vmem_limit_bytes=32 * 1024 * 1024,
        ),
        # TODO(synk): at realistic UNet sizes, add a row-strip spatial grid axis
        # (with k-1 halos) so blocks fit v7x's 64 MiB VMEM and N=1 still uses
        # both TensorCores.
    )(x, skip, g, wt_p, bt, w1_p, b1, w2_p, b2)

    return jnp.transpose(out, (0, 3, 1, 2))             # NHWC -> NCHW


# --------------------------------------------------------------------------
# Pure-JAX reference (NCHW, PyTorch semantics) for validation
# --------------------------------------------------------------------------
def ref_forward(params, x, x_skip, *, kernel_size, padding, stride):
    conv_stride, conv_padding = padding, stride
    N, Cin, H, W = x.shape

    # ConvTranspose2d(k=2, s=2, p=0): non-overlapping 2x2 blocks
    y = jnp.einsum("nchw,coij->nohiwj", x, params["wt"])
    y = y.reshape(N, -1, 2 * H, 2 * W) + params["bt"][None, :, None, None]
    y = jnp.concatenate([y, x_skip], axis=1)

    def conv_relu(z, w, b):
        z = lax.conv_general_dilated(
            z, w, window_strides=(conv_stride, conv_stride),
            padding=((conv_padding, conv_padding), (conv_padding, conv_padding)),
            dimension_numbers=("NCHW", "OIHW", "NCHW"))
        return jnp.maximum(z + b[None, :, None, None], 0.0)

    y = conv_relu(y, params["w1"], params["b1"])
    y = conv_relu(y, params["w2"], params["b2"])
    return y


if __name__ == "__main__":
    in_channels, in_channels_skip, out_channels = 4, 4, 8
    kernel_size, padding, stride = 3, 1, 1
    N, H, W = 2, 8, 8

    key = jax.random.PRNGKey(0)
    kp, kx, ksk = jax.random.split(key, 3)
    params = init_params(kp, in_channels, in_channels_skip, out_channels, kernel_size)
    x = jax.random.normal(kx, (N, in_channels, H, W), jnp.float32)
    x_skip = jax.random.normal(ksk, (N, in_channels_skip, 2 * H, 2 * W), jnp.float32)

    out = upconv_forward(params, x, x_skip,
                         kernel_size=kernel_size, padding=padding, stride=stride)
    out = jax.block_until_ready(out)

    ref = ref_forward(params, x, x_skip,
                      kernel_size=kernel_size, padding=padding, stride=stride)
    assert out.shape == ref.shape == (N, out_channels, 2 * H, 2 * W), out.shape
    max_err = float(jnp.max(jnp.abs(out - ref)))
    assert jnp.allclose(out, ref, atol=1e-4, rtol=1e-4), f"max_err={max_err}"
    print("KERNEL_OK")
</pallas_src>

<mosaic_0001>
module attributes {stable_mosaic.version = 11 : i64} {
  func.func @_upconv_fused_kernel(%arg0: i32, %arg1: memref<1x8x8x4xf32, #tpu.memory_space<vmem>>, %arg2: memref<1x16x16x4xf32, #tpu.memory_space<vmem>>, %arg3: memref<256x256xf32, #tpu.memory_space<vmem>>, %arg4: memref<4x16xf32, #tpu.memory_space<vmem>>, %arg5: memref<1x4xf32, #tpu.memory_space<vmem>>, %arg6: memref<72x8xf32, #tpu.memory_space<vmem>>, %arg7: memref<1x8xf32, #tpu.memory_space<vmem>>, %arg8: memref<72x8xf32, #tpu.memory_space<vmem>>, %arg9: memref<1x8xf32, #tpu.memory_space<vmem>>, %arg10: memref<1x16x16x8xf32, #tpu.memory_space<vmem>>, %arg11: memref<18x18x8xf32, #tpu.memory_space<vmem>>, %arg12: memref<18x18x8xf32, #tpu.memory_space<vmem>>) attributes {dimension_semantics = [#tpu.dimension_semantics<parallel>], iteration_bounds = array<i64: 2>, scalar_prefetch = 0 : i64, scratch_operands = 2 : i64, tpu.core_type = #tpu.core_type<tc>, window_params = [{transform_indices = @transform_0, window_bounds = array<i64: 1, 8, 8, 4>}, {transform_indices = @transform_1, window_bounds = array<i64: 1, 16, 16, 4>}, {pipeline_mode = #tpu.pipeline_mode<synchronous>, transform_indices = @transform_2, window_bounds = array<i64: 256, 256>}, {pipeline_mode = #tpu.pipeline_mode<synchronous>, transform_indices = @transform_3, window_bounds = array<i64: 4, 16>}, {pipeline_mode = #tpu.pipeline_mode<synchronous>, transform_indices = @transform_4, window_bounds = array<i64: 1, 4>}, {pipeline_mode = #tpu.pipeline_mode<synchronous>, transform_indices = @transform_5, window_bounds = array<i64: 72, 8>}, {pipeline_mode = #tpu.pipeline_mode<synchronous>, transform_indices = @transform_6, window_bounds = array<i64: 1, 8>}, {pipeline_mode = #tpu.pipeline_mode<synchronous>, transform_indices = @transform_7, window_bounds = array<i64: 72, 8>}, {pipeline_mode = #tpu.pipeline_mode<synchronous>, transform_indices = @transform_8, window_bounds = array<i64: 1, 8>}, {transform_indices = @transform_9, window_bounds = array<i64: 1, 16, 16, 8>}]} {
    %cst = arith.constant 0.000000e+00 : f32
    %0 = vector.broadcast %cst : f32 to vector<18x18x8xf32>
    %c0 = arith.constant 0 : index
    %c0_0 = arith.constant 0 : index
    %c0_1 = arith.constant 0 : index
    %1 = vector.load %arg11[%c0, %c0_0, %c0_1] : memref<18x18x8xf32, #tpu.memory_space<vmem>>, vector<18x18x8xf32>
    tpu.vector_store %arg11[%c0, %c0_0, %c0_1], %0 {strides = array<i32>} : memref<18x18x8xf32, #tpu.memory_space<vmem>>, vector<18x18x8xf32>,
    %cst_2 = arith.constant 0.000000e+00 : f32
    %2 = vector.broadcast %cst_2 : f32 to vector<18x18x8xf32>
    %c0_3 = arith.constant 0 : index
    %c0_4 = arith.constant 0 : index
    %c0_5 = arith.constant 0 : index
    %3 = vector.load %arg12[%c0_3, %c0_4, %c0_5] : memref<18x18x8xf32, #tpu.memory_space<vmem>>, vector<18x18x8xf32>
    tpu.vector_store %arg12[%c0_3, %c0_4, %c0_5], %2 {strides = array<i32>} : memref<18x18x8xf32, #tpu.memory_space<vmem>>, vector<18x18x8xf32>,
    %c0_6 = arith.constant 0 : index
    %c0_7 = arith.constant 0 : index
    %c0_8 = arith.constant 0 : index
    %c0_9 = arith.constant 0 : index
    %4 = vector.load %arg1[%c0_6, %c0_7, %c0_8, %c0_9] : memref<1x8x8x4xf32, #tpu.memory_space<vmem>>, vector<1x8x8x4xf32>
    %5 = vector.shape_cast %4 : vector<1x8x8x4xf32> to vector<8x8x4xf32>
    %c0_10 = arith.constant 0 : index
    %c0_11 = arith.constant 0 : index
    %6 = vector.load %arg4[%c0_10, %c0_11] : memref<4x16xf32, #tpu.memory_space<vmem>>, vector<4x16xf32>
    "tpu.trace_start"() <{level = 10 : i32, message = "hwc,cd->hwd"}> : () -> ()
    %cst_12 = arith.constant dense<0.000000e+00> : vector<8x8x16xf32>
    %7 = tpu.matmul %5, %6, %cst_12 {dimension_numbers = #tpu.dot_dimension_numbers<[2], [0], [0, 1], [1], [0, 0, 0, 1, 1, 1], [], []>} : vector<8x8x4xf32>, vector<4x16xf32>, vector<8x8x16xf32> -> vector<8x8x16xf32>
    "tpu.trace_stop"() : () -> ()
    %8 = vector.shape_cast %7 : vector<8x8x16xf32> to vector<64x16xf32>
    %9 = vector.extract_strided_slice %8 {offsets = [0, 0], sizes = [64, 4], strides = [1, 1]} : vector<64x16xf32> to vector<64x4xf32>
    %10 = vector.extract_strided_slice %8 {offsets = [0, 4], sizes = [64, 4], strides = [1, 1]} : vector<64x16xf32> to vector<64x4xf32>
    %11 = vector.extract_strided_slice %8 {offsets = [0, 8], sizes = [64, 4], strides = [1, 1]} : vector<64x16xf32> to vector<64x4xf32>
    %12 = vector.extract_strided_slice %8 {offsets = [0, 12], sizes = [64, 4], strides = [1, 1]} : vector<64x16xf32> to vector<64x4xf32>
    %13 = tpu.concatenate %9, %10, %11, %12 in 0 : vector<64x4xf32>, vector<64x4xf32>, vector<64x4xf32>, vector<64x4xf32> -> vector<256x4xf32>
    %c0_13 = arith.constant 0 : index
    %c0_14 = arith.constant 0 : index
    %14 = vector.load %arg3[%c0_13, %c0_14] : memref<256x256xf32, #tpu.memory_space<vmem>>, vector<256x256xf32>
    %cst_15 = arith.constant dense<0.000000e+00> : vector<256x4xf32>
    %15 = tpu.matmul %14, %13, %cst_15 {dimension_numbers = #tpu.dot_dimension_numbers<[1], [0], [0], [1], [0, 0, 1, 1], [], []>} : vector<256x256xf32>, vector<256x4xf32>, vector<256x4xf32> -> vector<256x4xf32>
    %c0_16 = arith.constant 0 : index
    %c0_17 = arith.constant 0 : index
    %16 = vector.load %arg5[%c0_16, %c0_17] : memref<1x4xf32, #tpu.memory_space<vmem>>, vector<1x4xf32>
    %17 = vector.shape_cast %16 : vector<1x4xf32> to vector<4xf32>
    %18 = vector.shape_cast %17 : vector<4xf32> to vector<1x4xf32>
    %19 = vector.broadcast %18 : vector<1x4xf32> to vector<256x4xf32>
    %20 = arith.addf %15, %19 : vector<256x4xf32>
    %21 = vector.shape_cast %20 : vector<256x4xf32> to vector<16x16x4xf32>
    %c1 = arith.constant 1 : index
    %c1_18 = arith.constant 1 : index
    %c0_19 = arith.constant 0 : index
    %22 = vector.load %arg11[%c1, %c1_18, %c0_19] : memref<18x18x8xf32, #tpu.memory_space<vmem>>, vector<16x16x4xf32>
    tpu.vector_store %arg11[%c1, %c1_18, %c0_19], %21 {strides = array<i32>} : memref<18x18x8xf32, #tpu.memory_space<vmem>>, vector<16x16x4xf32>,
    %c0_20 = arith.constant 0 : index
    %c0_21 = arith.constant 0 : index
    %c0_22 = arith.constant 0 : index
    %c0_23 = arith.constant 0 : index
    %23 = vector.load %arg2[%c0_20, %c0_21, %c0_22, %c0_23] : memref<1x16x16x4xf32, #tpu.memory_space<vmem>>, vector<1x16x16x4xf32>
    %24 = vector.shape_cast %23 : vector<1x16x16x4xf32> to vector<16x16x4xf32>
    %c1_24 = arith.constant 1 : index
    %c1_25 = arith.constant 1 : index
    %c4 = arith.constant 4 : index
    %25 = vector.load %arg11[%c1_24, %c1_25, %c4] : memref<18x18x8xf32, #tpu.memory_space<vmem>>, vector<16x16x4xf32>
    tpu.vector_store %arg11[%c1_24, %c1_25, %c4], %24 {strides = array<i32>} : memref<18x18x8xf32, #tpu.memory_space<vmem>>, vector<16x16x4xf32>,
    %c0_26 = arith.constant 0 : index
    %c0_27 = arith.constant 0 : index
    %c0_28 = arith.constant 0 : index
    %26 = vector.load %arg11[%c0_26, %c0_27, %c0_28] : memref<18x18x8xf32, #tpu.memory_space<vmem>>, vector<16x16x8xf32>
    %c0_29 = arith.constant 0 : index
    %c1_30 = arith.constant 1 : index
    %c0_31 = arith.constant 0 : index
    %27 = vector.load %arg11[%c0_29, %c1_30, %c0_31] : memref<18x18x8xf32, #tpu.memory_space<vmem>>, vector<16x16x8xf32>
    %c0_32 = arith.constant 0 : index
    %c2 = arith.constant 2 : index
    %c0_33 = arith.constant 0 : index
    %28 = vector.load %arg11[%c0_32, %c2, %c0_33] : memref<18x18x8xf32, #tpu.memory_space<vmem>>, vector<16x16x8xf32>
    %c1_34 = arith.constant 1 : index
    %c0_35 = arith.constant 0 : index
    %c0_36 = arith.constant 0 : index
    %29 = vector.load %arg11[%c1_34, %c0_35, %c0_36] : memref<18x18x8xf32, #tpu.memory_space<vmem>>, vector<16x16x8xf32>
    %c1_37 = arith.constant 1 : index
    %c1_38 = arith.constant 1 : index
    %c0_39 = arith.constant 0 : index
    %30 = vector.load %arg11[%c1_37, %c1_38, %c0_39] : memref<18x18x8xf32, #tpu.memory_space<vmem>>, vector<16x16x8xf32>
    %c1_40 = arith.constant 1 : index
    %c2_41 = arith.constant 2 : index
    %c0_42 = arith.constant 0 : index
    %31 = vector.load %arg11[%c1_40, %c2_41, %c0_42] : memref<18x18x8xf32, #tpu.memory_space<vmem>>, vector<16x16x8xf32>
    %c2_43 = arith.constant 2 : index
    %c0_44 = arith.constant 0 : index
    %c0_45 = arith.constant 0 : index
    %32 = vector.load %arg11[%c2_43, %c0_44, %c0_45] : memref<18x18x8xf32, #tpu.memory_space<vmem>>, vector<16x16x8xf32>
    %c2_46 = arith.constant 2 : index
    %c1_47 = arith.constant 1 : index
    %c0_48 = arith.constant 0 : index
    %33 = vector.load %arg11[%c2_46, %c1_47, %c0_48] : memref<18x18x8xf32, #tpu.memory_space<vmem>>, vector<16x16x8xf32>
    %c2_49 = arith.constant 2 : index
    %c2_50 = arith.constant 2 : index
    %c0_51 = arith.constant 0 : index
    %34 = vector.load %arg11[%c2_49, %c2_50, %c0_51] : memref<18x18x8xf32, #tpu.memory_space<vmem>>, vector<16x16x8xf32>
    %35 = tpu.concatenate %26, %27, %28, %29, %30, %31, %32, %33, %34 in 2 : vector<16x16x8xf32>, vector<16x16x8xf32>, vector<16x16x8xf32>, vector<16x16x8xf32>, vector<16x16x8xf32>, vector<16x16x8xf32>, vector<16x16x8xf32>, vector<16x16x8xf32>, vector<16x16x8xf32> -> vector<16x16x72xf32>
    %c0_52 = arith.constant 0 : index
    %c0_53 = arith.constant 0 : index
    %36 = vector.load %arg6[%c0_52, %c0_53] : memref<72x8xf32, #tpu.memory_space<vmem>>, vector<72x8xf32>
    "tpu.trace_start"() <{level = 10 : i32, message = "hwc,cd->hwd"}> : () -> ()
    %cst_54 = arith.constant dense<0.000000e+00> : vector<16x16x8xf32>
    %37 = tpu.matmul %35, %36, %cst_54 {dimension_numbers = #tpu.dot_dimension_numbers<[2], [0], [0, 1], [1], [0, 0, 0, 1, 1, 1], [], []>} : vector<16x16x72xf32>, vector<72x8xf32>, vector<16x16x8xf32> -> vector<16x16x8xf32>
    "tpu.trace_stop"() : () -> ()
    %c0_55 = arith.constant 0 : index
    %c0_56 = arith.constant 0 : index
    %38 = vector.load %arg7[%c0_55, %c0_56] : memref<1x8xf32, #tpu.memory_space<vmem>>, vector<1x8xf32>
    %39 = vector.shape_cast %38 : vector<1x8xf32> to vector<8xf32>
    %40 = vector.shape_cast %39 : vector<8xf32> to vector<1x1x8xf32>
    %41 = vector.broadcast %40 : vector<1x1x8xf32> to vector<16x16x8xf32>
    %42 = arith.addf %37, %41 : vector<16x16x8xf32>
    %cst_57 = arith.constant 0.000000e+00 : f32
    %43 = vector.broadcast %cst_57 : f32 to vector<16x16x8xf32>
    %44 = arith.maximumf %42, %43 : vector<16x16x8xf32>
    %c1_58 = arith.constant 1 : index
    %c1_59 = arith.constant 1 : index
    %c0_60 = arith.constant 0 : index
    %45 = vector.load %arg12[%c1_58, %c1_59, %c0_60] : memref<18x18x8xf32, #tpu.memory_space<vmem>>, vector<16x16x8xf32>
    tpu.vector_store %arg12[%c1_58, %c1_59, %c0_60], %44 {strides = array<i32>} : memref<18x18x8xf32, #tpu.memory_space<vmem>>, vector<16x16x8xf32>,
    %c0_61 = arith.constant 0 : index
    %c0_62 = arith.constant 0 : index
    %c0_63 = arith.constant 0 : index
    %46 = vector.load %arg12[%c0_61, %c0_62, %c0_63] : memref<18x18x8xf32, #tpu.memory_space<vmem>>, vector<16x16x8xf32>
    %c0_64 = arith.constant 0 : index
    %c1_65 = arith.constant 1 : index
    %c0_66 = arith.constant 0 : index
    %47 = vector.load %arg12[%c0_64, %c1_65, %c0_66] : memref<18x18x8xf32, #tpu.memory_space<vmem>>, vector<16x16x8xf32>
    %c0_67 = arith.constant 0 : index
    %c2_68 = arith.constant 2 : index
    %c0_69 = arith.constant 0 : index
    %48 = vector.load %arg12[%c0_67, %c2_68, %c0_69] : memref<18x18x8xf32, #tpu.memory_space<vmem>>, vector<16x16x8xf32>
    %c1_70 = arith.constant 1 : index
    %c0_71 = arith.constant 0 : index
    %c0_72 = arith.constant 0 : index
    %49 = vector.load %arg12[%c1_70, %c0_71, %c0_72] : memref<18x18x8xf32, #tpu.memory_space<vmem>>, vector<16x16x8xf32>
    %c1_73 = arith.constant 1 : index
    %c1_74 = arith.constant 1 : index
    %c0_75 = arith.constant 0 : index
    %50 = vector.load %arg12[%c1_73, %c1_74, %c0_75] : memref<18x18x8xf32, #tpu.memory_space<vmem>>, vector<16x16x8xf32>
    %c1_76 = arith.constant 1 : index
    %c2_77 = arith.constant 2 : index
    %c0_78 = arith.constant 0 : index
    %51 = vector.load %arg12[%c1_76, %c2_77, %c0_78] : memref<18x18x8xf32, #tpu.memory_space<vmem>>, vector<16x16x8xf32>
    %c2_79 = arith.constant 2 : index
    %c0_80 = arith.constant 0 : index
    %c0_81 = arith.constant 0 : index
    %52 = vector.load %arg12[%c2_79, %c0_80, %c0_81] : memref<18x18x8xf32, #tpu.memory_space<vmem>>, vector<16x16x8xf32>
    %c2_82 = arith.constant 2 : index
    %c1_83 = arith.constant 1 : index
    %c0_84 = arith.constant 0 : index
    %53 = vector.load %arg12[%c2_82, %c1_83, %c0_84] : memref<18x18x8xf32, #tpu.memory_space<vmem>>, vector<16x16x8xf32>
    %c2_85 = arith.constant 2 : index
    %c2_86 = arith.constant 2 : index
    %c0_87 = arith.constant 0 : index
    %54 = vector.load %arg12[%c2_85, %c2_86, %c0_87] : memref<18x18x8xf32, #tpu.memory_space<vmem>>, vector<16x16x8xf32>
    %55 = tpu.concatenate %46, %47, %48, %49, %50, %51, %52, %53, %54 in 2 : vector<16x16x8xf32>, vector<16x16x8xf32>, vector<16x16x8xf32>, vector<16x16x8xf32>, vector<16x16x8xf32>, vector<16x16x8xf32>, vector<16x16x8xf32>, vector<16x16x8xf32>, vector<16x16x8xf32> -> vector<16x16x72xf32>
    %c0_88 = arith.constant 0 : index
    %c0_89 = arith.constant 0 : index
    %56 = vector.load %arg8[%c0_88, %c0_89] : memref<72x8xf32, #tpu.memory_space<vmem>>, vector<72x8xf32>
    "tpu.trace_start"() <{level = 10 : i32, message = "hwc,cd->hwd"}> : () -> ()
    %cst_90 = arith.constant dense<0.000000e+00> : vector<16x16x8xf32>
    %57 = tpu.matmul %55, %56, %cst_90 {dimension_numbers = #tpu.dot_dimension_numbers<[2], [0], [0, 1], [1], [0, 0, 0, 1, 1, 1], [], []>} : vector<16x16x72xf32>, vector<72x8xf32>, vector<16x16x8xf32> -> vector<16x16x8xf32>
    "tpu.trace_stop"() : () -> ()
    %c0_91 = arith.constant 0 : index
    %c0_92 = arith.constant 0 : index
    %58 = vector.load %arg9[%c0_91, %c0_92] : memref<1x8xf32, #tpu.memory_space<vmem>>, vector<1x8xf32>
    %59 = vector.shape_cast %58 : vector<1x8xf32> to vector<8xf32>
    %60 = vector.shape_cast %59 : vector<8xf32> to vector<1x1x8xf32>
    %61 = vector.broadcast %60 : vector<1x1x8xf32> to vector<16x16x8xf32>
    %62 = arith.addf %57, %61 : vector<16x16x8xf32>
    %cst_93 = arith.constant 0.000000e+00 : f32
    %63 = vector.broadcast %cst_93 : f32 to vector<16x16x8xf32>
    %64 = arith.maximumf %62, %63 : vector<16x16x8xf32>
    %c0_94 = arith.constant 0 : index
    %c0_95 = arith.constant 0 : index
    %c0_96 = arith.constant 0 : index
    %c0_97 = arith.constant 0 : index
    %65 = vector.load %arg10[%c0_94, %c0_95, %c0_96, %c0_97] : memref<1x16x16x8xf32, #tpu.memory_space<vmem>>, vector<1x16x16x8xf32>
    %66 = vector.shape_cast %65 : vector<1x16x16x8xf32> to vector<16x16x8xf32>
    %67 = vector.shape_cast %64 : vector<16x16x8xf32> to vector<1x16x16x8xf32>
    tpu.vector_store %arg10[%c0_94, %c0_95, %c0_96, %c0_97], %67 {strides = array<i32>} : memref<1x16x16x8xf32, #tpu.memory_space<vmem>>, vector<1x16x16x8xf32>,
    return
  }
  func.func @transform_0(%arg0: i32) -> (i32, i32, i32, i32) {
    %c0_i32 = arith.constant 0 : i32
    %c0_i32_0 = arith.constant 0 : i32
    %c0_i32_1 = arith.constant 0 : i32
    %c0_i32_2 = arith.constant 0 : i32
    return %arg0, %c0_i32, %c0_i32_0, %c0_i32_1 : i32, i32, i32, i32
  }
  func.func @transform_1(%arg0: i32) -> (i32, i32, i32, i32) {
    %c0_i32 = arith.constant 0 : i32
    %c0_i32_0 = arith.constant 0 : i32
    %c0_i32_1 = arith.constant 0 : i32
    %c0_i32_2 = arith.constant 0 : i32
    return %arg0, %c0_i32, %c0_i32_0, %c0_i32_1 : i32, i32, i32, i32
  }
  func.func @transform_2(%arg0: i32) -> (i32, i32) {
    %c0_i32 = arith.constant 0 : i32
    %c0_i32_0 = arith.constant 0 : i32
    %c0_i32_1 = arith.constant 0 : i32
    return %c0_i32, %c0_i32_0 : i32, i32
  }
  func.func @transform_3(%arg0: i32) -> (i32, i32) {
    %c0_i32 = arith.constant 0 : i32
    %c0_i32_0 = arith.constant 0 : i32
    %c0_i32_1 = arith.constant 0 : i32
    return %c0_i32, %c0_i32_0 : i32, i32
  }
  func.func @transform_4(%arg0: i32) -> (i32, i32) {
    %c0_i32 = arith.constant 0 : i32
    %c0_i32_0 = arith.constant 0 : i32
    %c0_i32_1 = arith.constant 0 : i32
    return %c0_i32, %c0_i32_0 : i32, i32
  }
  func.func @transform_5(%arg0: i32) -> (i32, i32) {
    %c0_i32 = arith.constant 0 : i32
    %c0_i32_0 = arith.constant 0 : i32
    %c0_i32_1 = arith.constant 0 : i32
    return %c0_i32, %c0_i32_0 : i32, i32
  }
  func.func @transform_6(%arg0: i32) -> (i32, i32) {
    %c0_i32 = arith.constant 0 : i32
    %c0_i32_0 = arith.constant 0 : i32
    %c0_i32_1 = arith.constant 0 : i32
    return %c0_i32, %c0_i32_0 : i32, i32
  }
  func.func @transform_7(%arg0: i32) -> (i32, i32) {
    %c0_i32 = arith.constant 0 : i32
    %c0_i32_0 = arith.constant 0 : i32
    %c0_i32_1 = arith.constant 0 : i32
    return %c0_i32, %c0_i32_0 : i32, i32
  }
  func.func @transform_8(%arg0: i32) -> (i32, i32) {
    %c0_i32 = arith.constant 0 : i32
    %c0_i32_0 = arith.constant 0 : i32
    %c0_i32_1 = arith.constant 0 : i32
    return %c0_i32, %c0_i32_0 : i32, i32
  }
  func.func @transform_9(%arg0: i32) -> (i32, i32, i32, i32) {
    %c0_i32 = arith.constant 0 : i32
    %c0_i32_0 = arith.constant 0 : i32
    %c0_i32_1 = arith.constant 0 : i32
    %c0_i32_2 = arith.constant 0 : i32
    return %arg0, %c0_i32, %c0_i32_0, %c0_i32_1 : i32, i32, i32, i32
  }
}

</mosaic_0001>

<bundles_post_ra>
// kernel: tpu_custom_call.1
= control target key start
LH: loop header
LB: loop body
LE: loop exit
PB: predicated region body
PF: predicated region fallthrough
CT: control target
= control target key end

     0   :  { %s5220_s30 = smov 0   ;;  %s8675_s0 = inlined_call_operand.vmem [shape: f32[2,8,8,4], index: 0, kind: input, shape index: {}]   ;;  %s8676_s1 = inlined_call_operand.vmem [shape: f32[2,16,16,4], index: 1, kind: input, shape index: {}]   ;;  %s8677_s2 = inlined_call_operand.vmem [shape: f32[256,256], index: 2, kind: input, shape index: {}]   ;;  %s8678_s3 = inlined_call_operand.vmem [shape: f32[4,16], index: 3, kind: input, shape index: {}]   ;;  %s8679_s4 = inlined_call_operand.vmem [shape: f32[1,4], index: 4, kind: input, shape index: {}]   ;;  %s8680_s5 = inlined_call_operand.vmem [shape: f32[72,8], index: 5, kind: input, shape index: {}]   ;;  %s8681_s6 = inlined_call_operand.vmem [shape: f32[1,8], index: 6, kind: input, shape index: {}]   ;;  %s8682_s7 = inlined_call_operand.vmem [shape: f32[72,8], index: 7, kind: input, shape index: {}]   ;;  %s8683_s8 = inlined_call_operand.vmem [shape: f32[1,8], index: 8, kind: input, shape index: {}]   ;;  %s8684_s9 = inlined_call_operand.vmem [shape: f32[2,16,16,8], index: 9, kind: output, shape index: {}]  }
   0x1 LB: > { %s4928_s10 = sadd.s32 4294967295, %s5155_s30   ;;  %p4932_p0 = scmp.ge.s32.totalorder %s5155_s30, 1  ;;  %s5155_s30 = sphi %s5220_s30, %s19_s30  }
   0x2   : > { %p297_p1 = scmp.lt.s32.totalorder %s5155_s30, 3 }
   0x4   : > { %p298_p2 = pnand %p4932_p0, %p297_p1 }
   0x6   : > { %301 = sbr.rel (%p298_p2) target bundleno = 2294 (0x8f6), region = 56 }
   0xb   : > { %v471_v0 = vld [vmem:[%s8678_s3] sm:$0xf]  ;;  %vm497_vm0 = vcmask 1043456   ;;  %p338_p3 = scmp.lt.s32.totalorder %s4928_s10, 1  ;;  %vm472_vm1 = vcmask 31744   ;;  %s5157_s21 = smov 4  }
   0xc   : > { %4939 = vmatpush.msk.msra.mxu0 %vm497_vm0, %v471_v0  ;;  %5017 = vmatpush.msk.msra.mxu3 %vm497_vm0, %v471_v0  ;;  %vm353_vm2 = vcmask 64512   ;;  %v5158_v30 = vmov 0.0   ;;  %s5159_s22 = smov 8   ;;  %s5160_s23 = smov 16   ;;  %vm356_vm3 = vcmask 58368   ;;  %vm1109_vm4 = vcmask 64544  }
   0xd   : > { %s9201_s10 = smov (!%p338_p3, %s4928_s10), 1  ;;  %354 = vst.msk [vmem:[#allocation2] sm:$0xff] %vm353_vm2, %v5158_v30  ;;  %s5161_s24 = smov 48   ;;  %vm2487_vm5 = vcmask 130048   ;;  %vm2520_vm6 = vcmask 195584   ;;  %vm2553_vm7 = vcmask 261120  }
   0xe   : > { %s5014_s13 = sshll.u32 %s9201_s10, 6  ;;  %s5015_s14 = sshll.u32 %s9201_s10, 8  ;;  %355 = vst.msk [vmem:[#allocation2 + $0x8] sm:$0xff] %vm353_vm2, %v5158_v30  ;;  %vm2619_vm8 = vcmask 392192   ;;  %vm2586_vm9 = vcmask 326656   ;;  %vm2652_vm10 = vcmask 457728  }
   0xf   : > { %s5238_s17 = scalar_lea.vmem %s8675_s0, %s5014_s13  ;;  %s5245_s20 = scalar_lea.vmem %s8676_s1, %s5015_s14  ;;  %358 = vst.msk [vmem:[#allocation2 + $0x18] sm:$0xff] %vm353_vm2, %v5158_v30  ;;  %vm2731_vm11 = vcmask 588800   ;;  %vm2685_vm12 = vcmask 523264  }
  0x10   : > { %v463_v1 = vld [vmem:[%s5238_s17] sm:$0xff]  ;;  %v950_v3 = vld [vmem:[%s5245_s20 + $0x8] sm:$0xff]  ;;  %v951_v5 = vld [vmem:[%s5245_s20 + $0x10] sm:$0xff]  ;;  %359 = vst.msk [vmem:[#allocation2 + $0x20] sm:$0xff] %vm353_vm2, %v5158_v30  ;;  %s5162_s25 = smov 120   ;;  %s5163_s26 = smov 124  }
  0x11   : > { %v467_v2 = vld [vmem:[%s5238_s17 + $0x20] sm:$0xff]  ;;  %4940 = vmatmul.msk.f32.vlgmr.msra.gmra.mxu0 %vm472_vm1, %v463_v1  ;;  %1015 = vrot.lane.b32.xlu1 %v950_v3, %s5157_s21  ;;  %v464_v6 = vld [vmem:[%s5238_s17 + $0x8] sm:$0xff]  ;;  %v952_v9 = vld [vmem:[%s5245_s20 + $0x18] sm:$0xff]  ;;  %361 = vst.msk [vmem:[#allocation2 + $0x30] sm:$0xff] %vm353_vm2, %v5158_v30  ;;  %s5164_s27 = smov 116   ;;  %s5165_s12 = smov 32  }
  0x12   : > { %4944 = vmatmul.msk.f32.vlgmr.msra.gmra.mxu3 %vm472_vm1, %v467_v2  ;;  %v949_v4 = vld [vmem:[%s5245_s20] sm:$0xff]  ;;  %1017 = vrot.lane.b32.xlu2 %v951_v5, %s5157_s21  ;;  %v468_v7 = vld [vmem:[%s5238_s17 + $0x28] sm:$0xff]  ;;  %v465_v11 = vld [vmem:[%s5238_s17 + $0x10] sm:$0xff]  ;;  %362 = vst.msk [vmem:[#allocation2 + $0x38] sm:$0xff] %vm353_vm2, %v5158_v30  ;;  %s5166_s13 = smov 24   ;;  %s5168_s19 = smov 56  }
  0x13   : > { %1013 = vrot.lane.b32.xlu0 %v949_v4, %s5157_s21  ;;  %v953_v8 = vld [vmem:[%s5245_s20 + $0x20] sm:$0xff]  ;;  %v954_v10 = vld [vmem:[%s5245_s20 + $0x28] sm:$0xff]  ;;  %v469_v12 = vld [vmem:[%s5238_s17 + $0x30] sm:$0xff]  ;;  %364 = vst.msk [vmem:[#allocation2 + $0x48] sm:$0xff] %vm353_vm2, %v5158_v30  ;;  %s8263_s18 = scalar_lea.vmem %s8684_s9, %s5015_s14 }
  0x14   : > { %v956_v13 = vld [vmem:[%s5245_s20 + $0x38] sm:$0xff]  ;;  %v955_v14 = vld [vmem:[%s5245_s20 + $0x30] sm:$0xff]  ;;  %v957_v15 = vld [vmem:[%s5245_s20 + $0x40] sm:$0xff]  ;;  %365 = vst.msk [vmem:[#allocation2 + $0x50] sm:$0xff] %vm353_vm2, %v5158_v30 }
  0x15   : > { %v466_v16 = vld [vmem:[%s5238_s17 + $0x18] sm:$0xff]  ;;  %v959_v18 = vld [vmem:[%s5245_s20 + $0x50] sm:$0xff]  ;;  %v958_v19 = vld [vmem:[%s5245_s20 + $0x48] sm:$0xff]  ;;  %367 = vst.msk [vmem:[#allocation2 + $0x60] sm:$0xff] %vm353_vm2, %v5158_v30 }
  0x16   : > { %v470_v17 = vld [vmem:[%s5238_s17 + $0x38] sm:$0xff]  ;;  %v962_v21 = vld [vmem:[%s5245_s20 + $0x68] sm:$0xff]  ;;  %v961_v22 = vld [vmem:[%s5245_s20 + $0x60] sm:$0xff]  ;;  %368 = vst.msk [vmem:[#allocation2 + $0x68] sm:$0xff] %vm353_vm2, %v5158_v30 }
  0x17   : > { %v960_v20 = vld [vmem:[%s5245_s20 + $0x58] sm:$0xff]  ;;  %v963_v23 = vld [vmem:[%s5245_s20 + $0x70] sm:$0xff]  ;;  %v965_v24 = vld [vmem:[%s5245_s20 + $0x80] sm:$0xff]  ;;  %370 = vst.msk [vmem:[#allocation2 + $0x78] sm:$0xff] %vm353_vm2, %v5158_v30 }
  0x18   : > { %v964_v25 = vld [vmem:[%s5245_s20 + $0x78] sm:$0xff]  ;;  %v966_v26 = vld [vmem:[%s5245_s20 + $0x88] sm:$0xff]  ;;  %v967_v28 = vld [vmem:[%s5245_s20 + $0x90] sm:$0xff]  ;;  %371 = vst.msk [vmem:[#allocation2 + $0x80] sm:$0xff] %vm353_vm2, %v5158_v30 }
  0x19   : > { %4941 = vmatmul.msk.f32.gmra.mxu0 %vm472_vm1, %v464_v6  ;;  %1021 = vrot.lane.b32.xlu1 %v953_v8, %s5157_s21  ;;  %v968_v27 = vld [vmem:[%s5245_s20 + $0x98] sm:$0xff]  ;;  %v969_v29 = vld [vmem:[%s5245_s20 + $0xa0] sm:$0xff]  ;;  %v971_v31 = vld [vmem:[%s5245_s20 + $0xb0] sm:$0xff]  ;;  %373 = vst.msk [vmem:[#allocation2 + $0x90] sm:$0xff] %vm353_vm2, %v5158_v30 }
  0x1a   : > { %4945 = vmatmul.msk.f32.gmra.mxu3 %vm472_vm1, %v468_v7  ;;  %1023 = vrot.lane.b32.xlu2 %v954_v10, %s5157_s21  ;;  %v970_v32 = vld [vmem:[%s5245_s20 + $0xa8] sm:$0xff]  ;;  %v972_v33 = vld [vmem:[%s5245_s20 + $0xb8] sm:$0xff]  ;;  %v973_v35 = vld [vmem:[%s5245_s20 + $0xc0] sm:$0xff]  ;;  %374 = vst.msk [vmem:[#allocation2 + $0x98] sm:$0xff] %vm353_vm2, %v5158_v30 }
  0x1b   : > { %1019 = vrot.lane.b32.xlu0 %v952_v9, %s5157_s21  ;;  %v974_v34 = vld [vmem:[%s5245_s20 + $0xc8] sm:$0xff]  ;;  %v975_v36 = vld [vmem:[%s5245_s20 + $0xd0] sm:$0xff]  ;;  %376 = vst.msk [vmem:[#allocation2 + $0xa8] sm:$0xff] %vm353_vm2, %v5158_v30  ;;  %v977_v37 = vld [vmem:[%s5245_s20 + $0xe0] sm:$0xff] }
  0x1c   : > { %377 = vst.msk [vmem:[#allocation2 + $0xb0] sm:$0xff] %vm353_vm2, %v5158_v30  ;;  %v976_v38 = vld [vmem:[%s5245_s20 + $0xd8] sm:$0xff]  ;;  %v978_v39 = vld [vmem:[%s5245_s20 + $0xe8] sm:$0xff]  ;;  %v979_v41 = vld [vmem:[%s5245_s20 + $0xf0] sm:$0xff] }
  0x1d   : > { %379 = vst.msk [vmem:[#allocation2 + $0xc0] sm:$0xff] %vm353_vm2, %v5158_v30  ;;  %v980_v40 = vld [vmem:[%s5245_s20 + $0xf8] sm:$0xff]  ;;  %v1206_v42 = vld [vmem:[#allocation2 + $0x2] sm:$0xff] }
  0x1e   : > { %380 = vst.msk [vmem:[#allocation2 + $0xc8] sm:$0xff] %vm353_vm2, %v5158_v30  ;;  %v1174_v43 = vld [vmem:[#allocation2 + $0x1] sm:$0xff] }
  0x1f   : > { %382 = vst.msk [vmem:[#allocation2 + $0xd8] sm:$0xff] %vm353_vm2, %v5158_v30 }
  0x20   : > { %383 = vst.msk [vmem:[#allocation2 + $0xe0] sm:$0xff] %vm353_vm2, %v5158_v30 }
  0x21   : > { %4942 = vmatmul.msk.f32.gmra.mxu0 %vm472_vm1, %v465_v11  ;;  %1027 = vrot.lane.b32.xlu1 %v956_v13, %s5157_s21  ;;  %385 = vst.msk [vmem:[#allocation2 + $0xf0] sm:$0xff] %vm353_vm2, %v5158_v30 }
  0x22   : > { %4946 = vmatmul.msk.f32.gmra.mxu3 %vm472_vm1, %v469_v12  ;;  %1029 = vrot.lane.b32.xlu2 %v957_v15, %s5157_s21  ;;  %386 = vst.msk [vmem:[#allocation2 + $0xf8] sm:$0xff] %vm353_vm2, %v5158_v30 }
  0x23   : > { %1025 = vrot.lane.b32.xlu0 %v955_v14, %s5157_s21  ;;  %388 = vst.msk [vmem:[#allocation2 + $0x108] sm:$0xff] %vm353_vm2, %v5158_v30 }
  0x24   : > { %389 = vst.msk [vmem:[#allocation2 + $0x110] sm:$0xff] %vm353_vm2, %v5158_v30 }
  0x25   : > { %391 = vst.msk [vmem:[#allocation2 + $0x120] sm:$0xff] %vm353_vm2, %v5158_v30 }
  0x26   : > { %392 = vst.msk [vmem:[#allocation2 + $0x128] sm:$0xff] %vm353_vm2, %v5158_v30 }
  0x27   : > { %394 = vst.msk [vmem:[#allocation2 + $0x138] sm:$0xff] %vm353_vm2, %v5158_v30 }
  0x28   : > { %395 = vst.msk [vmem:[#allocation2 + $0x140] sm:$0xff] %vm353_vm2, %v5158_v30 }
  0x29   : > { %4943 = vmatmul.msk.f32.gmra.mxu0 %vm472_vm1, %v466_v16  ;;  %1033 = vrot.lane.b32.xlu1 %v959_v18, %s5157_s21  ;;  %397 = vst.msk [vmem:[#allocation2 + $0x150] sm:$0xff] %vm353_vm2, %v5158_v30 }
  0x2a   : > { %4947 = vmatmul.msk.f32.gmra.mxu3 %vm472_vm1, %v470_v17  ;;  %1035 = vrot.lane.b32.xlu2 %v960_v20, %s5157_s21  ;;  %398 = vst.msk [vmem:[#allocation2 + $0x158] sm:$0xff] %vm353_vm2, %v5158_v30 }
  0x2b   : > { %1031 = vrot.lane.b32.xlu0 %v958_v19, %s5157_s21  ;;  %400 = vst.msk [vmem:[#allocation2 + $0x168] sm:$0xff] %vm353_vm2, %v5158_v30 }
  0x2c   : > { %401 = vst.msk [vmem:[#allocation2 + $0x170] sm:$0xff] %vm353_vm2, %v5158_v30 }
  0x2d   : > { %403 = vst.msk [vmem:[#allocation2 + $0x180] sm:$0xff] %vm353_vm2, %v5158_v30 }
  0x2e   : > { %404 = vst.msk [vmem:[#allocation2 + $0x188] sm:$0xff] %vm353_vm2, %v5158_v30 }
  0x2f   : > { %406 = vst.msk [vmem:[#allocation2 + $0x198] sm:$0xff] %vm353_vm2, %v5158_v30 }
  0x30   : > { %407 = vst.msk [vmem:[#allocation2 + $0x1a0] sm:$0xff] %vm353_vm2, %v5158_v30 }
  0x31   : > { %1039 = vrot.lane.b32.xlu1 %v962_v21, %s5157_s21  ;;  %409 = vst.msk [vmem:[#allocation3] sm:$0xff] %vm353_vm2, %v5158_v30 }
  0x32   : > { %1041 = vrot.lane.b32.xlu2 %v963_v23, %s5157_s21  ;;  %410 = vst.msk [vmem:[#allocation3 + $0x8] sm:$0xff] %vm353_vm2, %v5158_v30 }
  0x33   : > { %1037 = vrot.lane.b32.xlu0 %v961_v22, %s5157_s21  ;;  %412 = vst.msk [vmem:[#allocation3 + $0x18] sm:$0xff] %vm353_vm2, %v5158_v30 }
  0x34   : > { %413 = vst.msk [vmem:[#allocation3 + $0x20] sm:$0xff] %vm353_vm2, %v5158_v30 }
  0x35   : > { %415 = vst.msk [vmem:[#allocation3 + $0x30] sm:$0xff] %vm353_vm2, %v5158_v30 }
  0x36   : > { %416 = vst.msk [vmem:[#allocation3 + $0x38] sm:$0xff] %vm353_vm2, %v5158_v30  ;;  %v1365_v56 = vld [vmem:[#allocation2 + $0x198] sm:$0xff] }
  0x37   : > { %418 = vst.msk [vmem:[#allocation3 + $0x48] sm:$0xff] %vm353_vm2, %v5158_v30  ;;  %v1366_v45 = vld [vmem:[#allocation2 + $0x1a0] sm:$0xff] }
  0x38   : > { %419 = vst.msk [vmem:[#allocation3 + $0x50] sm:$0xff] %vm353_vm2, %v5158_v30 }
  0x39   : > { %1045 = vrot.lane.b32.xlu1 %v965_v24, %s5157_s21  ;;  %421 = vst.msk [vmem:[#allocation3 + $0x60] sm:$0xff] %vm353_vm2, %v5158_v30 }
  0x3a   : > { %1047 = vrot.lane.b32.xlu2 %v966_v26, %s5157_s21  ;;  %422 = vst.msk [vmem:[#allocation3 + $0x68] sm:$0xff] %vm353_vm2, %v5158_v30 }
  0x3b   : > { %1043 = vrot.lane.b32.xlu0 %v964_v25, %s5157_s21  ;;  %424 = vst.msk [vmem:[#allocation3 + $0x78] sm:$0xff] %vm353_vm2, %v5158_v30 }
  0x3c   : > { %425 = vst.msk [vmem:[#allocation3 + $0x80] sm:$0xff] %vm353_vm2, %v5158_v30 }
  0x3d   : > { %427 = vst.msk [vmem:[#allocation3 + $0x90] sm:$0xff] %vm353_vm2, %v5158_v30 }
  0x3e   : > { %428 = vst.msk [vmem:[#allocation3 + $0x98] sm:$0xff] %vm353_vm2, %v5158_v30 }
  0x3f   : > { %430 = vst.msk [vmem:[#allocation3 + $0xa8] sm:$0xff] %vm353_vm2, %v5158_v30 }
  0x40   : > { %431 = vst.msk [vmem:[#allocation3 + $0xb0] sm:$0xff] %vm353_vm2, %v5158_v30 }
  0x41   : > { %1051 = vrot.lane.b32.xlu1 %v968_v27, %s5157_s21  ;;  %433 = vst.msk [vmem:[#allocation3 + $0xc0] sm:$0xff] %vm353_vm2, %v5158_v30 }
  0x42   : > { %1053 = vrot.lane.b32.xlu2 %v969_v29, %s5157_s21  ;;  %434 = vst.msk [vmem:[#allocation3 + $0xc8] sm:$0xff] %vm353_vm2, %v5158_v30 }
  0x43   : > { %1049 = vrot.lane.b32.xlu0 %v967_v28, %s5157_s21  ;;  %436 = vst.msk [vmem:[#allocation3 + $0xd8] sm:$0xff] %vm353_vm2, %v5158_v30 }
  0x44   : > { %437 = vst.msk [vmem:[#allocation3 + $0xe0] sm:$0xff] %vm353_vm2, %v5158_v30 }
  0x45   : > { %439 = vst.msk [vmem:[#allocation3 + $0xf0] sm:$0xff] %vm353_vm2, %v5158_v30 }
  0x46   : > { %440 = vst.msk [vmem:[#allocation3 + $0xf8] sm:$0xff] %vm353_vm2, %v5158_v30 }
  0x47   : > { %442 = vst.msk [vmem:[#allocation3 + $0x108] sm:$0xff] %vm353_vm2, %v5158_v30 }
  0x48   : > { %443 = vst.msk [vmem:[#allocation3 + $0x110] sm:$0xff] %vm353_vm2, %v5158_v30 }
  0x49   : > { %1057 = vrot.lane.b32.xlu1 %v971_v31, %s5157_s21  ;;  %445 = vst.msk [vmem:[#allocation3 + $0x120] sm:$0xff] %vm353_vm2, %v5158_v30 }
  0x4a   : > { %1059 = vrot.lane.b32.xlu2 %v972_v33, %s5157_s21  ;;  %446 = vst.msk [vmem:[#allocation3 + $0x128] sm:$0xff] %vm353_vm2, %v5158_v30 }
  0x4b   : > { %1055 = vrot.lane.b32.xlu0 %v970_v32, %s5157_s21  ;;  %448 = vst.msk [vmem:[#allocation3 + $0x138] sm:$0xff] %vm353_vm2, %v5158_v30 }
  0x4c   : > { %449 = vst.msk [vmem:[#allocation3 + $0x140] sm:$0xff] %vm353_vm2, %v5158_v30 }
  0x4d   : > { %451 = vst.msk [vmem:[#allocation3 + $0x150] sm:$0xff] %vm353_vm2, %v5158_v30 }
  0x4e   : > { %452 = vst.msk [vmem:[#allocation3 + $0x158] sm:$0xff] %vm353_vm2, %v5158_v30 }
  0x4f   : > { %454 = vst.msk [vmem:[#allocation3 + $0x168] sm:$0xff] %vm353_vm2, %v5158_v30 }
  0x50   : > { %455 = vst.msk [vmem:[#allocation3 + $0x170] sm:$0xff] %vm353_vm2, %v5158_v30 }
  0x51   : > { %1063 = vrot.lane.b32.xlu1 %v974_v34, %s5157_s21  ;;  %457 = vst.msk [vmem:[#allocation3 + $0x180] sm:$0xff] %vm353_vm2, %v5158_v30 }
  0x52   : > { %1065 = vrot.lane.b32.xlu2 %v975_v36, %s5157_s21  ;;  %458 = vst.msk [vmem:[#allocation3 + $0x188] sm:$0xff] %vm353_vm2, %v5158_v30 }
  0x53   : > { %1061 = vrot.lane.b32.xlu0 %v973_v35, %s5157_s21  ;;  %460 = vst.msk [vmem:[#allocation3 + $0x198] sm:$0xff] %vm353_vm2, %v5158_v30 }
  0x54   : > { %461 = vst.msk [vmem:[#allocation3 + $0x1a0] sm:$0xff] %vm353_vm2, %v5158_v30 }
  0x55   : > { %357 = vst.msk [vmem:[#allocation2 + $0x10] sm:$0x3] %vm356_vm3, %v5158_v30 }
  0x56   : > { %360 = vst.msk [vmem:[#allocation2 + $0x28] sm:$0x3] %vm356_vm3, %v5158_v30 }
  0x57   : > { %363 = vst.msk [vmem:[#allocation2 + $0x40] sm:$0x3] %vm356_vm3, %v5158_v30 }
  0x58   : > { %366 = vst.msk [vmem:[#allocation2 + $0x58] sm:$0x3] %vm356_vm3, %v5158_v30 }
  0x59   : > { %1069 = vrot.lane.b32.xlu1 %v977_v37, %s5157_s21  ;;  %369 = vst.msk [vmem:[#allocation2 + $0x70] sm:$0x3] %vm356_vm3, %v5158_v30 }
  0x5a   : > { %1071 = vrot.lane.b32.xlu2 %v978_v39, %s5157_s21  ;;  %372 = vst.msk [vmem:[#allocation2 + $0x88] sm:$0x3] %vm356_vm3, %v5158_v30 }
  0x5b   : > { %1067 = vrot.lane.b32.xlu0 %v976_v38, %s5157_s21  ;;  %375 = vst.msk [vmem:[#allocation2 + $0xa0] sm:$0x3] %vm356_vm3, %v5158_v30 }
  0x5c   : > { %v1175_v49 = vld [vmem:[#allocation2 + $0x9] sm:$0xff]  ;;  %378 = vst.msk [vmem:[#allocation2 + $0xb8] sm:$0x3] %vm356_vm3, %v5158_v30 }
  0x5d   : > { %v1207_v50 = vld [vmem:[#allocation2 + $0xa] sm:$0xff]  ;;  %381 = vst.msk [vmem:[#allocation2 + $0xd0] sm:$0x3] %vm356_vm3, %v5158_v30 }
  0x5e   : > { %384 = vst.msk [vmem:[#allocation2 + $0xe8] sm:$0x3] %vm356_vm3, %v5158_v30 }
  0x5f   : > { %387 = vst.msk [vmem:[#allocation2 + $0x100] sm:$0x3] %vm356_vm3, %v5158_v30 }
  0x60   : > { %390 = vst.msk [vmem:[#allocation2 + $0x118] sm:$0x3] %vm356_vm3, %v5158_v30 }
  0x61   : > { %1075 = vrot.lane.b32.xlu1 %v980_v40, %s5157_s21  ;;  %393 = vst.msk [vmem:[#allocation2 + $0x130] sm:$0x3] %vm356_vm3, %v5158_v30 }
  0x62   : > { %1463 = vrot.lane.b32.xlu2 %v1174_v43, %s5159_s22  ;;  %396 = vst.msk [vmem:[#allocation2 + $0x148] sm:$0x3] %vm356_vm3, %v5158_v30 }
  0x63   : > { %1073 = vrot.lane.b32.xlu0 %v979_v41, %s5157_s21  ;;  %399 = vst.msk [vmem:[#allocation2 + $0x160] sm:$0x3] %vm356_vm3, %v5158_v30 }
  0x64   : > { %402 = vst.msk [vmem:[#allocation2 + $0x178] sm:$0x3] %vm356_vm3, %v5158_v30 }
  0x65   : > { %405 = vst.msk [vmem:[#allocation2 + $0x190] sm:$0x3] %vm356_vm3, %v5158_v30 }
  0x66   : > { %408 = vst.msk [vmem:[#allocation2 + $0x1a8] sm:$0x3] %vm356_vm3, %v5158_v30 }
  0x67   : > { %411 = vst.msk [vmem:[#allocation3 + $0x10] sm:$0x3] %vm356_vm3, %v5158_v30 }
  0x68   : > { %414 = vst.msk [vmem:[#allocation3 + $0x28] sm:$0x3] %vm356_vm3, %v5158_v30 }
  0x69   : > { %1591 = vrot.lane.b32.xlu1 %v1206_v42, %s5160_s23  ;;  %417 = vst.msk [vmem:[#allocation3 + $0x40] sm:$0x3] %vm356_vm3, %v5158_v30 }
  0x6a   : > { %1593 = vrot.lane.b32.xlu2 %v1207_v50, %s5160_s23  ;;  %420 = vst.msk [vmem:[#allocation3 + $0x58] sm:$0x3] %vm356_vm3, %v5158_v30 }
  0x6b   : > { %1465 = vrot.lane.b32.xlu0 %v1175_v49, %s5159_s22  ;;  %423 = vst.msk [vmem:[#allocation3 + $0x70] sm:$0x3] %vm356_vm3, %v5158_v30 }
  0x6c   : > { %v5451_v44 = vpop.permute.xlu2 %1017  ;;  %426 = vst.msk [vmem:[#allocation3 + $0x88] sm:$0x3] %vm356_vm3, %v5158_v30 }
  0x6d   : > { %429 = vst.msk [vmem:[#allocation3 + $0xa0] sm:$0x3] %vm356_vm3, %v5158_v30 }
  0x6e   : > { %432 = vst.msk [vmem:[#allocation3 + $0xb8] sm:$0x3] %vm356_vm3, %v5158_v30 }
  0x6f   : > { %435 = vst.msk [vmem:[#allocation3 + $0xd0] sm:$0x3] %vm356_vm3, %v5158_v30 }
  0x70   : > { %438 = vst.msk [vmem:[#allocation3 + $0xe8] sm:$0x3] %vm356_vm3, %v5158_v30 }
  0x71   : > { %2165 = vrot.lane.b32.xlu1 %v1366_v45, %s5161_s24  ;;  %441 = vst.msk [vmem:[#allocation3 + $0x100] sm:$0x3] %vm356_vm3, %v5158_v30 }
  0x72   : > { %444 = vst.msk [vmem:[#allocation3 + $0x118] sm:$0x3] %vm356_vm3, %v5158_v30 }
  0x73   : > { %2163 = vrot.lane.b32.xlu0 %v1365_v56, %s5161_s24  ;;  %447 = vst.msk [vmem:[#allocation3 + $0x130] sm:$0x3] %vm356_vm3, %v5158_v30 }
  0x74   : > { %v5474_v46 = vpop.permute.xlu2 %1023  ;;  %450 = vst.msk [vmem:[#allocation3 + $0x148] sm:$0x3] %vm356_vm3, %v5158_v30 }
  0x75   : > { %453 = vst.msk [vmem:[#allocation3 + $0x160] sm:$0x3] %vm356_vm3, %v5158_v30 }
  0x76   : > { %456 = vst.msk [vmem:[#allocation3 + $0x178] sm:$0x3] %vm356_vm3, %v5158_v30 }
  0x77   : > { %459 = vst.msk [vmem:[#allocation3 + $0x190] sm:$0x3] %vm356_vm3, %v5158_v30 }
  0x78   : > { %462 = vst.msk [vmem:[#allocation3 + $0x1a8] sm:$0x3] %vm356_vm3, %v5158_v30 }
  0x7c   : > { %v5504_v52 = vpop.permute.xlu2 %1029 }
  0x83   : > { %v5488_v48 = vpop.permute.xlu1 %1015 }
  0x84   : > { %v5543_v61 = vpop.permute.xlu2 %1035 }
  0x85   : > { %v5518_v55 = vpop.permute.xlu0 %1013 }
  0x8b   : > { %v5522_v57 = vpop.permute.xlu1 %1021 }
  0x8c   : > { %v5576_v3 = vpop.permute.xlu2 %1041 }
  0x8d   : > { %v5553_v62 = vpop.permute.xlu0 %1019 }
  0x8e   : > { %v5482_v47 = vpop.f32.mrf.mxu0 }
  0x93   : > { %v5559_v0 = vpop.permute.xlu1 %1027 }
  0x94   : > { %v5603_v8 = vpop.permute.xlu2 %1047 }
  0x95   : > { %v5498_v51 = vpop.f32.mrf.mxu3  ;;  %v5592_v6 = vpop.permute.xlu0 %1025 }
  0x96   : > { %v5508_v53 = vpop.f32.mrf.mxu0 }
  0x97   : > { %v5044_v54 = vpack.i.bf16 %v5508_v53, %v5482_v47 }
  0x99   : > { %5045 = vrot.lane.b32.xlu2 %v5044_v54, %s5162_s25  ;;  %5040 = vrot.lane.b32.xlu0 %v5044_v54, %s5163_s26 }
  0x9b   : > { %v5596_v7 = vpop.permute.xlu1 %1033 }
  0x9c   : > { %v5611_v11 = vpop.permute.xlu2 %1053 }
  0x9d   : > { %v5528_v58 = vpop.f32.mrf.mxu3  ;;  %v5607_v9 = vpop.permute.xlu0 %1031 }
  0x9e   : > { %v5054_v59 = vpack.i.bf16 %v5528_v58, %v5498_v51  ;;  %v5538_v60 = vpop.f32.mrf.mxu0 }
  0xa0   : > { %5055 = vrot.lane.b32.xlu1 %v5054_v59, %s5163_s26 }
  0xa1   : > { %5050 = vrot.lane.b32.xlu2 %v5044_v54, %s5164_s27  ;;  %5060 = vrot.lane.b32.xlu0 %v5054_v59, %s5162_s25 }
  0xa3   : > { %v5609_v10 = vpop.permute.xlu1 %1039 }
  0xa4   : > { %v5617_v14 = vpop.permute.xlu2 %1059 }
  0xa5   : > { %v5557_v63 = vpop.f32.mrf.mxu3  ;;  %v5613_v12 = vpop.permute.xlu0 %1037 }
  0xa6   : > { %v5566_v1 = vpop.f32.mrf.mxu0 }
  0xa7   : > { %v5074_v2 = vpack.i.bf16 %v5566_v1, %v5538_v60 }
  0xa8   : > { %5065 = vrot.lane.b32.xlu1 %v5054_v59, %s5164_s27 }
  0xa9   : > { %5075 = vrot.lane.b32.xlu2 %v5074_v2, %s5162_s25  ;;  %5070 = vrot.lane.b32.xlu0 %v5074_v2, %s5163_s26 }
  0xab   : > { %v5615_v13 = vpop.permute.xlu1 %1045 }
  0xac   : > { %v5623_v17 = vpop.permute.xlu2 %1065 }
  0xad   : > { %v5584_v4 = vpop.f32.mrf.mxu3  ;;  %v5619_v15 = vpop.permute.xlu0 %1043 }
  0xae   : > { %v5084_v5 = vpack.i.bf16 %v5584_v4, %v5557_v63 }
  0xb0   : > { %5085 = vrot.lane.b32.xlu1 %v5084_v5, %s5163_s26  ;;  %s5167_s26 = smov 40  }
  0xb1   : > { %5095 = vrot.lane.b32.xlu2 %v5084_v5, %s5164_s27  ;;  %5080 = vrot.lane.b32.xlu0 %v5074_v2, %s5164_s27  ;;  %s5169_s27 = smov 64  }
  0xb3   : > { %v5621_v16 = vpop.permute.xlu1 %1051 }
  0xb4   : > { %v5629_v20 = vpop.permute.xlu2 %1071 }
  0xb5   : > { %v5625_v18 = vpop.permute.xlu0 %1049 }
  0xb8   : > { %5090 = vrot.lane.b32.xlu1 %v5084_v5, %s5162_s25 }
  0xbb   : > { %v5627_v19 = vpop.permute.xlu1 %1057 }
  0xbc   : > { %v5635_v23 = vpop.permute.xlu2 %1463 }
  0xbd   : > { %v5631_v21 = vpop.permute.xlu0 %1055 }
  0xc3   : > { %v5633_v22 = vpop.permute.xlu1 %1063 }
  0xc4   : > { %v5641_v26 = vpop.permute.xlu2 %1593 }
  0xc5   : > { %v5637_v24 = vpop.permute.xlu0 %1061 }
  0xcb   : > { %v5639_v25 = vpop.permute.xlu1 %1069 }
  0xcd   : > { %v5643_v27 = vpop.permute.xlu0 %1067 }
  0xd3   : > { %v5645_v28 = vpop.permute.xlu1 %1075 }
  0xd5   : > { %v5649_v30 = vpop.permute.xlu0 %1073 }
  0xdb   : > { %v5651_v31 = vpop.permute.xlu1 %1591 }
  0xdd   : > { %v5655_v34 = vpop.permute.xlu0 %1465 }
  0xe3   : > { %v5653_v33 = vpop.permute.xlu1 %2165 }
  0xe4   : > { %8694 = vst [vmem:[#allocation4_spill] sm:$0xff] %v5653_v33 }
  0xe5   : > { %v5659_v36 = vpop.permute.xlu0 %2163 }
  0xe6   : > { %8695 = vst [vmem:[#allocation5_spill] sm:$0xff] %v5659_v36 }
  0xf3   : > { %v5647_v29 = vpop.permute.xlu2 %5045 }
  0xfb   : > { %v5051_v32 = vpop.permute.xlu2 %5050 }
 0x103   : > { %v5657_v35 = vpop.permute.xlu2 %5075 }
 0x10b   : > { %v5096_v37 = vpop.permute.xlu2 %5095  ;;  %v5041_v41 = vpop.permute.xlu0 %5040 }
 0x10c   : > { %v5098_v38 = vunpack.i.h.bf16 %v5096_v37  ;;  %v5097_v40 = vunpack.i.l.bf16 %v5096_v37 }
 0x10e   : > { %803 = vmatpush.msra.mxu2 %v5098_v38 }
 0x110   : > { %804 = vmatpush.msra.mxu2 %v5097_v40  ;;  %v5043_v40 = vunpack.i.h.bf16 %v5041_v41 }
 0x112   : > { %v5056_v39 = vpop.permute.xlu1 %5055 }
 0x113   : > { %v5061_v49 = vpop.permute.xlu0 %5060  ;;  %v5058_v59 = vunpack.i.h.bf16 %v5056_v39  ;;  %v5057_v5 = vunpack.i.l.bf16 %v5056_v39  ;;  %v5052_v39 = vunpack.i.l.bf16 %v5051_v32 }
 0x11a   : > { %v5066_v42 = vpop.permute.xlu1 %5065 }
 0x11b   : > { %v5068_v43 = vunpack.i.h.bf16 %v5066_v42  ;;  %v5067_v45 = vunpack.i.l.bf16 %v5066_v42  ;;  %v5071_v2 = vpop.permute.xlu0 %5070  ;;  %v5042_v42 = vunpack.i.l.bf16 %v5041_v41  ;;  %v5062_v41 = vunpack.i.l.bf16 %v5061_v49 }
 0x11c   : > { %v5073_v38 = vunpack.i.h.bf16 %v5071_v2  ;;  %v5072_v37 = vunpack.i.l.bf16 %v5071_v2  ;;  %v630_v2 = vld [vmem:[%s8677_s2 + $0x40] sm:$0xff] }
 0x11d   : > { %805 = vmatpush.msra.mxu2 %v5068_v43 }
 0x11f   : > { %806 = vmatpush.msra.mxu2 %v5067_v45 }
 0x122   : > { %v5086_v50 = vpop.permute.xlu1 %5085 }
 0x123   : > { %v5088_v54 = vunpack.i.h.bf16 %v5086_v50  ;;  %v5087_v56 = vunpack.i.l.bf16 %v5086_v50  ;;  %v5081_v33 = vpop.permute.xlu0 %5080  ;;  %v5053_v50 = vunpack.i.h.bf16 %v5051_v32  ;;  %v626_v32 = vld [vmem:[%s8677_s2 + $0x20] sm:$0xff] }
 0x124   : > { %v5083_v43 = vunpack.i.h.bf16 %v5081_v33  ;;  %v5082_v45 = vunpack.i.l.bf16 %v5081_v33  ;;  %v5063_v33 = vunpack.i.h.bf16 %v5061_v49  ;;  %v629_v49 = vld [vmem:[%s8677_s2 + $0x38] sm:$0xff] }
 0x125   : > { %690 = vmatpush.msra.mxu1 %v5088_v54 }
 0x126   : > { %807 = vmatpush.msra.mxu2 %v5083_v43  ;;  %v635_v43 = vld [vmem:[%s8677_s2 + $0x68] sm:$0xff] }
 0x127   : > { %691 = vmatpush.msra.mxu1 %v5087_v56 }
 0x128   : > { %808 = vmatpush.msra.mxu2 %v5082_v45  ;;  %v637_v45 = vld [vmem:[%s8677_s2 + $0x78] sm:$0xff] }
 0x129   : > { %692 = vmatpush.msra.mxu1 %v5058_v59 }
 0x12a   : > { %v5091_v54 = vpop.permute.xlu1 %5090  ;;  %809 = vmatpush.msra.mxu2 %v5053_v50  ;;  %v638_v50 = vld [vmem:[%s8677_s2 + $0x80] sm:$0xff] }
 0x12b   : > { %693 = vmatpush.msra.mxu1 %v5057_v5  ;;  %v5093_v56 = vunpack.i.h.bf16 %v5091_v54  ;;  %v5092_v59 = vunpack.i.l.bf16 %v5091_v54  ;;  %v631_v5 = vld [vmem:[%s8677_s2 + $0x48] sm:$0xff] }
 0x12c   : > { %810 = vmatpush.msra.mxu2 %v5052_v39  ;;  %v639_v54 = vld [vmem:[%s8677_s2 + $0x88] sm:$0xff]  ;;  %v640_v39 = vld [vmem:[%s8677_s2 + $0x90] sm:$0xff] }
 0x12d   : > { %694 = vmatpush.msra.mxu1 %v5073_v38  ;;  %v632_v38 = vld [vmem:[%s8677_s2 + $0x50] sm:$0xff] }
 0x12e   : > { %811 = vmatpush.msra.mxu2 %v5093_v56  ;;  %v641_v56 = vld [vmem:[%s8677_s2 + $0x98] sm:$0xff] }
 0x12f   : > { %695 = vmatpush.msra.mxu1 %v5072_v37  ;;  %v633_v37 = vld [vmem:[%s8677_s2 + $0x58] sm:$0xff] }
 0x130   : > { %812 = vmatpush.msra.mxu2 %v5092_v59  ;;  %v642_v59 = vld [vmem:[%s8677_s2 + $0xa0] sm:$0xff] }
 0x131   : > { %696 = vmatpush.msra.mxu1 %v5043_v40  ;;  %v634_v40 = vld [vmem:[%s8677_s2 + $0x60] sm:$0xff] }
 0x132   : > { %813 = vmatpush.msra.mxu2 %v5063_v33  ;;  %v643_v33 = vld [vmem:[%s8677_s2 + $0xa8] sm:$0xff] }
 0x133   : > { %697 = vmatpush.msra.mxu1 %v5042_v42  ;;  %v636_v42 = vld [vmem:[%s8677_s2 + $0x70] sm:$0xff] }
 0x134   : > { %814 = vmatpush.msra.mxu2 %v5062_v41  ;;  %v644_v41 = vld [vmem:[%s8677_s2 + $0xb0] sm:$0xff] }
 0x135   : > { %698 = vmatpush.msra.mxu1 %v5584_v4  ;;  %v5078_v4 = vunpack.i.h.bf16 %v5657_v35 }
 0x137   : > { %699 = vmatpush.msra.mxu1 %v5557_v63  ;;  %815 = vmatpush.msra.mxu2 %v5078_v4  ;;  %v5048_v63 = vunpack.i.h.bf16 %v5647_v29  ;;  %v645_v4 = vld [vmem:[%s8677_s2 + $0xb8] sm:$0xff] }
 0x139   : > { %700 = vmatpush.msra.mxu1 %v5528_v58  ;;  %v622_v58 = vld [vmem:[%s8677_s2] sm:$0xff] }
 0x13b   : > { %701 = vmatpush.msra.mxu1 %v5498_v51  ;;  %v5077_v51 = vunpack.i.l.bf16 %v5657_v35  ;;  %v628_v35 = vld [vmem:[%s8677_s2 + $0x30] sm:$0xff] }
 0x13d   : > { %702 = vmatpush.msra.mxu1 %v5566_v1  ;;  %816 = vmatpush.msra.mxu2 %v5077_v51  ;;  %v624_v1 = vld [vmem:[%s8677_s2 + $0x10] sm:$0xff]  ;;  %v647_v51 = vld [vmem:[%s8677_s2 + $0xc8] sm:$0xff] }
 0x13f   : > { %703 = vmatpush.msra.mxu1 %v5538_v60  ;;  %817 = vmatpush.msra.mxu2 %v5048_v63  ;;  %v5047_v60 = vunpack.i.l.bf16 %v5647_v29  ;;  %v627_v29 = vld [vmem:[%s8677_s2 + $0x28] sm:$0xff]  ;;  %v648_v63 = vld [vmem:[%s8677_s2 + $0xd0] sm:$0xff] }
 0x141   : > { %704 = vmatpush.msra.mxu1 %v5508_v53  ;;  %v623_v53 = vld [vmem:[%s8677_s2 + $0x8] sm:$0xff]  ;;  %818 = vmatpush.msra.mxu2 %v5047_v60  ;;  %v649_v60 = vld [vmem:[%s8677_s2 + $0xd8] sm:$0xff] }
 0x142   : > { %819 = vmatmul.f32.vlgmr.msra.gmra.mxu2 %v623_v53  ;;  %v650_v53 = vld [vmem:[%s8677_s2 + $0xe0] sm:$0xff] }
 0x143   : > { %705 = vmatpush.msra.mxu1 %v5482_v47  ;;  %v625_v47 = vld [vmem:[%s8677_s2 + $0x18] sm:$0xff] }
 0x144   : > { %706 = vmatmul.f32.vlgmr.msra.gmra.mxu1 %v622_v58  ;;  %v646_v58 = vld [vmem:[%s8677_s2 + $0xc0] sm:$0xff] }
 0x14a   : > { %822 = vmatmul.f32.gmra.mxu2 %v625_v47  ;;  %v652_v47 = vld [vmem:[%s8677_s2 + $0xf0] sm:$0xff] }
 0x14c   : > { %709 = vmatmul.f32.gmra.mxu1 %v624_v1  ;;  %v651_v1 = vld [vmem:[%s8677_s2 + $0xe8] sm:$0xff] }
 0x152   : > { %825 = vmatmul.f32.gmra.mxu2 %v627_v29 }
 0x154   : > { %712 = vmatmul.f32.gmra.mxu1 %v626_v32  ;;  %v653_v32 = vld [vmem:[%s8677_s2 + $0xf8] sm:$0xff] }
 0x15a   : > { %828 = vmatmul.f32.gmra.mxu2 %v629_v49  ;;  %v5775_v49 = vld [vmem:[%s8679_s4] ss:$0 sm:$0xff] }
 0x15c   : > { %715 = vmatmul.f32.gmra.mxu1 %v628_v35  ;;  %v654_v35 = vld [vmem:[%s8677_s2 + $0x100] sm:$0xff] }
 0x162   : > { %831 = vmatmul.f32.gmra.mxu2 %v631_v5 }
 0x164   : > { %718 = vmatmul.f32.gmra.mxu1 %v630_v2  ;;  %v655_v2 = vld [vmem:[%s8677_s2 + $0x108] sm:$0xff] }
 0x16a   : > { %834 = vmatmul.f32.gmra.mxu2 %v633_v37 }
 0x16c   : > { %721 = vmatmul.f32.gmra.mxu1 %v632_v38  ;;  %v656_v38 = vld [vmem:[%s8677_s2 + $0x110] sm:$0xff] }
 0x172   : > { %837 = vmatmul.f32.gmra.mxu2 %v635_v43 }
 0x174   : > { %724 = vmatmul.f32.gmra.mxu1 %v634_v40 }
 0x17a   : > { %840 = vmatmul.f32.gmra.mxu2 %v637_v45 }
 0x17c   : > { %727 = vmatmul.f32.gmra.mxu1 %v636_v42  ;;  %v657_v42 = vld [vmem:[%s8677_s2 + $0x118] sm:$0xff] }
 0x182   : > { %843 = vmatmul.f32.gmra.mxu2 %v639_v54 }
 0x184   : > { %730 = vmatmul.f32.gmra.mxu1 %v638_v50  ;;  %v658_v50 = vld [vmem:[%s8677_s2 + $0x120] sm:$0xff] }
 0x18a   : > { %846 = vmatmul.f32.gmra.mxu2 %v641_v56 }
 0x18c   : > { %733 = vmatmul.f32.gmra.mxu1 %v640_v39 }
 0x192   : > { %849 = vmatmul.f32.gmra.mxu2 %v643_v33 }
 0x194   : > { %736 = vmatmul.f32.gmra.mxu1 %v642_v59  ;;  %v659_v59 = vld [vmem:[%s8677_s2 + $0x128] sm:$0xff] }
 0x19a   : > { %852 = vmatmul.f32.gmra.mxu2 %v645_v4  ;;  %v660_v4 = vld [vmem:[%s8677_s2 + $0x130] sm:$0xff] }
 0x19c   : > { %739 = vmatmul.f32.gmra.mxu1 %v644_v41 }
 0x1a2   : > { %855 = vmatmul.f32.gmra.mxu2 %v647_v51 }
 0x1a4   : > { %742 = vmatmul.f32.gmra.mxu1 %v646_v58 }
 0x1aa   : > { %858 = vmatmul.f32.gmra.mxu2 %v649_v60 }
 0x1ac   : > { %745 = vmatmul.f32.gmra.mxu1 %v648_v63 }
 0x1b2   : > { %861 = vmatmul.f32.gmra.mxu2 %v651_v1 }
 0x1b4   : > { %748 = vmatmul.f32.gmra.mxu1 %v650_v53 }
 0x1ba   : > { %864 = vmatmul.f32.gmra.mxu2 %v653_v32  ;;  %v662_v32 = vld [vmem:[%s8677_s2 + $0x140] sm:$0xff] }
 0x1bc   : > { %751 = vmatmul.f32.gmra.mxu1 %v652_v47 }
 0x1c1   : > { %v707_v29 = vpop.f32.mrf.mxu1 }
 0x1c2   : > { %867 = vmatmul.f32.gmra.mxu2 %v655_v2  ;;  %v708_v37 = vadd.f32 %v5775_v49, %v707_v29 }
 0x1c4   : > { %754 = vmatmul.f32.gmra.mxu1 %v654_v35 }
 0x1c5   : > { %v820_v40 = vpop.f32.mrf.mxu2 }
 0x1c6   : > { %v821_v43 = vadd.f32 %v820_v40, %v708_v37  ;;  %v664_v37 = vld [vmem:[%s8677_s2 + $0x150] sm:$0xff] }
 0x1c8   : > { %917 = vst.msk [vmem:[#allocation2 + $0x19] sm:$0xff] %vm472_vm1, %v821_v43 }
 0x1c9   : > { %v710_v5 = vpop.f32.mrf.mxu1  ;;  %1110 = vst.msk [vmem:[#allocation2 + $0x19] sm:$0xff] %vm1109_vm4, %v5518_v55 }
 0x1ca   : > { %870 = vmatmul.f32.gmra.mxu2 %v657_v42  ;;  %v711_v54 = vadd.f32 %v5775_v49, %v710_v5 }
 0x1cc   : > { %757 = vmatmul.f32.gmra.mxu1 %v656_v38 }
 0x1cd   : > { %v823_v39 = vpop.f32.mrf.mxu2 }
 0x1ce   : > { %v824_v56 = vadd.f32 %v823_v39, %v711_v54  ;;  %v666_v39 = vld [vmem:[%s8677_s2 + $0x160] sm:$0xff] }
 0x1d0   : > { %918 = vst.msk [vmem:[#allocation2 + $0x21] sm:$0xff] %vm472_vm1, %v824_v56  ;;  %v1270_v33 = vld [vmem:[#allocation2 + $0x19] sm:$0xff] }
 0x1d1   : > { %v713_v45 = vpop.f32.mrf.mxu1  ;;  %v1238_v41 = vld [vmem:[#allocation2 + $0x18] sm:$0xff]  ;;  %1111 = vst.msk [vmem:[#allocation2 + $0x21] sm:$0xff] %vm1109_vm4, %v5488_v48  ;;  %1847 = vrot.lane.b32.xlu2 %v1270_v33, %s5165_s12  ;;  %1467 = vrot.lane.b32.xlu1 %v1270_v33, %s5159_s22 }
 0x1d2   : > { %1719 = vrot.lane.b32.xlu0 %v1238_v41, %s5166_s13  ;;  %873 = vmatmul.f32.gmra.mxu2 %v659_v59  ;;  %v714_v58 = vadd.f32 %v5775_v49, %v713_v45  ;;  %v661_v48 = vld [vmem:[%s8677_s2 + $0x138] sm:$0xff] }
 0x1d4   : > { %760 = vmatmul.f32.gmra.mxu1 %v658_v50 }
 0x1d5   : > { %v826_v51 = vpop.f32.mrf.mxu2 }
 0x1d6   : > { %v827_v63 = vadd.f32 %v826_v51, %v714_v58 }
 0x1d8   : > { %919 = vst.msk [vmem:[#allocation2 + $0x31] sm:$0xff] %vm472_vm1, %v827_v63  ;;  %v1177_v60 = vld [vmem:[#allocation2 + $0x21] sm:$0xff] }
 0x1d9   : > { %v716_v55 = vpop.f32.mrf.mxu1  ;;  %v1208_v53 = vld [vmem:[#allocation2 + $0x1a] sm:$0xff]  ;;  %v1209_v1 = vld [vmem:[#allocation2 + $0x22] sm:$0xff]  ;;  %1112 = vst.msk [vmem:[#allocation2 + $0x31] sm:$0xff] %vm1109_vm4, %v5451_v44  ;;  %1469 = vrot.lane.b32.xlu2 %v1177_v60, %s5159_s22 }
 0x1da   : > { %1595 = vrot.lane.b32.xlu0 %v1208_v53, %s5160_s23  ;;  %1597 = vrot.lane.b32.xlu1 %v1209_v1, %s5160_s23  ;;  %v717_v29 = vadd.f32 %v5775_v49, %v716_v55  ;;  %v663_v44 = vld [vmem:[%s8677_s2 + $0x148] sm:$0xff]  ;;  %v1239_v5 = vld [vmem:[#allocation2 + $0x20] sm:$0xff]  ;;  %v668_v55 = vld [vmem:[%s8677_s2 + $0x170] sm:$0xff] }
 0x1db   : > { %876 = vmatmul.f32.gmra.mxu2 %v661_v48 }
 0x1dc   : > { %763 = vmatmul.f32.gmra.mxu1 %v660_v4 }
 0x1dd   : > { %v829_v35 = vpop.f32.mrf.mxu2 }
 0x1de   : > { %v830_v2 = vadd.f32 %v829_v35, %v717_v29 }
 0x1e0   : > { %920 = vst.msk [vmem:[#allocation2 + $0x39] sm:$0xff] %vm472_vm1, %v830_v2  ;;  %v1240_v45 = vld [vmem:[#allocation2 + $0x30] sm:$0xff] }
 0x1e1   : > { %v719_v47 = vpop.f32.mrf.mxu1  ;;  %1113 = vst.msk [vmem:[#allocation2 + $0x39] sm:$0xff] %vm1109_vm4, %v5553_v62  ;;  %1977 = vrot.lane.b32.xlu2 %v1209_v1, %s5167_s26  ;;  %v665_v62 = vld [vmem:[%s8677_s2 + $0x158] sm:$0xff]  ;;  %v670_v1 = vld [vmem:[%s8677_s2 + $0x180] sm:$0xff] }
 0x1e2   : > { %1849 = vrot.lane.b32.xlu0 %v1177_v60, %s5165_s12  ;;  %1721 = vrot.lane.b32.xlu1 %v1239_v5, %s5166_s13  ;;  %v720_v40 = vadd.f32 %v5775_v49, %v719_v47  ;;  %v1178_v50 = vld [vmem:[#allocation2 + $0x31] sm:$0xff] }
 0x1e3   : > { %879 = vmatmul.f32.gmra.mxu2 %v663_v44  ;;  %v672_v44 = vld [vmem:[%s8677_s2 + $0x190] sm:$0xff] }
 0x1e4   : > { %766 = vmatmul.f32.gmra.mxu1 %v662_v32 }
 0x1e5   : > { %v832_v43 = vpop.f32.mrf.mxu2 }
 0x1e6   : > { %v833_v42 = vadd.f32 %v832_v43, %v720_v40 }
 0x1e8   : > { %921 = vst.msk [vmem:[#allocation2 + $0x49] sm:$0xff] %vm472_vm1, %v833_v42  ;;  %v1210_v63 = vld [vmem:[#allocation2 + $0x32] sm:$0xff]  ;;  %v1211_v48 = vld [vmem:[#allocation2 + $0x3a] sm:$0xff] }
 0x1e9   : > { %v722_v38 = vpop.f32.mrf.mxu1  ;;  %1114 = vst.msk [vmem:[#allocation2 + $0x49] sm:$0xff] %vm1109_vm4, %v5522_v57  ;;  %1723 = vrot.lane.b32.xlu2 %v1240_v45, %s5166_s13  ;;  %v667_v57 = vld [vmem:[%s8677_s2 + $0x168] sm:$0xff]  ;;  %v1179_v60 = vld [vmem:[#allocation2 + $0x39] sm:$0xff] }
 0x1ea   : > { %1471 = vrot.lane.b32.xlu0 %v1178_v50, %s5159_s22  ;;  %1975 = vrot.lane.b32.xlu1 %v1208_v53, %s5167_s26  ;;  %v723_v56 = vadd.f32 %v5775_v49, %v722_v38  ;;  %v1241_v35 = vld [vmem:[#allocation2 + $0x38] sm:$0xff]  ;;  %v674_v42 = vld [vmem:[%s8677_s2 + $0x1a0] sm:$0xff] }
 0x1eb   : > { %882 = vmatmul.f32.gmra.mxu2 %v665_v62 }
 0x1ec   : > { %769 = vmatmul.f32.gmra.mxu1 %v664_v37 }
 0x1ed   : > { %v835_v59 = vpop.f32.mrf.mxu2 }
 0x1ee   : > { %v836_v33 = vadd.f32 %v835_v59, %v723_v56  ;;  %v676_v56 = vld [vmem:[%s8677_s2 + $0x1b0] sm:$0xff] }
 0x1f0   : > { %922 = vst.msk [vmem:[#allocation2 + $0x51] sm:$0xff] %vm472_vm1, %v836_v33  ;;  %v1180_v40 = vld [vmem:[#allocation2 + $0x49] sm:$0xff] }
 0x1f1   : > { %v725_v54 = vpop.f32.mrf.mxu1  ;;  %1115 = vst.msk [vmem:[#allocation2 + $0x51] sm:$0xff] %vm1109_vm4, %v5474_v46  ;;  %2231 = vrot.lane.b32.xlu2 %v1178_v50, %s5168_s19  ;;  %v669_v46 = vld [vmem:[%s8677_s2 + $0x178] sm:$0xff] }
 0x1f2   : > { %2103 = vrot.lane.b32.xlu0 %v1240_v45, %s5161_s24  ;;  %1851 = vrot.lane.b32.xlu1 %v1178_v50, %s5165_s12  ;;  %v726_v4 = vadd.f32 %v5775_v49, %v725_v54  ;;  %v1337_v54 = vld [vmem:[#allocation2 + $0x48] sm:$0xff] }
 0x1f3   : > { %885 = vmatmul.f32.gmra.mxu2 %v667_v57 }
 0x1f4   : > { %772 = vmatmul.f32.gmra.mxu1 %v666_v39 }
 0x1f5   : > { %v838_v58 = vpop.f32.mrf.mxu2 }
 0x1f6   : > { %v839_v51 = vadd.f32 %v838_v58, %v726_v4  ;;  %v678_v4 = vld [vmem:[%s8677_s2 + $0x1c0] sm:$0xff] }
 0x1f8   : > { %923 = vst.msk [vmem:[#allocation2 + $0x61] sm:$0xff] %vm472_vm1, %v839_v51 }
 0x1f9   : > { %v728_v41 = vpop.f32.mrf.mxu1  ;;  %1116 = vst.msk [vmem:[#allocation2 + $0x61] sm:$0xff] %vm1109_vm4, %v5592_v6  ;;  %1599 = vrot.lane.b32.xlu2 %v1210_v63, %s5160_s23  ;;  %v671_v6 = vld [vmem:[%s8677_s2 + $0x188] sm:$0xff] }
 0x1fa   : > { %1601 = vrot.lane.b32.xlu0 %v1211_v48, %s5160_s23  ;;  %1473 = vrot.lane.b32.xlu1 %v1179_v60, %s5159_s22  ;;  %v729_v47 = vadd.f32 %v5775_v49, %v728_v41  ;;  %v1213_v41 = vld [vmem:[#allocation2 + $0x52] sm:$0xff] }
 0x1fb   : > { %888 = vmatmul.f32.gmra.mxu2 %v669_v46 }
 0x1fc   : > { %775 = vmatmul.f32.gmra.mxu1 %v668_v55 }
 0x1fd   : > { %v841_v32 = vpop.f32.mrf.mxu2 }
 0x1fe   : > { %v842_v29 = vadd.f32 %v841_v32, %v729_v47 }
 0x200   : > { %924 = vst.msk [vmem:[#allocation2 + $0x69] sm:$0xff] %vm472_vm1, %v842_v29 }
 0x201   : > { %v731_v53 = vpop.f32.mrf.mxu1  ;;  %1117 = vst.msk [vmem:[#allocation2 + $0x69] sm:$0xff] %vm1109_vm4, %v5559_v0  ;;  %1853 = vrot.lane.b32.xlu2 %v1179_v60, %s5165_s12  ;;  %v673_v0 = vld [vmem:[%s8677_s2 + $0x198] sm:$0xff] }
 0x202   : > { %1725 = vrot.lane.b32.xlu0 %v1241_v35, %s5166_s13  ;;  %1981 = vrot.lane.b32.xlu1 %v1211_v48, %s5167_s26  ;;  %v732_v5 = vadd.f32 %v5775_v49, %v731_v53  ;;  %v1181_v48 = vld [vmem:[#allocation2 + $0x51] sm:$0xff] }
 0x203   : > { %891 = vmatmul.f32.gmra.mxu2 %v671_v6 }
 0x204   : > { %778 = vmatmul.f32.gmra.mxu1 %v670_v1  ;;  %v680_v1 = vld [vmem:[%s8677_s2 + $0x1d0] sm:$0xff] }
 0x205   : > { %v844_v38 = vpop.f32.mrf.mxu2 }
 0x206   : > { %v845_v37 = vadd.f32 %v844_v38, %v732_v5 }
 0x208   : > { %925 = vst.msk [vmem:[#allocation2 + $0x79] sm:$0xff] %vm472_vm1, %v845_v37  ;;  %v1182_v37 = vld [vmem:[#allocation2 + $0x61] sm:$0xff] }
 0x209   : > { %v734_v2 = vpop.f32.mrf.mxu1  ;;  %1118 = vst.msk [vmem:[#allocation2 + $0x79] sm:$0xff] %vm1109_vm4, %v5504_v52  ;;  %1475 = vrot.lane.b32.xlu2 %v1180_v40, %s5159_s22  ;;  %v675_v52 = vld [vmem:[%s8677_s2 + $0x1a8] sm:$0xff] }
 0x20a   : > { %1979 = vrot.lane.b32.xlu0 %v1210_v63, %s5167_s26  ;;  %2105 = vrot.lane.b32.xlu1 %v1241_v35, %s5161_s24  ;;  %v735_v62 = vadd.f32 %v5775_v49, %v734_v2  ;;  %v1243_v63 = vld [vmem:[#allocation2 + $0x50] sm:$0xff]  ;;  %v682_v35 = vld [vmem:[%s8677_s2 + $0x1e0] sm:$0xff] }
 0x20b   : > { %894 = vmatmul.f32.gmra.mxu2 %v673_v0 }
 0x20c   : > { %781 = vmatmul.f32.gmra.mxu1 %v672_v44 }
 0x20d   : > { %v847_v45 = vpop.f32.mrf.mxu2 }
 0x20e   : > { %v848_v50 = vadd.f32 %v847_v45, %v735_v62  ;;  %v685_v45 = vld [vmem:[%s8677_s2 + $0x1f8] sm:$0xff] }
 0x210   : > { %926 = vst.msk [vmem:[#allocation2 + $0x81] sm:$0xff] %vm472_vm1, %v848_v50  ;;  %v1244_v50 = vld [vmem:[#allocation2 + $0x60] sm:$0xff] }
 0x211   : > { %v737_v43 = vpop.f32.mrf.mxu1  ;;  %1119 = vst.msk [vmem:[#allocation2 + $0x81] sm:$0xff] %vm1109_vm4, %v5607_v9  ;;  %2107 = vrot.lane.b32.xlu2 %v1337_v54, %s5161_s24  ;;  %v677_v9 = vld [vmem:[%s8677_s2 + $0x1b8] sm:$0xff] }
 0x212   : > { %2233 = vrot.lane.b32.xlu0 %v1179_v60, %s5168_s19  ;;  %1727 = vrot.lane.b32.xlu1 %v1337_v54, %s5166_s13  ;;  %v738_v59 = vadd.f32 %v5775_v49, %v737_v43  ;;  %v1212_v60 = vld [vmem:[#allocation2 + $0x4a] sm:$0xff] }
 0x213   : > { %897 = vmatmul.f32.gmra.mxu2 %v675_v52 }
 0x214   : > { %784 = vmatmul.f32.gmra.mxu1 %v674_v42 }
 0x215   : > { %v850_v33 = vpop.f32.mrf.mxu2 }
 0x216   : > { %v851_v57 = vadd.f32 %v850_v33, %v738_v59  ;;  %v1183_v33 = vld [vmem:[#allocation2 + $0x69] sm:$0xff] }
 0x218   : > { %927 = vst.msk [vmem:[#allocation2 + $0x91] sm:$0xff] %vm472_vm1, %v851_v57 }
 0x219   : > { %v740_v39 = vpop.f32.mrf.mxu1  ;;  %1120 = vst.msk [vmem:[#allocation2 + $0x91] sm:$0xff] %vm1109_vm4, %v5596_v7  ;;  %1605 = vrot.lane.b32.xlu2 %v1213_v41, %s5160_s23  ;;  %v679_v7 = vld [vmem:[%s8677_s2 + $0x1c8] sm:$0xff] }
 0x21a   : > { %1855 = vrot.lane.b32.xlu0 %v1180_v40, %s5165_s12  ;;  %2235 = vrot.lane.b32.xlu1 %v1180_v40, %s5168_s19  ;;  %v741_v58 = vadd.f32 %v5775_v49, %v740_v39  ;;  %v684_v40 = vld [vmem:[%s8677_s2 + $0x1f0] sm:$0xff] }
 0x21b   : > { %900 = vmatmul.f32.gmra.mxu2 %v677_v9 }
 0x21c   : > { %787 = vmatmul.f32.gmra.mxu1 %v676_v56 }
 0x21d   : > { %v853_v51 = vpop.f32.mrf.mxu2 }
 0x21e   : > { %v854_v46 = vadd.f32 %v853_v51, %v741_v58 }
 0x220   : > { %928 = vst.msk [vmem:[#allocation2 + $0x99] sm:$0xff] %vm472_vm1, %v854_v46  ;;  %v1245_v46 = vld [vmem:[#allocation2 + $0x68] sm:$0xff] }
 0x221   : > { %v743_v55 = vpop.f32.mrf.mxu1  ;;  %1121 = vst.msk [vmem:[#allocation2 + $0x99] sm:$0xff] %vm1109_vm4, %v5543_v61  ;;  %1729 = vrot.lane.b32.xlu2 %v1243_v63, %s5166_s13  ;;  %v681_v61 = vld [vmem:[%s8677_s2 + $0x1d8] sm:$0xff] }
 0x222   : > { %1477 = vrot.lane.b32.xlu0 %v1181_v48, %s5159_s22  ;;  %1603 = vrot.lane.b32.xlu1 %v1212_v60, %s5160_s23  ;;  %v744_v47 = vadd.f32 %v5775_v49, %v743_v55 }
 0x223   : > { %903 = vmatmul.f32.gmra.mxu2 %v679_v7 }
 0x224   : > { %790 = vmatmul.f32.gmra.mxu1 %v678_v4 }
 0x225   : > { %v856_v32 = vpop.f32.mrf.mxu2 }
 0x226   : > { %v857_v29 = vadd.f32 %v856_v32, %v744_v47 }
 0x228   : > { %929 = vst.msk [vmem:[#allocation2 + $0xa9] sm:$0xff] %vm472_vm1, %v857_v29 }
 0x229   : > { %v746_v53 = vpop.f32.mrf.mxu1  ;;  %1122 = vst.msk [vmem:[#allocation2 + $0xa9] sm:$0xff] %vm1109_vm4, %v5613_v12  ;;  %1983 = vrot.lane.b32.xlu2 %v1212_v60, %s5167_s26  ;;  %v683_v12 = vld [vmem:[%s8677_s2 + $0x1e8] sm:$0xff] }
 0x22a   : > { %1985 = vrot.lane.b32.xlu0 %v1213_v41, %s5167_s26  ;;  %1857 = vrot.lane.b32.xlu1 %v1181_v48, %s5165_s12  ;;  %v747_v2 = vadd.f32 %v5775_v49, %v746_v53 }
 0x22b   : > { %906 = vmatmul.f32.gmra.mxu2 %v681_v61  ;;  %v5950_v44 = vpop.permute.xlu2 %1847 }
 0x22c   : > { %793 = vmatmul.f32.gmra.mxu1 %v680_v1 }
 0x22d   : > { %v859_v5 = vpop.f32.mrf.mxu2 }
 0x22e   : > { %v860_v38 = vadd.f32 %v859_v5, %v747_v2  ;;  %v1184_v5 = vld [vmem:[#allocation2 + $0x79] sm:$0xff] }
 0x230   : > { %930 = vst.msk [vmem:[#allocation2 + $0xb1] sm:$0xff] %vm472_vm1, %v860_v38 }
 0x231   : > { %v749_v6 = vpop.f32.mrf.mxu1  ;;  %1123 = vst.msk [vmem:[#allocation2 + $0xb1] sm:$0xff] %vm1109_vm4, %v5609_v10  ;;  %2237 = vrot.lane.b32.xlu2 %v1181_v48, %s5168_s19 }
 0x232   : > { %2109 = vrot.lane.b32.xlu0 %v1243_v63, %s5161_s24  ;;  %1479 = vrot.lane.b32.xlu1 %v1182_v37, %s5159_s22  ;;  %v750_v43 = vadd.f32 %v5775_v49, %v749_v6 }
 0x233   : > { %909 = vmatmul.f32.gmra.mxu2 %v683_v12  ;;  %v5965_v42 = vpop.permute.xlu2 %1469 }
 0x234   : > { %796 = vmatmul.f32.gmra.mxu1 %v682_v35 }
 0x235   : > { %v862_v62 = vpop.f32.mrf.mxu2 }
 0x236   : > { %v863_v10 = vadd.f32 %v862_v62, %v750_v43 }
 0x238   : > { %931 = vst.msk [vmem:[#allocation2 + $0xc1] sm:$0xff] %vm472_vm1, %v863_v10 }
 0x239   : > { %v752_v0 = vpop.f32.mrf.mxu1  ;;  %1124 = vst.msk [vmem:[#allocation2 + $0xc1] sm:$0xff] %vm1109_vm4, %v5576_v3  ;;  %1859 = vrot.lane.b32.xlu2 %v1182_v37, %s5165_s12  ;;  %v1215_v3 = vld [vmem:[#allocation2 + $0x6a] sm:$0xff] }
 0x23a   : > { %1731 = vrot.lane.b32.xlu0 %v1244_v50, %s5166_s13  ;;  %2111 = vrot.lane.b32.xlu1 %v1244_v50, %s5161_s24  ;;  %v753_v54 = vadd.f32 %v5775_v49, %v752_v0 }
 0x23b   : > { %912 = vmatmul.f32.gmra.mxu2 %v685_v45  ;;  %v5977_v39 = vpop.permute.xlu2 %1977 }
 0x23c   : > { %799 = vmatmul.f32.gmra.mxu1 %v684_v40 }
 0x23d   : > { %v865_v56 = vpop.f32.mrf.mxu2 }
 0x23e   : > { %v866_v59 = vadd.f32 %v865_v56, %v753_v54 }
 0x240   : > { %932 = vst.msk [vmem:[#allocation2 + $0xc9] sm:$0xff] %vm472_vm1, %v866_v59  ;;  %v1217_v59 = vld [vmem:[#allocation2 + $0x82] sm:$0xff] }
 0x241   : > { %v755_v52 = vpop.f32.mrf.mxu1  ;;  %1125 = vst.msk [vmem:[#allocation2 + $0xc9] sm:$0xff] %vm1109_vm4, %v5619_v15  ;;  %1481 = vrot.lane.b32.xlu2 %v1183_v33, %s5159_s22  ;;  %v1214_v15 = vld [vmem:[#allocation2 + $0x62] sm:$0xff] }
 0x242   : > { %2239 = vrot.lane.b32.xlu0 %v1182_v37, %s5168_s19  ;;  %1609 = vrot.lane.b32.xlu1 %v1215_v3, %s5160_s23  ;;  %v756_v9 = vadd.f32 %v5775_v49, %v755_v52 }
 0x243   : > { %v5986_v41 = vpop.permute.xlu2 %1723  ;;  %v5990_v4 = vpop.permute.xlu1 %1467 }
 0x244   : > { %v5988_v55 = vpop.permute.xlu0 %1719 }
 0x245   : > { %v868_v58 = vpop.f32.mrf.mxu2 }
 0x246   : > { %v869_v51 = vadd.f32 %v868_v58, %v756_v9 }
 0x248   : > { %933 = vst.msk [vmem:[#allocation2 + $0xd9] sm:$0xff] %vm472_vm1, %v869_v51 }
 0x249   : > { %v758_v57 = vpop.f32.mrf.mxu1  ;;  %1126 = vst.msk [vmem:[#allocation2 + $0xd9] sm:$0xff] %vm1109_vm4, %v5615_v13  ;;  %1989 = vrot.lane.b32.xlu2 %v1215_v3, %s5167_s26 }
 0x24a   : > { %1607 = vrot.lane.b32.xlu0 %v1214_v15, %s5160_s23  ;;  %1733 = vrot.lane.b32.xlu1 %v1245_v46, %s5166_s13  ;;  %v759_v63 = vadd.f32 %v5775_v49, %v758_v57 }
 0x24b   : > { %v5999_v48 = vpop.permute.xlu2 %2231 }
 0x24c   : > { %v6001_v60 = vpop.permute.xlu0 %1595  ;;  %v6003_v53 = vpop.permute.xlu1 %1597 }
 0x24d   : > { %v871_v1 = vpop.f32.mrf.mxu2 }
 0x24e   : > { %v872_v47 = vadd.f32 %v871_v1, %v759_v63 }
 0x250   : > { %934 = vst.msk [vmem:[#allocation2 + $0xe1] sm:$0xff] %vm472_vm1, %v872_v47 }
 0x251   : > { %v761_v7 = vpop.f32.mrf.mxu1  ;;  %1127 = vst.msk [vmem:[#allocation2 + $0xe1] sm:$0xff] %vm1109_vm4, %v5603_v8  ;;  %2113 = vrot.lane.b32.xlu2 %v1245_v46, %s5161_s24  ;;  %v1246_v8 = vld [vmem:[#allocation2 + $0x78] sm:$0xff] }
 0x252   : > { %1861 = vrot.lane.b32.xlu0 %v1183_v33, %s5165_s12  ;;  %1987 = vrot.lane.b32.xlu1 %v1214_v15, %s5167_s26  ;;  %v762_v32 = vadd.f32 %v5775_v49, %v761_v7 }
 0x253   : > { %v6012_v29 = vpop.permute.xlu2 %1599 }
 0x254   : > { %v6014_v61 = vpop.permute.xlu0 %1849  ;;  %v6016_v6 = vpop.permute.xlu1 %1721 }
 0x255   : > { %v874_v35 = vpop.f32.mrf.mxu2 }
 0x256   : > { %v875_v2 = vadd.f32 %v874_v35, %v762_v32 }
 0x258   : > { %935 = vst.msk [vmem:[#allocation2 + $0xf1] sm:$0xff] %vm472_vm1, %v875_v2 }
 0x259   : > { %v764_v13 = vpop.f32.mrf.mxu1  ;;  %1128 = vst.msk [vmem:[#allocation2 + $0xf1] sm:$0xff] %vm1109_vm4, %v5625_v18  ;;  %1735 = vrot.lane.b32.xlu2 %v1246_v8, %s5166_s13 }
 0x25a   : > { %1483 = vrot.lane.b32.xlu0 %v1184_v5, %s5159_s22  ;;  %2241 = vrot.lane.b32.xlu1 %v1183_v33, %s5168_s19  ;;  %v765_v12 = vadd.f32 %v5775_v49, %v764_v13  ;;  %v1185_v33 = vld [vmem:[#allocation2 + $0x81] sm:$0xff] }
 0x25b   : > { %v6025_v37 = vpop.permute.xlu2 %1853 }
 0x25c   : > { %v6027_v0 = vpop.permute.xlu0 %1471  ;;  %v6029_v40 = vpop.permute.xlu1 %1975 }
 0x25e   : > { %v877_v43 = vpop.f32.mrf.mxu2 }
 0x25f   : > { %v878_v62 = vadd.f32 %v877_v43, %v765_v12 }
 0x261   : > { %v767_v38 = vpop.f32.mrf.mxu1  ;;  %936 = vst.msk [vmem:[#allocation2 + $0xf9] sm:$0xff] %vm472_vm1, %v878_v62  ;;  %2243 = vrot.lane.b32.xlu2 %v1184_v5, %s5168_s19 }
 0x262   : > { %1129 = vst.msk [vmem:[#allocation2 + $0xf9] sm:$0xff] %vm1109_vm4, %v5621_v16  ;;  %2115 = vrot.lane.b32.xlu0 %v1246_v8, %s5161_s24  ;;  %1863 = vrot.lane.b32.xlu1 %v1184_v5, %s5165_s12  ;;  %v768_v10 = vadd.f32 %v5775_v49, %v767_v38  ;;  %v1216_v16 = vld [vmem:[#allocation2 + $0x7a] sm:$0xff] }
 0x263   : > { %v6038_v45 = vpop.permute.xlu2 %1475 }
 0x264   : > { %8696 = vst [vmem:[#allocation6_spill] sm:$0xff] %v6038_v45  ;;  %v6040_v50 = vpop.permute.xlu0 %2103  ;;  %v6042_v52 = vpop.permute.xlu1 %1851 }
 0x266   : > { %v880_v54 = vpop.f32.mrf.mxu2 }
 0x267   : > { %v881_v56 = vadd.f32 %v880_v54, %v768_v10 }
 0x269   : > { %v770_v18 = vpop.f32.mrf.mxu1  ;;  %937 = vst.msk [vmem:[#allocation2 + $0x109] sm:$0xff] %vm472_vm1, %v881_v56  ;;  %1611 = vrot.lane.b32.xlu2 %v1216_v16, %s5160_s23 }
 0x26a   : > { %1130 = vst.msk [vmem:[#allocation2 + $0x109] sm:$0xff] %vm1109_vm4, %v5611_v11  ;;  %1613 = vrot.lane.b32.xlu0 %v1217_v59, %s5160_s23  ;;  %1485 = vrot.lane.b32.xlu1 %v1185_v33, %s5159_s22  ;;  %v771_v57 = vadd.f32 %v5775_v49, %v770_v18  ;;  %v1247_v11 = vld [vmem:[#allocation2 + $0x80] sm:$0xff] }
 0x26b   : > { %v6051_v9 = vpop.permute.xlu2 %2107 }
 0x26c   : > { %v6053_v58 = vpop.permute.xlu0 %1601  ;;  %v6055_v51 = vpop.permute.xlu1 %1473 }
 0x26e   : > { %v883_v15 = vpop.f32.mrf.mxu2 }
 0x26f   : > { %v884_v46 = vadd.f32 %v883_v15, %v771_v57 }
 0x271   : > { %v773_v3 = vpop.f32.mrf.mxu1  ;;  %938 = vst.msk [vmem:[#allocation2 + $0x111] sm:$0xff] %vm472_vm1, %v884_v46  ;;  %1865 = vrot.lane.b32.xlu2 %v1185_v33, %s5165_s12 }
 0x272   : > { %1131 = vst.msk [vmem:[#allocation2 + $0x111] sm:$0xff] %vm1109_vm4, %v5631_v21  ;;  %1737 = vrot.lane.b32.xlu0 %v1247_v11, %s5166_s13  ;;  %1993 = vrot.lane.b32.xlu1 %v1217_v59, %s5167_s26  ;;  %v774_v63 = vadd.f32 %v5775_v49, %v773_v3  ;;  %v1186_v21 = vld [vmem:[#allocation2 + $0x91] sm:$0xff] }
 0x273   : > { %v6064_v1 = vpop.permute.xlu2 %1605 }
 0x274   : > { %8697 = vst [vmem:[#allocation7_spill] sm:$0xff] %v6064_v1  ;;  %v6066_v47 = vpop.permute.xlu0 %1725  ;;  %v6068_v13 = vpop.permute.xlu1 %1981  ;;  %v1196_v1 = vld [vmem:[#allocation2 + $0x109] sm:$0xff] }
 0x276   : > { %v886_v32 = vpop.f32.mrf.mxu2 }
 0x277   : > { %v887_v35 = vadd.f32 %v886_v32, %v774_v63  ;;  %v1187_v32 = vld [vmem:[#allocation2 + $0x99] sm:$0xff] }
 0x279   : > { %v776_v7 = vpop.f32.mrf.mxu1  ;;  %939 = vst.msk [vmem:[#allocation2 + $0x121] sm:$0xff] %vm472_vm1, %v887_v35  ;;  %1487 = vrot.lane.b32.xlu2 %v1186_v21, %s5159_s22  ;;  %v1218_v35 = vld [vmem:[#allocation2 + $0x92] sm:$0xff] }
 0x27a   : > { %1132 = vst.msk [vmem:[#allocation2 + $0x121] sm:$0xff] %vm1109_vm4, %v5627_v19  ;;  %1991 = vrot.lane.b32.xlu0 %v1216_v16, %s5167_s26  ;;  %2117 = vrot.lane.b32.xlu1 %v1247_v11, %s5161_s24  ;;  %v777_v8 = vadd.f32 %v5775_v49, %v776_v7  ;;  %v1343_v19 = vld [vmem:[#allocation2 + $0x90] sm:$0xff] }
 0x27b   : > { %v6077_v5 = vpop.permute.xlu2 %1729 }
 0x27c   : > { %8698 = vst [vmem:[#allocation8_spill] sm:$0xff] %v6077_v5  ;;  %v6079_v38 = vpop.permute.xlu0 %1979  ;;  %v6081_v12 = vpop.permute.xlu1 %2105  ;;  %v1398_v5 = vld [vmem:[#allocation2 + $0x1a1] sm:$0xff] }
 0x27e   : > { %v889_v43 = vpop.f32.mrf.mxu2 }
 0x27f   : > { %v890_v62 = vadd.f32 %v889_v43, %v777_v8 }
 0x281   : > { %v779_v2 = vpop.f32.mrf.mxu1  ;;  %940 = vst.msk [vmem:[#allocation2 + $0x129] sm:$0xff] %vm472_vm1, %v890_v62  ;;  %2119 = vrot.lane.b32.xlu2 %v1343_v19, %s5161_s24 }
 0x282   : > { %1133 = vst.msk [vmem:[#allocation2 + $0x129] sm:$0xff] %vm1109_vm4, %v5617_v14  ;;  %2245 = vrot.lane.b32.xlu0 %v1185_v33, %s5168_s19  ;;  %1739 = vrot.lane.b32.xlu1 %v1343_v19, %s5166_s13  ;;  %v780_v10 = vadd.f32 %v5775_v49, %v779_v2  ;;  %v1219_v14 = vld [vmem:[#allocation2 + $0x9a] sm:$0xff] }
 0x283   : > { %v6090_v54 = vpop.permute.xlu2 %1983 }
 0x284   : > { %v6092_v56 = vpop.permute.xlu0 %2233  ;;  %v6094_v16 = vpop.permute.xlu1 %1727 }
 0x286   : > { %v892_v59 = vpop.f32.mrf.mxu2 }
 0x287   : > { %v893_v3 = vadd.f32 %v892_v59, %v780_v10 }
 0x289   : > { %v782_v18 = vpop.f32.mrf.mxu1  ;;  %941 = vst.msk [vmem:[#allocation2 + $0x139] sm:$0xff] %vm472_vm1, %v893_v3  ;;  %1617 = vrot.lane.b32.xlu2 %v1219_v14, %s5160_s23 }
 0x28a   : > { %1134 = vst.msk [vmem:[#allocation2 + $0x139] sm:$0xff] %vm1109_vm4, %v5637_v24  ;;  %1867 = vrot.lane.b32.xlu0 %v1186_v21, %s5165_s12  ;;  %2247 = vrot.lane.b32.xlu1 %v1186_v21, %s5168_s19  ;;  %v783_v57 = vadd.f32 %v5775_v49, %v782_v18  ;;  %v1249_v24 = vld [vmem:[#allocation2 + $0x98] sm:$0xff] }
 0x28b   : > { %v6103_v15 = vpop.permute.xlu2 %2237 }
 0x28c   : > { %v6105_v46 = vpop.permute.xlu0 %1855  ;;  %v6107_v11 = vpop.permute.xlu1 %2235 }
 0x28e   : > { %v895_v7 = vpop.f32.mrf.mxu2 }
 0x28f   : > { %v896_v63 = vadd.f32 %v895_v7, %v783_v57 }
 0x291   : > { %v785_v33 = vpop.f32.mrf.mxu1  ;;  %942 = vst.msk [vmem:[#allocation2 + $0x141] sm:$0xff] %vm472_vm1, %v896_v63  ;;  %1741 = vrot.lane.b32.xlu2 %v1249_v24, %s5166_s13 }
 0x292   : > { %1135 = vst.msk [vmem:[#allocation2 + $0x141] sm:$0xff] %vm1109_vm4, %v5633_v22  ;;  %1489 = vrot.lane.b32.xlu0 %v1187_v32, %s5159_s22  ;;  %1615 = vrot.lane.b32.xlu1 %v1218_v35, %s5160_s23  ;;  %v786_v2 = vadd.f32 %v5775_v49, %v785_v33 }
 0x293   : > { %v6116_v8 = vpop.permute.xlu2 %1859 }
 0x294   : > { %8699 = vst [vmem:[#allocation9_spill] sm:$0xff] %v6116_v8  ;;  %v6118_v43 = vpop.permute.xlu0 %1477  ;;  %v6120_v62 = vpop.permute.xlu1 %1603 }
 0x295   : > { %8700 = vst [vmem:[#allocation10_spill] sm:$0xff] %v6118_v43  ;;  %v1355_v43 = vld [vmem:[#allocation2 + $0x120] sm:$0xff] }
 0x296   : > { %8701 = vst [vmem:[#allocation11_spill] sm:$0xff] %v6120_v62  ;;  %v898_v19 = vpop.f32.mrf.mxu2 }
 0x297   : > { %v899_v18 = vadd.f32 %v898_v19, %v786_v2 }
 0x299   : > { %v788_v21 = vpop.f32.mrf.mxu1  ;;  %943 = vst.msk [vmem:[#allocation2 + $0x151] sm:$0xff] %vm472_vm1, %v899_v18  ;;  %1995 = vrot.lane.b32.xlu2 %v1218_v35, %s5167_s26 }
 0x29a   : > { %1136 = vst.msk [vmem:[#allocation2 + $0x151] sm:$0xff] %vm1109_vm4, %v5623_v17  ;;  %1997 = vrot.lane.b32.xlu0 %v1219_v14, %s5167_s26  ;;  %1869 = vrot.lane.b32.xlu1 %v1187_v32, %s5165_s12  ;;  %v789_v10 = vadd.f32 %v5775_v49, %v788_v21  ;;  %v1188_v17 = vld [vmem:[#allocation2 + $0xa9] sm:$0xff] }
 0x29b   : > { %v6129_v59 = vpop.permute.xlu2 %1481 }
 0x29c   : > { %8702 = vst [vmem:[#allocation12_spill] sm:$0xff] %v6129_v59  ;;  %v6131_v3 = vpop.permute.xlu0 %1985  ;;  %v6133_v33 = vpop.permute.xlu1 %1857 }
 0x29d   : > { %8703 = vst [vmem:[#allocation13_spill] sm:$0xff] %v6131_v3 }
 0x29e   : > { %8704 = vst [vmem:[#allocation14_spill] sm:$0xff] %v6133_v33  ;;  %v901_v57 = vpop.f32.mrf.mxu2  ;;  %v1397_v33 = vld [vmem:[#allocation2 + $0x199] sm:$0xff] }
 0x29f   : > { %v902_v7 = vadd.f32 %v901_v57, %v789_v10 }
 0x2a1   : > { %v791_v22 = vpop.f32.mrf.mxu1  ;;  %944 = vst.msk [vmem:[#allocation2 + $0x159] sm:$0xff] %vm472_vm1, %v902_v7  ;;  %2249 = vrot.lane.b32.xlu2 %v1187_v32, %s5168_s19  ;;  %v1264_v8 = vld [vmem:[#allocation2 + $0x150] sm:$0xff] }
 0x2a2   : > { %1137 = vst.msk [vmem:[#allocation2 + $0x159] sm:$0xff] %vm1109_vm4, %v5643_v27  ;;  %2121 = vrot.lane.b32.xlu0 %v1249_v24, %s5161_s24  ;;  %1491 = vrot.lane.b32.xlu1 %v1188_v17, %s5159_s22  ;;  %v792_v14 = vadd.f32 %v5775_v49, %v791_v22  ;;  %v1250_v27 = vld [vmem:[#allocation2 + $0xa8] sm:$0xff] }
 0x2a3   : > { %v6142_v35 = vpop.permute.xlu2 %1989 }
 0x2a4   : > { %8705 = vst [vmem:[#allocation15_spill] sm:$0xff] %v6142_v35  ;;  %v6144_v21 = vpop.permute.xlu0 %2109  ;;  %v6146_v2 = vpop.permute.xlu1 %1479 }
 0x2a5   : > { %8706 = vst [vmem:[#allocation16_spill] sm:$0xff] %v6146_v2  ;;  %v1192_v2 = vld [vmem:[#allocation2 + $0xd9] sm:$0xff] }
 0x2a6   : > { %v904_v19 = vpop.f32.mrf.mxu2 }
 0x2a7   : > { %v905_v18 = vadd.f32 %v904_v19, %v792_v14 }
 0x2a9   : > { %v794_v63 = vpop.f32.mrf.mxu1  ;;  %945 = vst.msk [vmem:[#allocation2 + $0x169] sm:$0xff] %vm472_vm1, %v905_v18  ;;  %1871 = vrot.lane.b32.xlu2 %v1188_v17, %s5165_s12 }
 0x2aa   : > { %1138 = vst.msk [vmem:[#allocation2 + $0x169] sm:$0xff] %vm1109_vm4, %v5639_v25  ;;  %1743 = vrot.lane.b32.xlu0 %v1250_v27, %s5166_s13  ;;  %2123 = vrot.lane.b32.xlu1 %v1250_v27, %s5161_s24  ;;  %v795_v24 = vadd.f32 %v5775_v49, %v794_v63  ;;  %v1189_v25 = vld [vmem:[#allocation2 + $0xb1] sm:$0xff] }
 0x2ab   : > { %v6155_v32 = vpop.permute.xlu2 %2113  ;;  %v1221_v63 = vld [vmem:[#allocation2 + $0xb2] sm:$0xff] }
 0x2ac   : > { %8707 = vst [vmem:[#allocation17_spill] sm:$0xff] %v6155_v32  ;;  %v6157_v22 = vpop.permute.xlu0 %1731  ;;  %v6159_v10 = vpop.permute.xlu1 %2111 }
 0x2ad   : > { %8708 = vst [vmem:[#allocation18_spill] sm:$0xff] %v6157_v22 }
 0x2ae   : > { %v907_v57 = vpop.f32.mrf.mxu2 }
 0x2af   : > { %v908_v14 = vadd.f32 %v907_v57, %v795_v24 }
 0x2b1   : > { %v797_v7 = vpop.f32.mrf.mxu1  ;;  %946 = vst.msk [vmem:[#allocation2 + $0x171] sm:$0xff] %vm472_vm1, %v908_v14  ;;  %1493 = vrot.lane.b32.xlu2 %v1189_v25, %s5159_s22  ;;  %v1204_v22 = vld [vmem:[#allocation2 + $0x169] sm:$0xff] }
 0x2b2   : > { %1139 = vst.msk [vmem:[#allocation2 + $0x171] sm:$0xff] %vm1109_vm4, %v5629_v20  ;;  %2251 = vrot.lane.b32.xlu0 %v1188_v17, %s5168_s19  ;;  %1621 = vrot.lane.b32.xlu1 %v1221_v63, %s5160_s23  ;;  %v798_v19 = vadd.f32 %v5775_v49, %v797_v7  ;;  %v1220_v20 = vld [vmem:[#allocation2 + $0xaa] sm:$0xff] }
 0x2b3   : > { %v6168_v18 = vpop.permute.xlu2 %1735  ;;  %v1251_v17 = vld [vmem:[#allocation2 + $0xb0] sm:$0xff]  ;;  %v1361_v32 = vld [vmem:[#allocation2 + $0x168] sm:$0xff] }
 0x2b4   : > { %8709 = vst [vmem:[#allocation19_spill] sm:$0xff] %v6168_v18  ;;  %v6170_v27 = vpop.permute.xlu0 %2239  ;;  %v6172_v24 = vpop.permute.xlu1 %1609  ;;  %v1190_v18 = vld [vmem:[#allocation2 + $0xc1] sm:$0xff] }
 0x2b5   : > { %8710 = vst [vmem:[#allocation20_spill] sm:$0xff] %v6172_v24 }
 0x2b6   : > { %v910_v57 = vpop.f32.mrf.mxu2 }
 0x2b7   : > { %v911_v14 = vadd.f32 %v910_v57, %v798_v19 }
 0x2b9   : > { %v800_v36 = vpop.f32.mrf.mxu1  ;;  %947 = vst.msk [vmem:[#allocation2 + $0x181] sm:$0xff] %vm472_vm1, %v911_v14  ;;  %2001 = vrot.lane.b32.xlu2 %v1221_v63, %s5167_s26  ;;  %v1252_v63 = vld [vmem:[#allocation2 + $0xc0] sm:$0xff] }
 0x2ba   : > { %1140 = vst.msk [vmem:[#allocation2 + $0x181] sm:$0xff] %vm1109_vm4, %v5649_v30  ;;  %1619 = vrot.lane.b32.xlu0 %v1220_v20, %s5160_s23  ;;  %1745 = vrot.lane.b32.xlu1 %v1251_v17, %s5166_s13  ;;  %v801_v7 = vadd.f32 %v5775_v49, %v800_v36 }
 0x2bb   : > { %v6181_v59 = vpop.permute.xlu2 %2243 }
 0x2bc   : > { %8711 = vst [vmem:[#allocation21_spill] sm:$0xff] %v6181_v59  ;;  %v6183_v24 = vpop.permute.xlu0 %1607  ;;  %v6185_v19 = vpop.permute.xlu1 %1733  ;;  %v1198_v59 = vld [vmem:[#allocation2 + $0x121] sm:$0xff] }
 0x2bd   : > { %8712 = vst [vmem:[#allocation22_spill] sm:$0xff] %v6183_v24 }
 0x2be   : > { %8713 = vst [vmem:[#allocation23_spill] sm:$0xff] %v6185_v19  ;;  %v913_v57 = vpop.f32.mrf.mxu2  ;;  %v1258_v19 = vld [vmem:[#allocation2 + $0x108] sm:$0xff] }
 0x2bf   : > { %v914_v14 = vadd.f32 %v913_v57, %v801_v7 }
 0x2c1   : > { %948 = vst.msk [vmem:[#allocation2 + $0x189] sm:$0xff] %vm472_vm1, %v914_v14  ;;  %2125 = vrot.lane.b32.xlu2 %v1251_v17, %s5161_s24  ;;  %v1300_v3 = vld [vmem:[#allocation2 + $0x181] sm:$0xff] }
 0x2c2   : > { %1141 = vst.msk [vmem:[#allocation2 + $0x189] sm:$0xff] %vm1109_vm4, %v5645_v28  ;;  %1873 = vrot.lane.b32.xlu0 %v1189_v25, %s5165_s12  ;;  %1999 = vrot.lane.b32.xlu1 %v1220_v20, %s5167_s26 }
 0x2c3   : > { %v6193_v30 = vpop.permute.xlu2 %1611 }
 0x2c4   : > { %8714 = vst [vmem:[#allocation24_spill] sm:$0xff] %v6193_v30  ;;  %v6195_v36 = vpop.permute.xlu0 %1861  ;;  %v6197_v49 = vpop.permute.xlu1 %1987  ;;  %v1222_v30 = vld [vmem:[#allocation2 + $0xc2] sm:$0xff] }
 0x2c5   : > { %8715 = vst [vmem:[#allocation25_spill] sm:$0xff] %v6195_v36  ;;  %v1256_v36 = vld [vmem:[#allocation2 + $0xf0] sm:$0xff] }
 0x2c6   : > { %8716 = vst [vmem:[#allocation26_spill] sm:$0xff] %v6197_v49  ;;  %v1262_v49 = vld [vmem:[#allocation2 + $0x138] sm:$0xff] }
 0x2c9   : > { %1747 = vrot.lane.b32.xlu2 %v1252_v63, %s5166_s13 }
 0x2ca   : > { %1495 = vrot.lane.b32.xlu0 %v1190_v18, %s5159_s22  ;;  %2253 = vrot.lane.b32.xlu1 %v1189_v25, %s5168_s19  ;;  %v1223_v25 = vld [vmem:[#allocation2 + $0xca] sm:$0xff] }
 0x2cb   : > { %v6202_v28 = vpop.permute.xlu2 %1865 }
 0x2cc   : > { %8717 = vst [vmem:[#allocation27_spill] sm:$0xff] %v6202_v28  ;;  %v6204_v17 = vpop.permute.xlu0 %1483  ;;  %v6206_v7 = vpop.permute.xlu1 %2241 }
 0x2cd   : > { %8718 = vst [vmem:[#allocation28_spill] sm:$0xff] %v6204_v17  ;;  %v1191_v17 = vld [vmem:[#allocation2 + $0xc9] sm:$0xff] }
 0x2ce   : > { %8719 = vst [vmem:[#allocation29_spill] sm:$0xff] %v6206_v7  ;;  %v1202_v7 = vld [vmem:[#allocation2 + $0x151] sm:$0xff] }
 0x2d1   : > { %2255 = vrot.lane.b32.xlu2 %v1190_v18, %s5168_s19 }
 0x2d2   : > { %2127 = vrot.lane.b32.xlu0 %v1252_v63, %s5161_s24  ;;  %1875 = vrot.lane.b32.xlu1 %v1190_v18, %s5165_s12 }
 0x2d3   : > { %v6211_v20 = vpop.permute.xlu2 %1487 }
 0x2d4   : > { %8720 = vst [vmem:[#allocation30_spill] sm:$0xff] %v6211_v20  ;;  %v6213_v57 = vpop.permute.xlu0 %2115  ;;  %v6215_v14 = vpop.permute.xlu1 %1863  ;;  %v1253_v20 = vld [vmem:[#allocation2 + $0xc8] sm:$0xff] }
 0x2d5   : > { %8721 = vst [vmem:[#allocation31_spill] sm:$0xff] %v6213_v57 }
 0x2d6   : > { %8722 = vst [vmem:[#allocation32_spill] sm:$0xff] %v6215_v14 }
 0x2d9   : > { %1623 = vrot.lane.b32.xlu2 %v1222_v30, %s5160_s23 }
 0x2da   : > { %1625 = vrot.lane.b32.xlu0 %v1223_v25, %s5160_s23  ;;  %1497 = vrot.lane.b32.xlu1 %v1191_v17, %s5159_s22 }
 0x2db   : > { %v6220_v28 = vpop.permute.xlu2 %2119 }
 0x2dc   : > { %8723 = vst [vmem:[#allocation33_spill] sm:$0xff] %v6220_v28  ;;  %v6222_v63 = vpop.permute.xlu0 %1613  ;;  %v6224_v18 = vpop.permute.xlu1 %1485 }
 0x2dd   : > { %8724 = vst [vmem:[#allocation34_spill] sm:$0xff] %v6222_v63 }
 0x2de   : > { %8725 = vst [vmem:[#allocation35_spill] sm:$0xff] %v6224_v18 }
 0x2e1   : > { %1877 = vrot.lane.b32.xlu2 %v1191_v17, %s5165_s12 }
 0x2e2   : > { %1749 = vrot.lane.b32.xlu0 %v1253_v20, %s5166_s13  ;;  %2005 = vrot.lane.b32.xlu1 %v1223_v25, %s5167_s26  ;;  %v1349_v25 = vld [vmem:[#allocation2 + $0xd8] sm:$0xff] }
 0x2e3   : > { %v6229_v14 = vpop.permute.xlu2 %1617 }
 0x2e4   : > { %8726 = vst [vmem:[#allocation36_spill] sm:$0xff] %v6229_v14  ;;  %v6231_v24 = vpop.permute.xlu0 %1737  ;;  %v6233_v35 = vpop.permute.xlu1 %1993 }
 0x2e5   : > { %8727 = vst [vmem:[#allocation37_spill] sm:$0xff] %v6231_v24  ;;  %v1193_v24 = vld [vmem:[#allocation2 + $0xe1] sm:$0xff] }
 0x2e6   : > { %8728 = vst [vmem:[#allocation38_spill] sm:$0xff] %v6233_v35 }
 0x2e9   : > { %1499 = vrot.lane.b32.xlu2 %v1192_v2, %s5159_s22 }
 0x2ea   : > { %2003 = vrot.lane.b32.xlu0 %v1222_v30, %s5167_s26  ;;  %2129 = vrot.lane.b32.xlu1 %v1253_v20, %s5161_s24  ;;  %v6253_v20 = vld [vmem:[#allocation2 + $0xe2] sm:$0xff] }
 0x2eb   : > { %v6238_v63 = vpop.permute.xlu2 %1741 }
 0x2ec   : > { %8729 = vst [vmem:[#allocation39_spill] sm:$0xff] %v6238_v63  ;;  %v6240_v18 = vpop.permute.xlu0 %1991  ;;  %v6242_v28 = vpop.permute.xlu1 %2117 }
 0x2ed   : > { %8730 = vst [vmem:[#allocation40_spill] sm:$0xff] %v6240_v18 }
 0x2ee   : > { %8731 = vst [vmem:[#allocation41_spill] sm:$0xff] %v6242_v28 }
 0x2f1   : > { %2131 = vrot.lane.b32.xlu2 %v1349_v25, %s5161_s24 }
 0x2f2   : > { %2257 = vrot.lane.b32.xlu0 %v1191_v17, %s5168_s19  ;;  %1751 = vrot.lane.b32.xlu1 %v1349_v25, %s5166_s13 }
 0x2f3   : > { %v6247_v14 = vpop.permute.xlu2 %1995 }
 0x2f4   : > { %8732 = vst [vmem:[#allocation42_spill] sm:$0xff] %v6247_v14  ;;  %v6249_v35 = vpop.permute.xlu0 %2245  ;;  %v6251_v30 = vpop.permute.xlu1 %1739  ;;  %v1255_v14 = vld [vmem:[#allocation2 + $0xe0] sm:$0xff] }
 0x2f5   : > { %8733 = vst [vmem:[#allocation43_spill] sm:$0xff] %v6249_v35 }
 0x2f6   : > { %8734 = vst [vmem:[#allocation44_spill] sm:$0xff] %v6251_v30  ;;  %v6267_v30 = vld [vmem:[#allocation2 + $0xda] sm:$0xff] }
 0x2f9   : > { %1629 = vrot.lane.b32.xlu2 %v6253_v20, %s5160_s23 }
 0x2fa   : > { %1879 = vrot.lane.b32.xlu0 %v1192_v2, %s5165_s12  ;;  %2259 = vrot.lane.b32.xlu1 %v1192_v2, %s5168_s19 }
 0x2fb   : > { %v6259_v63 = vpop.permute.xlu2 %2249 }
 0x2fc   : > { %8735 = vst [vmem:[#allocation45_spill] sm:$0xff] %v6259_v63  ;;  %v6261_v17 = vpop.permute.xlu0 %1867  ;;  %v6263_v25 = vpop.permute.xlu1 %2247 }
 0x2fd   : > { %8736 = vst [vmem:[#allocation46_spill] sm:$0xff] %v6261_v17 }
 0x2fe   : > { %8737 = vst [vmem:[#allocation47_spill] sm:$0xff] %v6263_v25 }
 0x301   : > { %1753 = vrot.lane.b32.xlu2 %v1255_v14, %s5166_s13 }
 0x302   : > { %1501 = vrot.lane.b32.xlu0 %v1193_v24, %s5159_s22  ;;  %1627 = vrot.lane.b32.xlu1 %v6267_v30, %s5160_s23 }
 0x303   : > { %v6271_v18 = vpop.permute.xlu2 %1871 }
 0x304   : > { %8738 = vst [vmem:[#allocation48_spill] sm:$0xff] %v6271_v18  ;;  %v6273_v2 = vpop.permute.xlu0 %1489  ;;  %v6275_v63 = vpop.permute.xlu1 %1615 }
 0x305   : > { %8739 = vst [vmem:[#allocation49_spill] sm:$0xff] %v6273_v2  ;;  %v1194_v2 = vld [vmem:[#allocation2 + $0xf1] sm:$0xff] }
 0x306   : > { %8740 = vst [vmem:[#allocation50_spill] sm:$0xff] %v6275_v63 }
 0x309   : > { %2007 = vrot.lane.b32.xlu2 %v6267_v30, %s5167_s26 }
 0x30a   : > { %2009 = vrot.lane.b32.xlu0 %v6253_v20, %s5167_s26  ;;  %1881 = vrot.lane.b32.xlu1 %v1193_v24, %s5165_s12 }
 0x30b   : > { %v6282_v17 = vpop.permute.xlu2 %1493 }
 0x30c   : > { %8741 = vst [vmem:[#allocation51_spill] sm:$0xff] %v6282_v17  ;;  %v6284_v25 = vpop.permute.xlu0 %1997  ;;  %v6286_v35 = vpop.permute.xlu1 %1869 }
 0x30d   : > { %8742 = vst [vmem:[#allocation52_spill] sm:$0xff] %v6284_v25  ;;  %v1195_v25 = vld [vmem:[#allocation2 + $0xf9] sm:$0xff] }
 0x30e   : > { %8743 = vst [vmem:[#allocation53_spill] sm:$0xff] %v6286_v35 }
 0x311   : > { %2261 = vrot.lane.b32.xlu2 %v1193_v24, %s5168_s19 }
 0x312   : > { %2133 = vrot.lane.b32.xlu0 %v1255_v14, %s5161_s24  ;;  %1503 = vrot.lane.b32.xlu1 %v1194_v2, %s5159_s22 }
 0x313   : > { %v6291_v18 = vpop.permute.xlu2 %2001 }
 0x314   : > { %8744 = vst [vmem:[#allocation54_spill] sm:$0xff] %v6291_v18  ;;  %v6293_v63 = vpop.permute.xlu0 %2121  ;;  %v6295_v28 = vpop.permute.xlu1 %1491  ;;  %v6308_v18 = vld [vmem:[#allocation2 + $0xfa] sm:$0xff] }
 0x315   : > { %8745 = vst [vmem:[#allocation55_spill] sm:$0xff] %v6293_v63 }
 0x316   : > { %8746 = vst [vmem:[#allocation56_spill] sm:$0xff] %v6295_v28 }
 0x319   : > { %1883 = vrot.lane.b32.xlu2 %v1194_v2, %s5165_s12 }
 0x31a   : > { %1755 = vrot.lane.b32.xlu0 %v1256_v36, %s5166_s13  ;;  %2135 = vrot.lane.b32.xlu1 %v1256_v36, %s5161_s24 }
 0x31b   : > { %v6300_v17 = vpop.permute.xlu2 %2125 }
 0x31c   : > { %8747 = vst [vmem:[#allocation57_spill] sm:$0xff] %v6300_v17  ;;  %v6302_v24 = vpop.permute.xlu0 %1743  ;;  %v6304_v14 = vpop.permute.xlu1 %2123  ;;  %v6318_v17 = vld [vmem:[#allocation2 + $0xf2] sm:$0xff] }
 0x31d   : > { %8748 = vst [vmem:[#allocation58_spill] sm:$0xff] %v6302_v24 }
 0x31e   : > { %8749 = vst [vmem:[#allocation59_spill] sm:$0xff] %v6304_v14 }
 0x321   : > { %1505 = vrot.lane.b32.xlu2 %v1195_v25, %s5159_s22 }
 0x322   : > { %2263 = vrot.lane.b32.xlu0 %v1194_v2, %s5168_s19  ;;  %1633 = vrot.lane.b32.xlu1 %v6308_v18, %s5160_s23  ;;  %v1257_v2 = vld [vmem:[#allocation2 + $0xf8] sm:$0xff] }
 0x323   : > { %v6312_v28 = vpop.permute.xlu2 %1747 }
 0x324   : > { %8750 = vst [vmem:[#allocation60_spill] sm:$0xff] %v6312_v28  ;;  %v6314_v35 = vpop.permute.xlu0 %2251  ;;  %v6316_v36 = vpop.permute.xlu1 %1621 }
 0x325   : > { %8751 = vst [vmem:[#allocation61_spill] sm:$0xff] %v6314_v35 }
 0x326   : > { %8752 = vst [vmem:[#allocation62_spill] sm:$0xff] %v6316_v36 }
 0x329   : > { %2013 = vrot.lane.b32.xlu2 %v6308_v18, %s5167_s26 }
 0x32a   : > { %1631 = vrot.lane.b32.xlu0 %v6318_v17, %s5160_s23  ;;  %1757 = vrot.lane.b32.xlu1 %v1257_v2, %s5166_s13 }
 0x32b   : > { %v6325_v24 = vpop.permute.xlu2 %2255 }
 0x32c   : > { %8753 = vst [vmem:[#allocation63_spill] sm:$0xff] %v6325_v24  ;;  %v6327_v14 = vpop.permute.xlu0 %1619  ;;  %v6329_v28 = vpop.permute.xlu1 %1745 }
 0x32d   : > { %8754 = vst [vmem:[#allocation64_spill] sm:$0xff] %v6327_v14 }
 0x32e   : > { %8755 = vst [vmem:[#allocation65_spill] sm:$0xff] %v6329_v28 }
 0x331   : > { %2137 = vrot.lane.b32.xlu2 %v1257_v2, %s5161_s24 }
 0x332   : > { %1885 = vrot.lane.b32.xlu0 %v1195_v25, %s5165_s12  ;;  %2011 = vrot.lane.b32.xlu1 %v6318_v17, %s5167_s26 }
 0x333   : > { %v6335_v36 = vpop.permute.xlu2 %1623 }
 0x334   : > { %8756 = vst [vmem:[#allocation66_spill] sm:$0xff] %v6335_v36  ;;  %v6337_v35 = vpop.permute.xlu0 %1873  ;;  %v6339_v63 = vpop.permute.xlu1 %1999 }
 0x335   : > { %8757 = vst [vmem:[#allocation67_spill] sm:$0xff] %v6337_v35 }
 0x336   : > { %8758 = vst [vmem:[#allocation68_spill] sm:$0xff] %v6339_v63  ;;  %v6359_v63 = vld [vmem:[#allocation2 + $0x10a] sm:$0xff] }
 0x339   : > { %1759 = vrot.lane.b32.xlu2 %v1258_v19, %s5166_s13 }
 0x33a   : > { %1507 = vrot.lane.b32.xlu0 %v1196_v1, %s5159_s22  ;;  %2265 = vrot.lane.b32.xlu1 %v1195_v25, %s5168_s19  ;;  %v6361_v25 = vld [vmem:[#allocation2 + $0x112] sm:$0xff] }
 0x33b   : > { %v6344_v2 = vpop.permute.xlu2 %1877 }
 0x33c   : > { %8759 = vst [vmem:[#allocation69_spill] sm:$0xff] %v6344_v2  ;;  %v6346_v14 = vpop.permute.xlu0 %1495  ;;  %v6348_v28 = vpop.permute.xlu1 %2253  ;;  %v1259_v2 = vld [vmem:[#allocation2 + $0x110] sm:$0xff] }
 0x33d   : > { %8760 = vst [vmem:[#allocation70_spill] sm:$0xff] %v6346_v14  ;;  %v1197_v14 = vld [vmem:[#allocation2 + $0x111] sm:$0xff] }
 0x33e   : > { %8761 = vst [vmem:[#allocation71_spill] sm:$0xff] %v6348_v28 }
 0x341   : > { %2267 = vrot.lane.b32.xlu2 %v1196_v1, %s5168_s19 }
 0x342   : > { %2139 = vrot.lane.b32.xlu0 %v1258_v19, %s5161_s24  ;;  %1887 = vrot.lane.b32.xlu1 %v1196_v1, %s5165_s12 }
 0x343   : > { %v6353_v36 = vpop.permute.xlu2 %1499 }
 0x344   : > { %8762 = vst [vmem:[#allocation72_spill] sm:$0xff] %v6353_v36  ;;  %v6355_v35 = vpop.permute.xlu0 %2127  ;;  %v6357_v24 = vpop.permute.xlu1 %1875 }
 0x345   : > { %8763 = vst [vmem:[#allocation73_spill] sm:$0xff] %v6355_v35 }
 0x346   : > { %8764 = vst [vmem:[#allocation74_spill] sm:$0xff] %v6357_v24 }
 0x349   : > { %1635 = vrot.lane.b32.xlu2 %v6359_v63, %s5160_s23 }
 0x34a   : > { %1637 = vrot.lane.b32.xlu0 %v6361_v25, %s5160_s23  ;;  %1509 = vrot.lane.b32.xlu1 %v1197_v14, %s5159_s22 }
 0x34b   : > { %v6368_v1 = vpop.permute.xlu2 %2131 }
 0x34c   : > { %8765 = vst [vmem:[#allocation75_spill] sm:$0xff] %v6368_v1  ;;  %v6370_v19 = vpop.permute.xlu0 %1625  ;;  %v6372_v36 = vpop.permute.xlu1 %1497 }
 0x34d   : > { %8766 = vst [vmem:[#allocation76_spill] sm:$0xff] %v6370_v19 }
 0x34e   : > { %8767 = vst [vmem:[#allocation77_spill] sm:$0xff] %v6372_v36 }
 0x351   : > { %1889 = vrot.lane.b32.xlu2 %v1197_v14, %s5165_s12 }
 0x352   : > { %1761 = vrot.lane.b32.xlu0 %v1259_v2, %s5166_s13  ;;  %2017 = vrot.lane.b32.xlu1 %v6361_v25, %s5167_s26 }
 0x353   : > { %v6378_v24 = vpop.permute.xlu2 %1629 }
 0x354   : > { %8768 = vst [vmem:[#allocation78_spill] sm:$0xff] %v6378_v24  ;;  %v6380_v35 = vpop.permute.xlu0 %1749  ;;  %v6382_v28 = vpop.permute.xlu1 %2005 }
 0x355   : > { %8769 = vst [vmem:[#allocation79_spill] sm:$0xff] %v6380_v35 }
 0x356   : > { %8770 = vst [vmem:[#allocation80_spill] sm:$0xff] %v6382_v28 }
 0x359   : > { %1511 = vrot.lane.b32.xlu2 %v1198_v59, %s5159_s22 }
 0x35a   : > { %2015 = vrot.lane.b32.xlu0 %v6359_v63, %s5167_s26  ;;  %2141 = vrot.lane.b32.xlu1 %v1259_v2, %s5161_s24  ;;  %v6403_v2 = vld [vmem:[#allocation2 + $0x12a] sm:$0xff] }
 0x35b   : > { %v6388_v19 = vpop.permute.xlu2 %1753 }
 0x35c   : > { %8771 = vst [vmem:[#allocation81_spill] sm:$0xff] %v6388_v19  ;;  %v6390_v36 = vpop.permute.xlu0 %2003  ;;  %v6392_v1 = vpop.permute.xlu1 %2129 }
 0x35d   : > { %8772 = vst [vmem:[#allocation82_spill] sm:$0xff] %v6390_v36  ;;  %v1199_v36 = vld [vmem:[#allocation2 + $0x129] sm:$0xff] }
 0x35e   : > { %8773 = vst [vmem:[#allocation83_spill] sm:$0xff] %v6392_v1 }
 0x361   : > { %2143 = vrot.lane.b32.xlu2 %v1355_v43, %s5161_s24 }
 0x362   : > { %2269 = vrot.lane.b32.xlu0 %v1197_v14, %s5168_s19  ;;  %1763 = vrot.lane.b32.xlu1 %v1355_v43, %s5166_s13 }
 0x363   : > { %v6397_v24 = vpop.permute.xlu2 %2007 }
 0x364   : > { %8774 = vst [vmem:[#allocation84_spill] sm:$0xff] %v6397_v24  ;;  %v6399_v28 = vpop.permute.xlu0 %2257  ;;  %v6401_v35 = vpop.permute.xlu1 %1751  ;;  %v1261_v24 = vld [vmem:[#allocation2 + $0x128] sm:$0xff] }
 0x365   : > { %8775 = vst [vmem:[#allocation85_spill] sm:$0xff] %v6399_v28 }
 0x366   : > { %8776 = vst [vmem:[#allocation86_spill] sm:$0xff] %v6401_v35  ;;  %v6417_v35 = vld [vmem:[#allocation2 + $0x122] sm:$0xff] }
 0x369   : > { %1641 = vrot.lane.b32.xlu2 %v6403_v2, %s5160_s23 }
 0x36a   : > { %1891 = vrot.lane.b32.xlu0 %v1198_v59, %s5165_s12  ;;  %2271 = vrot.lane.b32.xlu1 %v1198_v59, %s5168_s19 }
 0x36b   : > { %v6409_v19 = vpop.permute.xlu2 %2261 }
 0x36c   : > { %8777 = vst [vmem:[#allocation87_spill] sm:$0xff] %v6409_v19  ;;  %v6411_v14 = vpop.permute.xlu0 %1879  ;;  %v6413_v43 = vpop.permute.xlu1 %2259 }
 0x36d   : > { %8778 = vst [vmem:[#allocation88_spill] sm:$0xff] %v6411_v14 }
 0x36e   : > { %8779 = vst [vmem:[#allocation89_spill] sm:$0xff] %v6413_v43 }
 0x371   : > { %1765 = vrot.lane.b32.xlu2 %v1261_v24, %s5166_s13 }
 0x372   : > { %1513 = vrot.lane.b32.xlu0 %v1199_v36, %s5159_s22  ;;  %1639 = vrot.lane.b32.xlu1 %v6417_v35, %s5160_s23 }
 0x373   : > { %v6421_v28 = vpop.permute.xlu2 %1883 }
 0x374   : > { %8780 = vst [vmem:[#allocation90_spill] sm:$0xff] %v6421_v28  ;;  %v6423_v59 = vpop.permute.xlu0 %1501  ;;  %v6425_v19 = vpop.permute.xlu1 %1627 }
 0x375   : > { %8781 = vst [vmem:[#allocation91_spill] sm:$0xff] %v6423_v59  ;;  %v1200_v59 = vld [vmem:[#allocation2 + $0x139] sm:$0xff] }
 0x376   : > { %8782 = vst [vmem:[#allocation92_spill] sm:$0xff] %v6425_v19 }
 0x379   : > { %2019 = vrot.lane.b32.xlu2 %v6417_v35, %s5167_s26 }
 0x37a   : > { %2021 = vrot.lane.b32.xlu0 %v6403_v2, %s5167_s26  ;;  %1893 = vrot.lane.b32.xlu1 %v1199_v36, %s5165_s12 }
 0x37b   : > { %v6432_v14 = vpop.permute.xlu2 %1505 }
 0x37c   : > { %8783 = vst [vmem:[#allocation93_spill] sm:$0xff] %v6432_v14  ;;  %v6434_v43 = vpop.permute.xlu0 %2009  ;;  %v6436_v1 = vpop.permute.xlu1 %1881 }
 0x37d   : > { %8784 = vst [vmem:[#allocation94_spill] sm:$0xff] %v6434_v43  ;;  %v1201_v43 = vld [vmem:[#allocation2 + $0x141] sm:$0xff] }
 0x37e   : > { %8785 = vst [vmem:[#allocation95_spill] sm:$0xff] %v6436_v1 }
 0x381   : > { %2273 = vrot.lane.b32.xlu2 %v1199_v36, %s5168_s19 }
 0x382   : > { %2145 = vrot.lane.b32.xlu0 %v1261_v24, %s5161_s24  ;;  %1515 = vrot.lane.b32.xlu1 %v1200_v59, %s5159_s22 }
 0x383   : > { %v6441_v28 = vpop.permute.xlu2 %2013 }
 0x384   : > { %8786 = vst [vmem:[#allocation96_spill] sm:$0xff] %v6441_v28  ;;  %v6443_v19 = vpop.permute.xlu0 %2133  ;;  %v6445_v57 = vpop.permute.xlu1 %1503  ;;  %v6458_v28 = vld [vmem:[#allocation2 + $0x142] sm:$0xff] }
 0x385   : > { %8787 = vst [vmem:[#allocation97_spill] sm:$0xff] %v6443_v19 }
 0x386   : > { %8788 = vst [vmem:[#allocation98_spill] sm:$0xff] %v6445_v57 }
 0x389   : > { %1895 = vrot.lane.b32.xlu2 %v1200_v59, %s5165_s12 }
 0x38a   : > { %1767 = vrot.lane.b32.xlu0 %v1262_v49, %s5166_s13  ;;  %2147 = vrot.lane.b32.xlu1 %v1262_v49, %s5161_s24 }
 0x38b   : > { %v6450_v14 = vpop.permute.xlu2 %2137 }
 0x38c   : > { %8789 = vst [vmem:[#allocation99_spill] sm:$0xff] %v6450_v14  ;;  %v6452_v36 = vpop.permute.xlu0 %1755  ;;  %v6454_v24 = vpop.permute.xlu1 %2135  ;;  %v6468_v14 = vld [vmem:[#allocation2 + $0x13a] sm:$0xff] }
 0x38d   : > { %8790 = vst [vmem:[#allocation100_spill] sm:$0xff] %v6452_v36 }
 0x38e   : > { %8791 = vst [vmem:[#allocation101_spill] sm:$0xff] %v6454_v24 }
 0x391   : > { %1517 = vrot.lane.b32.xlu2 %v1201_v43, %s5159_s22 }
 0x392   : > { %2275 = vrot.lane.b32.xlu0 %v1200_v59, %s5168_s19  ;;  %1645 = vrot.lane.b32.xlu1 %v6458_v28, %s5160_s23  ;;  %v1263_v59 = vld [vmem:[#allocation2 + $0x140] sm:$0xff] }
 0x393   : > { %v6462_v57 = vpop.permute.xlu2 %1759 }
 0x394   : > { %8792 = vst [vmem:[#allocation102_spill] sm:$0xff] %v6462_v57  ;;  %v6464_v1 = vpop.permute.xlu0 %2263  ;;  %v6466_v49 = vpop.permute.xlu1 %1633 }
 0x395   : > { %8793 = vst [vmem:[#allocation103_spill] sm:$0xff] %v6464_v1 }
 0x396   : > { %8794 = vst [vmem:[#allocation104_spill] sm:$0xff] %v6466_v49 }
 0x399   : > { %2025 = vrot.lane.b32.xlu2 %v6458_v28, %s5167_s26 }
 0x39a   : > { %1643 = vrot.lane.b32.xlu0 %v6468_v14, %s5160_s23  ;;  %1769 = vrot.lane.b32.xlu1 %v1263_v59, %s5166_s13 }
 0x39b   : > { %v6475_v36 = vpop.permute.xlu2 %2267 }
 0x39c   : > { %8795 = vst [vmem:[#allocation105_spill] sm:$0xff] %v6475_v36  ;;  %v6477_v24 = vpop.permute.xlu0 %1631  ;;  %v6479_v57 = vpop.permute.xlu1 %1757 }
 0x39d   : > { %8796 = vst [vmem:[#allocation106_spill] sm:$0xff] %v6477_v24 }
 0x39e   : > { %8797 = vst [vmem:[#allocation107_spill] sm:$0xff] %v6479_v57 }
 0x3a1   : > { %2149 = vrot.lane.b32.xlu2 %v1263_v59, %s5161_s24 }
 0x3a2   : > { %1897 = vrot.lane.b32.xlu0 %v1201_v43, %s5165_s12  ;;  %2023 = vrot.lane.b32.xlu1 %v6468_v14, %s5167_s26 }
 0x3a3   : > { %v6485_v49 = vpop.permute.xlu2 %1635 }
 0x3a4   : > { %8798 = vst [vmem:[#allocation108_spill] sm:$0xff] %v6485_v49  ;;  %v6487_v1 = vpop.permute.xlu0 %1885  ;;  %v6489_v19 = vpop.permute.xlu1 %2011 }
 0x3a5   : > { %8799 = vst [vmem:[#allocation109_spill] sm:$0xff] %v6487_v1 }
 0x3a6   : > { %8800 = vst [vmem:[#allocation110_spill] sm:$0xff] %v6489_v19  ;;  %v6509_v19 = vld [vmem:[#allocation2 + $0x152] sm:$0xff] }
 0x3a9   : > { %1771 = vrot.lane.b32.xlu2 %v1264_v8, %s5166_s13 }
 0x3aa   : > { %1519 = vrot.lane.b32.xlu0 %v1202_v7, %s5159_s22  ;;  %2277 = vrot.lane.b32.xlu1 %v1201_v43, %s5168_s19  ;;  %v6511_v43 = vld [vmem:[#allocation2 + $0x15a] sm:$0xff] }
 0x3ab   : > { %v6494_v59 = vpop.permute.xlu2 %1889 }
 0x3ac   : > { %8801 = vst [vmem:[#allocation111_spill] sm:$0xff] %v6494_v59  ;;  %v6496_v24 = vpop.permute.xlu0 %1507  ;;  %v6498_v57 = vpop.permute.xlu1 %2265  ;;  %v1265_v59 = vld [vmem:[#allocation2 + $0x158] sm:$0xff] }
 0x3ad   : > { %8802 = vst [vmem:[#allocation112_spill] sm:$0xff] %v6496_v24  ;;  %v1203_v24 = vld [vmem:[#allocation2 + $0x159] sm:$0xff] }
 0x3ae   : > { %8803 = vst [vmem:[#allocation113_spill] sm:$0xff] %v6498_v57 }
 0x3b1   : > { %2279 = vrot.lane.b32.xlu2 %v1202_v7, %s5168_s19 }
 0x3b2   : > { %2151 = vrot.lane.b32.xlu0 %v1264_v8, %s5161_s24  ;;  %1899 = vrot.lane.b32.xlu1 %v1202_v7, %s5165_s12 }
 0x3b3   : > { %v6503_v49 = vpop.permute.xlu2 %1511 }
 0x3b4   : > { %8804 = vst [vmem:[#allocation114_spill] sm:$0xff] %v6503_v49  ;;  %v6505_v1 = vpop.permute.xlu0 %2139  ;;  %v6507_v36 = vpop.permute.xlu1 %1887 }
 0x3b5   : > { %8805 = vst [vmem:[#allocation115_spill] sm:$0xff] %v6505_v1 }
 0x3b6   : > { %8806 = vst [vmem:[#allocation116_spill] sm:$0xff] %v6507_v36 }
 0x3b9   : > { %1647 = vrot.lane.b32.xlu2 %v6509_v19, %s5160_s23 }
 0x3ba   : > { %1649 = vrot.lane.b32.xlu0 %v6511_v43, %s5160_s23  ;;  %1521 = vrot.lane.b32.xlu1 %v1203_v24, %s5159_s22 }
 0x3bb   : > { %v6518_v8 = vpop.permute.xlu2 %2143 }
 0x3bc   : > { %8807 = vst [vmem:[#allocation117_spill] sm:$0xff] %v6518_v8  ;;  %v6520_v7 = vpop.permute.xlu0 %1637  ;;  %v6522_v49 = vpop.permute.xlu1 %1509 }
 0x3bd   : > { %8808 = vst [vmem:[#allocation118_spill] sm:$0xff] %v6520_v7 }
 0x3be   : > { %8809 = vst [vmem:[#allocation119_spill] sm:$0xff] %v6522_v49 }
 0x3c1   : > { %1901 = vrot.lane.b32.xlu2 %v1203_v24, %s5165_s12 }
 0x3c2   : > { %1773 = vrot.lane.b32.xlu0 %v1265_v59, %s5166_s13  ;;  %2029 = vrot.lane.b32.xlu1 %v6511_v43, %s5167_s26 }
 0x3c3   : > { %v6528_v36 = vpop.permute.xlu2 %1641 }
 0x3c4   : > { %8810 = vst [vmem:[#allocation120_spill] sm:$0xff] %v6528_v36  ;;  %v6530_v1 = vpop.permute.xlu0 %1761  ;;  %v6532_v57 = vpop.permute.xlu1 %2017 }
 0x3c5   : > { %8811 = vst [vmem:[#allocation121_spill] sm:$0xff] %v6530_v1 }
 0x3c6   : > { %8812 = vst [vmem:[#allocation122_spill] sm:$0xff] %v6532_v57 }
 0x3c9   : > { %1523 = vrot.lane.b32.xlu2 %v1204_v22, %s5159_s22 }
 0x3ca   : > { %2027 = vrot.lane.b32.xlu0 %v6509_v19, %s5167_s26  ;;  %2153 = vrot.lane.b32.xlu1 %v1265_v59, %s5161_s24  ;;  %v6553_v59 = vld [vmem:[#allocation2 + $0x172] sm:$0xff] }
 0x3cb   : > { %v6538_v7 = vpop.permute.xlu2 %1765 }
 0x3cc   : > { %8813 = vst [vmem:[#allocation123_spill] sm:$0xff] %v6538_v7  ;;  %v6540_v49 = vpop.permute.xlu0 %2015  ;;  %v6542_v8 = vpop.permute.xlu1 %2141 }
 0x3cd   : > { %8814 = vst [vmem:[#allocation124_spill] sm:$0xff] %v6540_v49  ;;  %v1205_v49 = vld [vmem:[#allocation2 + $0x171] sm:$0xff] }
 0x3ce   : > { %8815 = vst [vmem:[#allocation125_spill] sm:$0xff] %v6542_v8 }
 0x3d1   : > { %2155 = vrot.lane.b32.xlu2 %v1361_v32, %s5161_s24 }
 0x3d2   : > { %2281 = vrot.lane.b32.xlu0 %v1203_v24, %s5168_s19  ;;  %1775 = vrot.lane.b32.xlu1 %v1361_v32, %s5166_s13 }
 0x3d3   : > { %v6547_v36 = vpop.permute.xlu2 %2019 }
 0x3d4   : > { %8816 = vst [vmem:[#allocation126_spill] sm:$0xff] %v6547_v36  ;;  %v6549_v57 = vpop.permute.xlu0 %2269  ;;  %v6551_v1 = vpop.permute.xlu1 %1763  ;;  %v1267_v36 = vld [vmem:[#allocation2 + $0x170] sm:$0xff] }
 0x3d5   : > { %8817 = vst [vmem:[#allocation127_spill] sm:$0xff] %v6549_v57 }
 0x3d6   : > { %8818 = vst [vmem:[#allocation128_spill] sm:$0xff] %v6551_v1  ;;  %v6567_v1 = vld [vmem:[#allocation2 + $0x16a] sm:$0xff] }
 0x3d9   : > { %1653 = vrot.lane.b32.xlu2 %v6553_v59, %s5160_s23 }
 0x3da   : > { %1903 = vrot.lane.b32.xlu0 %v1204_v22, %s5165_s12  ;;  %2283 = vrot.lane.b32.xlu1 %v1204_v22, %s5168_s19 }
 0x3db   : > { %v6559_v7 = vpop.permute.xlu2 %2273 }
 0x3dc   : > { %8819 = vst [vmem:[#allocation129_spill] sm:$0xff] %v6559_v7  ;;  %v6561_v24 = vpop.permute.xlu0 %1891  ;;  %v6563_v32 = vpop.permute.xlu1 %2271 }
 0x3dd   : > { %8820 = vst [vmem:[#allocation130_spill] sm:$0xff] %v6561_v24 }
 0x3de   : > { %8821 = vst [vmem:[#allocation131_spill] sm:$0xff] %v6563_v32 }
 0x3e1   : > { %1777 = vrot.lane.b32.xlu2 %v1267_v36, %s5166_s13 }
 0x3e2   : > { %1525 = vrot.lane.b32.xlu0 %v1205_v49, %s5159_s22  ;;  %1651 = vrot.lane.b32.xlu1 %v6567_v1, %s5160_s23 }
 0x3e3   : > { %v6571_v57 = vpop.permute.xlu2 %1895 }
 0x3e4   : > { %8822 = vst [vmem:[#allocation132_spill] sm:$0xff] %v6571_v57  ;;  %v6573_v22 = vpop.permute.xlu0 %1513  ;;  %v6575_v7 = vpop.permute.xlu1 %1639 }
 0x3e5   : > { %8823 = vst [vmem:[#allocation133_spill] sm:$0xff] %v6573_v22  ;;  %v1363_v22 = vld [vmem:[#allocation2 + $0x180] sm:$0xff] }
 0x3e6   : > { %8824 = vst [vmem:[#allocation134_spill] sm:$0xff] %v6575_v7 }
 0x3e9   : > { %2031 = vrot.lane.b32.xlu2 %v6567_v1, %s5167_s26 }
 0x3ea   : > { %2033 = vrot.lane.b32.xlu0 %v6553_v59, %s5167_s26  ;;  %1905 = vrot.lane.b32.xlu1 %v1205_v49, %s5165_s12 }
 0x3eb   : > { %v6582_v24 = vpop.permute.xlu2 %1517 }
 0x3ec   : > { %8825 = vst [vmem:[#allocation135_spill] sm:$0xff] %v6582_v24  ;;  %v6584_v32 = vpop.permute.xlu0 %2021  ;;  %v6586_v8 = vpop.permute.xlu1 %1893  ;;  %v1269_v24 = vld [vmem:[#allocation2 + $0x188] sm:$0xff] }
 0x3ed   : > { %8826 = vst [vmem:[#allocation136_spill] sm:$0xff] %v6584_v32 }
 0x3ee   : > { %8827 = vst [vmem:[#allocation137_spill] sm:$0xff] %v6586_v8  ;;  %v6606_v8 = vld [vmem:[#allocation2 + $0x18a] sm:$0xff] }
 0x3f1   : > { %2285 = vrot.lane.b32.xlu2 %v1205_v49, %s5168_s19 }
 0x3f2   : > { %2157 = vrot.lane.b32.xlu0 %v1267_v36, %s5161_s24  ;;  %2159 = vrot.lane.b32.xlu1 %v1363_v22, %s5161_s24 }
 0x3f3   : > { %v6591_v57 = vpop.permute.xlu2 %2025 }
 0x3f4   : > { %8828 = vst [vmem:[#allocation138_spill] sm:$0xff] %v6591_v57  ;;  %v6593_v7 = vpop.permute.xlu0 %2145  ;;  %v6595_v62 = vpop.permute.xlu1 %1515  ;;  %v1301_v57 = vld [vmem:[#allocation2 + $0x189] sm:$0xff] }
 0x3f5   : > { %8829 = vst [vmem:[#allocation139_spill] sm:$0xff] %v6593_v7 }
 0x3f6   : > { %8830 = vst [vmem:[#allocation140_spill] sm:$0xff] %v6595_v62  ;;  %v6611_v62 = vld [vmem:[#allocation2 + $0x182] sm:$0xff] }
 0x3f9   : > { %1907 = vrot.lane.b32.xlu2 %v1300_v3, %s5165_s12 }
 0x3fa   : > { %1779 = vrot.lane.b32.xlu0 %v1363_v22, %s5166_s13  ;;  %1781 = vrot.lane.b32.xlu1 %v1269_v24, %s5166_s13 }
 0x3fb   : > { %v6600_v49 = vpop.permute.xlu2 %2149 }
 0x3fc   : > { %8831 = vst [vmem:[#allocation141_spill] sm:$0xff] %v6600_v49  ;;  %v6602_v36 = vpop.permute.xlu0 %1767  ;;  %v6604_v32 = vpop.permute.xlu1 %2147 }
 0x3fd   : > { %8832 = vst [vmem:[#allocation142_spill] sm:$0xff] %v6602_v36 }
 0x3fe   : > { %8833 = vst [vmem:[#allocation143_spill] sm:$0xff] %v6604_v32 }
 0x401   : > { %2037 = vrot.lane.b32.xlu2 %v6606_v8, %s5167_s26 }
 0x402   : > { %1909 = vrot.lane.b32.xlu0 %v1301_v57, %s5165_s12  ;;  %2035 = vrot.lane.b32.xlu1 %v6611_v62, %s5167_s26 }
 0x403   : > { %v6615_v22 = vpop.permute.xlu2 %1771 }
 0x404   : > { %8834 = vst [vmem:[#allocation144_spill] sm:$0xff] %v6615_v22  ;;  %v6617_v49 = vpop.permute.xlu0 %2275  ;;  %v6619_v36 = vpop.permute.xlu1 %1645  ;;  %v1399_v22 = vld [vmem:[#allocation2 + $0x32] sm:$0xff] }
 0x405   : > { %8835 = vst [vmem:[#allocation145_spill] sm:$0xff] %v6619_v36  ;;  %v1400_v36 = vld [vmem:[#allocation2 + $0x3a] sm:$0xff] }
 0x409   : > { %2161 = vrot.lane.b32.xlu2 %v1269_v24, %s5161_s24 }
 0x40a   : > { %2287 = vrot.lane.b32.xlu0 %v1300_v3, %s5168_s19  ;;  %2289 = vrot.lane.b32.xlu1 %v1301_v57, %s5168_s19 }
 0x40b   : > { %v6624_v32 = vpop.permute.xlu2 %2279 }
 0x40c   : > { %8836 = vst [vmem:[#allocation146_spill] sm:$0xff] %v6624_v32  ;;  %v6626_v7 = vpop.permute.xlu0 %1643  ;;  %v6628_v45 = vpop.permute.xlu1 %1769  ;;  %v1404_v32 = vld [vmem:[#allocation2 + $0x6a] sm:$0xff] }
 0x40d   : > { %8837 = vst [vmem:[#allocation147_spill] sm:$0xff] %v6626_v7  ;;  %v1401_v7 = vld [vmem:[#allocation2 + $0x4a] sm:$0xff] }
 0x40e   : > { %8838 = vst [vmem:[#allocation148_spill] sm:$0xff] %v6628_v45  ;;  %v1402_v45 = vld [vmem:[#allocation2 + $0x52] sm:$0xff] }
 0x411   : > { %2291 = vrot.lane.b32.xlu2 %v1397_v33, %s5168_s19 }
 0x412   : > { %2293 = vrot.lane.b32.xlu0 %v1398_v5, %s5168_s19  ;;  %2359 = vrot.lane.b32.xlu1 %v1399_v22, %s5169_s27 }
 0x413   : > { %v6633_v24 = vpop.permute.xlu2 %1647 }
 0x414   : > { %8839 = vst [vmem:[#allocation149_spill] sm:$0xff] %v6633_v24  ;;  %v6635_v3 = vpop.permute.xlu0 %1897  ;;  %v6637_v57 = vpop.permute.xlu1 %2023  ;;  %v1403_v24 = vld [vmem:[#allocation2 + $0x62] sm:$0xff] }
 0x415   : > { %8840 = vst [vmem:[#allocation150_spill] sm:$0xff] %v6635_v3  ;;  %v1405_v3 = vld [vmem:[#allocation2 + $0x7a] sm:$0xff] }
 0x416   : > { %8841 = vst [vmem:[#allocation151_spill] sm:$0xff] %v6637_v57  ;;  %v1407_v57 = vld [vmem:[#allocation2 + $0x92] sm:$0xff] }
 0x419   : > { %2361 = vrot.lane.b32.xlu2 %v1400_v36, %s5169_s27 }
 0x41a   : > { %2363 = vrot.lane.b32.xlu0 %v1401_v7, %s5169_s27  ;;  %2365 = vrot.lane.b32.xlu1 %v1402_v45, %s5169_s27 }
 0x41b   : > { %v6644_v33 = vpop.permute.xlu2 %1901 }
 0x41c   : > { %v6642_v5 = vpop.permute.xlu0 %1519  ;;  %8843 = vst [vmem:[#allocation153_spill] sm:$0xff] %v6644_v33  ;;  %v6646_v22 = vpop.permute.xlu1 %2277  ;;  %v1408_v33 = vld [vmem:[#allocation2 + $0x9a] sm:$0xff] }
 0x41d   : > { %8842 = vst [vmem:[#allocation152_spill] sm:$0xff] %v6642_v5  ;;  %v1406_v5 = vld [vmem:[#allocation2 + $0x82] sm:$0xff] }
 0x41e   : > { %8844 = vst [vmem:[#allocation154_spill] sm:$0xff] %v6646_v22  ;;  %v1410_v22 = vld [vmem:[#allocation2 + $0xb2] sm:$0xff] }
 0x421   : > { %2367 = vrot.lane.b32.xlu2 %v1403_v24, %s5169_s27 }
 0x422   : > { %2369 = vrot.lane.b32.xlu0 %v1404_v32, %s5169_s27  ;;  %2371 = vrot.lane.b32.xlu1 %v1405_v3, %s5169_s27 }
 0x423   : > { %v6655_v45 = vpop.permute.xlu2 %1523 }
 0x424   : > { %v6651_v36 = vpop.permute.xlu0 %2151  ;;  %v6653_v7 = vpop.permute.xlu1 %1899  ;;  %8846 = vst [vmem:[#allocation156_spill] sm:$0xff] %v6655_v45  ;;  %v1411_v45 = vld [vmem:[#allocation2 + $0xc2] sm:$0xff] }
 0x425   : > { %8845 = vst [vmem:[#allocation155_spill] sm:$0xff] %v6651_v36  ;;  %v1409_v36 = vld [vmem:[#allocation2 + $0xaa] sm:$0xff] }
 0x429   : > { %2373 = vrot.lane.b32.xlu2 %v1406_v5, %s5169_s27 }
 0x42a   : > { %2375 = vrot.lane.b32.xlu0 %v1407_v57, %s5169_s27  ;;  %2377 = vrot.lane.b32.xlu1 %v1408_v33, %s5169_s27  ;;  %v1412_v33 = vld [vmem:[#allocation2 + $0xca] sm:$0xff] }
 0x42b   : > { %v6664_v3 = vpop.permute.xlu2 %2155 }
 0x42c   : > { %v6660_v24 = vpop.permute.xlu0 %1649  ;;  %v6662_v32 = vpop.permute.xlu1 %1521 }
 0x42d   : > { %8847 = vst [vmem:[#allocation157_spill] sm:$0xff] %v6660_v24 }
 0x431   : > { %2379 = vrot.lane.b32.xlu2 %v1409_v36, %s5169_s27 }
 0x432   : > { %2381 = vrot.lane.b32.xlu0 %v1410_v22, %s5169_s27  ;;  %2383 = vrot.lane.b32.xlu1 %v1411_v45, %s5169_s27 }
 0x433   : > { %v6676_v24 = vpop.permute.xlu2 %1653 }
 0x434   : > { %v6669_v5 = vpop.permute.xlu0 %1773  ;;  %v6671_v57 = vpop.permute.xlu1 %2029  ;;  %8848 = vst [vmem:[#allocation158_spill] sm:$0xff] %v6676_v24  ;;  %v2724_v24 = vld [vmem:[%s8680_s5 + $0x30] sm:$0xff] }
 0x439   : > { %2385 = vrot.lane.b32.xlu2 %v1412_v33, %s5169_s27 }
 0x43a   : > { %2387 = vrot.lane.b32.xlu0 %v6267_v30, %s5169_s27  ;;  %2389 = vrot.lane.b32.xlu1 %v6253_v20, %s5169_s27  ;;  %v2726_v20 = vld [vmem:[%s8680_s5 + $0x40] sm:$0xff] }
 0x43b   : > { %v6692_v30 = vpop.permute.xlu2 %1777  ;;  %2835 = vmatpush.msrb.mxu3 %v2726_v20  ;;  %v2723_v20 = vld [vmem:[%s8680_s5 + $0x28] sm:$0xff] }
 0x43c   : > { %v6680_v36 = vpop.permute.xlu0 %2027  ;;  %v6682_v22 = vpop.permute.xlu1 %2153 }
 0x441   : > { %2391 = vrot.lane.b32.xlu2 %v6318_v17, %s5169_s27  ;;  %v2725_v17 = vld [vmem:[%s8680_s5 + $0x38] sm:$0xff] }
 0x442   : > { %2393 = vrot.lane.b32.xlu0 %v6308_v18, %s5169_s27  ;;  %2395 = vrot.lane.b32.xlu1 %v6359_v63, %s5169_s27 }
 0x443   : > { %2836 = vmatpush.msrb.mxu3 %v2725_v17  ;;  %v6718_v17 = vpop.permute.xlu2 %2031 }
 0x444   : > { %v6690_v45 = vpop.permute.xlu0 %2281  ;;  %v6694_v33 = vpop.permute.xlu1 %1775 }
 0x445   : > { %2837 = vmatpush.msrb.mxu3 %v2724_v24  ;;  %v2721_v24 = vld [vmem:[%s8680_s5 + $0x18] sm:$0xff] }
 0x447   : > { %2838 = vmatpush.msrb.mxu3 %v2723_v20 }
 0x449   : > { %2397 = vrot.lane.b32.xlu2 %v6361_v25, %s5169_s27 }
 0x44a   : > { %2399 = vrot.lane.b32.xlu0 %v6417_v35, %s5169_s27  ;;  %2401 = vrot.lane.b32.xlu1 %v6403_v2, %s5169_s27  ;;  %v2722_v2 = vld [vmem:[%s8680_s5 + $0x20] sm:$0xff] }
 0x44b   : > { %2839 = vmatpush.msrb.mxu3 %v2722_v2  ;;  %v1429_v2 = vld [vmem:[#allocation2 + $0x19a] sm:$0xff] }
 0x44c   : > { %v6708_v63 = vpop.permute.xlu0 %1903  ;;  %v6710_v18 = vpop.permute.xlu1 %2283 }
 0x44d   : > { %2840 = vmatpush.msrb.mxu3 %v2721_v24 }
 0x451   : > { %2403 = vrot.lane.b32.xlu2 %v6468_v14, %s5169_s27  ;;  %v6736_v14 = vpop.permute.xlu2 %2285 }
 0x452   : > { %2405 = vrot.lane.b32.xlu0 %v6458_v28, %s5169_s27  ;;  %2407 = vrot.lane.b32.xlu1 %v6509_v19, %s5169_s27  ;;  %v2720_v28 = vld [vmem:[%s8680_s5 + $0x10] sm:$0xff] }
 0x453   : > { %2841 = vmatpush.msrb.mxu3 %v2720_v28 }
 0x454   : > { %v6726_v35 = vpop.permute.xlu0 %1525  ;;  %v6728_v25 = vpop.permute.xlu1 %1651 }
 0x455   : > { %8849 = vst [vmem:[#allocation159_spill] sm:$0xff] %v6726_v35  ;;  %v1430_v35 = vld [vmem:[#allocation2 + $0x1a2] sm:$0xff] }
 0x456   : > { %8850 = vst [vmem:[#allocation160_spill] sm:$0xff] %v6728_v25 }
 0x459   : > { %2409 = vrot.lane.b32.xlu2 %v6511_v43, %s5169_s27  ;;  %v2719_v43 = vld [vmem:[%s8680_s5 + $0x8] sm:$0xff] }
 0x45a   : > { %2411 = vrot.lane.b32.xlu0 %v6567_v1, %s5169_s27  ;;  %2413 = vrot.lane.b32.xlu1 %v6553_v59, %s5169_s27  ;;  %v2718_v1 = vld [vmem:[%s8680_s5] sm:$0xff]  ;;  %v6761_v59 = vpop.permute.xlu2 %1907 }
 0x45b   : > { %2842 = vmatpush.msrb.mxu3 %v2719_v43  ;;  %8852 = vst [vmem:[#allocation162_spill] sm:$0xff] %v6761_v59  ;;  %v1142_v59 = vld [vmem:[#allocation2] sm:$0xff] }
 0x45c   : > { %v6747_v19 = vpop.permute.xlu0 %2033  ;;  %v6749_v20 = vpop.permute.xlu1 %1905 }
 0x45d   : > { %8851 = vst [vmem:[#allocation161_spill] sm:$0xff] %v6747_v19  ;;  %2843 = vmatpush.msrb.mxu3 %v2718_v1 }
 0x461   : > { %2415 = vrot.lane.b32.xlu2 %v6611_v62, %s5169_s27 }
 0x462   : > { %2417 = vrot.lane.b32.xlu0 %v6606_v8, %s5169_s27  ;;  %2419 = vrot.lane.b32.xlu1 %v1429_v2, %s5169_s27  ;;  %v6771_v1 = vpop.permute.xlu2 %2037  ;;  %v2455_v2 = vsel %vm353_vm2, %v1142_v59, %v5635_v23 }
 0x463   : > { %8853 = vst [vmem:[#allocation163_spill] sm:$0xff] %v6771_v1 }
 0x464   : > { %v6764_v24 = vpop.permute.xlu0 %2157  ;;  %v6766_v28 = vpop.permute.xlu1 %2159 }
 0x469   : > { %2421 = vrot.lane.b32.xlu2 %v1430_v35, %s5169_s27  ;;  %v2488_v35 = vsel %vm2487_vm5, %v2455_v2, %v5651_v31 }
 0x46a   : > { %v6779_v25 = vpop.permute.xlu2 %2161  ;;  %v2521_v1 = vsel %vm2520_vm6, %v2488_v35, %v5988_v55 }
 0x46b   : > { %8857 = vst [vmem:[#allocation167_spill] sm:$0xff] %v6779_v25  ;;  %v2554_v25 = vsel %vm2553_vm7, %v2521_v1, %v5950_v44 }
 0x46c   : > { %v6769_v43 = vpop.permute.xlu0 %1779  ;;  %v6773_v19 = vpop.permute.xlu1 %1781  ;;  %v2587_v31 = vsel %vm2586_vm9, %v2554_v25, %v6029_v40 }
 0x46d   : > { %8854 = vst [vmem:[#allocation164_spill] sm:$0xff] %v6773_v19  ;;  %v2620_v55 = vsel %vm2619_vm8, %v2587_v31, %v6040_v50 }
 0x46e   : > { %v2653_v1 = vsel %vm2652_vm10, %v2620_v55, %v5999_v48 }
 0x472   : > { %v6797_v59 = vpop.permute.xlu2 %2291 }
 0x474   : > { %v6775_v62 = vpop.permute.xlu0 %1909  ;;  %v6777_v8 = vpop.permute.xlu1 %2035 }
 0x475   : > { %8855 = vst [vmem:[#allocation165_spill] sm:$0xff] %v6775_v62  ;;  %v1143_v62 = vld [vmem:[#allocation2 + $0x8] sm:$0xff] }
 0x476   : > { %8856 = vst [vmem:[#allocation166_spill] sm:$0xff] %v6777_v8  ;;  %v2456_v23 = vsel %vm353_vm2, %v1143_v62, %v5655_v34  ;;  %v5102_v62 = vld [vmem:[#allocation2 + $0x18] sm:$0xff] }
 0x477   : > { %v2489_v2 = vsel %vm2487_vm5, %v2456_v23, %v5641_v26  ;;  %v2457_v26 = vsel %vm353_vm2, %v5102_v62, %v5990_v4  ;;  %v5103_v4 = vld [vmem:[#allocation2 + $0x20] sm:$0xff] }
 0x478   : > { %v2522_v44 = vsel %vm2520_vm6, %v2489_v2, %v6016_v6  ;;  %v2490_v48 = vsel %vm2487_vm5, %v2457_v26, %v6001_v60  ;;  %v2458_v60 = vsel %vm353_vm2, %v5103_v4, %v5965_v42 }
 0x479   : > { %v2555_v50 = vsel %vm2553_vm7, %v2522_v44, %v6014_v61  ;;  %v2523_v55 = vsel %vm2520_vm6, %v2490_v48, %v5986_v41  ;;  %v5106_v48 = vld [vmem:[#allocation2 + $0x48] sm:$0xff] }
 0x47a   : > { %v2588_v6 = vsel %vm2586_vm9, %v2555_v50, %v5977_v39  ;;  %v2362_v35 = vpop.permute.xlu2 %2361  ;;  %v2556_v39 = vsel %vm2553_vm7, %v2523_v55, %v6042_v52  ;;  %v8862_v55 = vld [vmem:[#allocation11_spill] sm:$0xff] }
 0x47b   : > { %v2621_v23 = vsel %vm2619_vm8, %v2588_v6, %v6081_v12  ;;  %v2589_v12 = vsel %vm2586_vm9, %v2556_v39, %v6079_v38  ;;  %v5104_v38 = vld [vmem:[#allocation2 + $0x30] sm:$0xff]  ;;  %v8863_v39 = vld [vmem:[#allocation17_spill] sm:$0xff] }
 0x47c   : > { %v6787_v19 = vpop.permute.xlu1 %2289  ;;  %v6789_v8 = vpop.permute.xlu0 %2287  ;;  %v2654_v31 = vsel %vm2652_vm10, %v2621_v23, %v6092_v56  ;;  %v2491_v56 = vsel %vm2487_vm5, %v2458_v60, %v6003_v53  ;;  %v2622_v41 = vsel %vm2619_vm8, %v2589_v12, %v6051_v9  ;;  %v2459_v9 = vsel %vm353_vm2, %v5104_v38, %v6027_v0  ;;  %v8860_v23 = vld [vmem:[#allocation6_spill] sm:$0xff] }
 0x47d   : > { %v2687_v61 = vsel %vm2685_vm12, %v2654_v31, %v2362_v35  ;;  %v2524_v2 = vsel %vm2520_vm6, %v2491_v56, %v6066_v47  ;;  %v2655_v52 = vsel %vm2652_vm10, %v2622_v41, %v6107_v11  ;;  %v8861_v31 = vld [vmem:[#allocation13_spill] sm:$0xff]  ;;  %v8864_v60 = vld [vmem:[#allocation18_spill] sm:$0xff] }
 0x47e   : > { %v8865_v56 = vld [vmem:[#allocation29_spill] sm:$0xff]  ;;  %v5107_v38 = vld [vmem:[#allocation2 + $0x50] sm:$0xff] }
 0x47f   : > { %v8866_v41 = vld [vmem:[#allocation9_spill] sm:$0xff] }
 0x482   : > { %v2368_v62 = vpop.permute.xlu2 %2367 }
 0x484   : > { %v2360_v34 = vpop.permute.xlu1 %2359  ;;  %v6811_v25 = vpop.permute.xlu0 %2293 }
 0x485   : > { %v2686_v40 = vsel %vm2685_vm12, %v2653_v1, %v2360_v34  ;;  %v2557_v1 = vsel %vm2553_vm7, %v2524_v2, %v6025_v37  ;;  %v2492_v37 = vsel %vm2487_vm5, %v2459_v9, %v6012_v29  ;;  %v8869_v9 = vld [vmem:[#allocation10_spill] sm:$0xff] }
 0x486   : > { %4948 = vmatmul.msk.f32.vlgmr.msrb.gmra.mxu3 %vm2731_vm11, %v2686_v40  ;;  %v2590_v53 = vsel %vm2586_vm9, %v2557_v1, %v6068_v13  ;;  %v2525_v50 = vsel %vm2520_vm6, %v2492_v37, %v6094_v16  ;;  %v8867_v1 = vld [vmem:[#allocation26_spill] sm:$0xff]  ;;  %v8870_v37 = vld [vmem:[#allocation21_spill] sm:$0xff] }
 0x487   : > { %v2623_v47 = vsel %vm2619_vm8, %v2590_v53, %v6144_v21  ;;  %v2558_v13 = vsel %vm2553_vm7, %v2525_v50, %v6105_v46  ;;  %v5105_v21 = vld [vmem:[#allocation2 + $0x38] sm:$0xff]  ;;  %v8858_v46 = vld [vmem:[#allocation8_spill] sm:$0xff] }
 0x488   : > { %v2656_v11 = vsel %vm2652_vm10, %v2623_v47, %v6103_v15  ;;  %v2460_v0 = vsel %vm353_vm2, %v5105_v21, %v6055_v51  ;;  %v2591_v15 = vsel %vm2586_vm9, %v2558_v13, %v6090_v54  ;;  %v8859_v51 = vld [vmem:[#allocation14_spill] sm:$0xff]  ;;  %v8868_v53 = vld [vmem:[#allocation31_spill] sm:$0xff] }
 0x489   : > { %v2624_v29 = vsel %vm2619_vm8, %v2591_v15, %v6159_v10  ;;  %v2493_v16 = vsel %vm2487_vm5, %v2460_v0, %v6053_v58  ;;  %v2461_v10 = vsel %vm353_vm2, %v5106_v48, %v8860_v23  ;;  %v8871_v50 = vld [vmem:[#allocation7_spill] sm:$0xff]  ;;  %v8877_v23 = vld [vmem:[#allocation41_spill] sm:$0xff] }
 0x48a   : > { %v2657_v26 = vsel %vm2652_vm10, %v2624_v29, %v6170_v27  ;;  %v2526_v35 = vsel %vm2520_vm6, %v2493_v16, %v8858_v46  ;;  %v2494_v58 = vsel %vm2487_vm5, %v2461_v10, %v8862_v55  ;;  %v8872_v0 = vld [vmem:[#allocation23_spill] sm:$0xff]  ;;  %v8874_v16 = vld [vmem:[#allocation16_spill] sm:$0xff] }
 0x48b   : > { %v2690_v6 = vsel %vm2685_vm12, %v2657_v26, %v2368_v62  ;;  %v2559_v54 = vsel %vm2553_vm7, %v2526_v35, %v8859_v51  ;;  %v2527_v12 = vsel %vm2520_vm6, %v2494_v58, %v8864_v60  ;;  %v8873_v62 = vld [vmem:[#allocation25_spill] sm:$0xff]  ;;  %v5108_v26 = vld [vmem:[#allocation2 + $0x60] sm:$0xff]  ;;  %v8875_v46 = vld [vmem:[#allocation15_spill] sm:$0xff]  ;;  %v2374_v51 = vpop.permute.xlu2 %2373 }
 0x48c   : > { %v2364_v44 = vpop.permute.xlu0 %2363  ;;  %v2366_v34 = vpop.permute.xlu1 %2365  ;;  %v2592_v27 = vsel %vm2586_vm9, %v2559_v54, %v8861_v31  ;;  %v8876_v54 = vld [vmem:[#allocation22_spill] sm:$0xff]  ;;  %v8878_v31 = vld [vmem:[#allocation43_spill] sm:$0xff]  ;;  %v5109_v60 = vld [vmem:[#allocation2 + $0x68] sm:$0xff] }
 0x48d   : > { %v2688_v42 = vsel %vm2685_vm12, %v2655_v52, %v2364_v44  ;;  %v2689_v40 = vsel %vm2685_vm12, %v2656_v11, %v2366_v34  ;;  %v2625_v4 = vsel %vm2619_vm8, %v2592_v27, %v8863_v39  ;;  %v2560_v52 = vsel %vm2553_vm7, %v2527_v12, %v8866_v41  ;;  %v8879_v55 = vld [vmem:[#allocation19_spill] sm:$0xff]  ;;  %v8880_v39 = vld [vmem:[#allocation32_spill] sm:$0xff] }
 0x48e   : > { %4949 = vmatmul.msk.f32.gmra.mxu3 %vm2731_vm11, %v2687_v61  ;;  %v2658_v2 = vsel %vm2652_vm10, %v2625_v4, %v8865_v56  ;;  %v2462_v34 = vsel %vm353_vm2, %v5107_v38, %v8869_v9  ;;  %v8881_v12 = vld [vmem:[#allocation12_spill] sm:$0xff]  ;;  %v8886_v9 = vld [vmem:[#allocation47_spill] sm:$0xff] }
 0x48f   : > { %v2495_v13 = vsel %vm2487_vm5, %v2462_v34, %v8871_v50  ;;  %v2464_v56 = vsel %vm353_vm2, %v5109_v60, %v8881_v12  ;;  %v8883_v41 = vld [vmem:[#allocation20_spill] sm:$0xff]  ;;  %v8888_v50 = vld [vmem:[#allocation38_spill] sm:$0xff]  ;;  %v8898_v12 = vld [vmem:[#allocation61_spill] sm:$0xff] }
 0x490   : > { %v2528_v15 = vsel %vm2520_vm6, %v2495_v13, %v8872_v0 }
 0x491   : > { %v2561_v29 = vsel %vm2553_vm7, %v2528_v15, %v8873_v62  ;;  %v5110_v15 = vld [vmem:[#allocation2 + $0x78] sm:$0xff]  ;;  %v8890_v62 = vld [vmem:[#allocation28_spill] sm:$0xff] }
 0x492   : > { %v2594_v35 = vsel %vm2586_vm9, %v2561_v29, %v8875_v46  ;;  %v2465_v29 = vsel %vm353_vm2, %v5110_v15, %v8890_v62  ;;  %v8892_v46 = vld [vmem:[#allocation24_spill] sm:$0xff]  ;;  %v8907_v62 = vld [vmem:[#allocation71_spill] sm:$0xff] }
 0x493   : > { %v2627_v10 = vsel %vm2619_vm8, %v2594_v35, %v8877_v23  ;;  %v2498_v35 = vsel %vm2487_vm5, %v2465_v29, %v8892_v46  ;;  %v8894_v23 = vld [vmem:[#allocation46_spill] sm:$0xff]  ;;  %v8909_v46 = vld [vmem:[#allocation68_spill] sm:$0xff] }
 0x494   : > { %v2370_v61 = vpop.permute.xlu0 %2369  ;;  %v2372_v11 = vpop.permute.xlu1 %2371  ;;  %v2660_v27 = vsel %vm2652_vm10, %v2627_v10, %v8878_v31  ;;  %v5111_v31 = vld [vmem:[#allocation2 + $0x80] sm:$0xff] }
 0x495   : > { %v2691_v44 = vsel %vm2685_vm12, %v2658_v2, %v2370_v61  ;;  %v2693_v61 = vsel %vm2685_vm12, %v2660_v27, %v2374_v51  ;;  %v8882_v2 = vld [vmem:[#allocation40_spill] sm:$0xff]  ;;  %v8895_v27 = vld [vmem:[#allocation35_spill] sm:$0xff] }
 0x496   : > { %4950 = vmatmul.msk.f32.gmra.mxu3 %vm2731_vm11, %v2688_v42  ;;  %v2593_v42 = vsel %vm2586_vm9, %v2560_v52, %v8867_v1  ;;  %v2497_v52 = vsel %vm2487_vm5, %v2464_v56, %v8883_v41  ;;  %v8884_v1 = vld [vmem:[#allocation37_spill] sm:$0xff] }
 0x497   : > { %v2626_v47 = vsel %vm2619_vm8, %v2593_v42, %v8868_v53  ;;  %v2530_v42 = vsel %vm2520_vm6, %v2497_v52, %v8884_v1  ;;  %v8900_v52 = vld [vmem:[#allocation39_spill] sm:$0xff] }
 0x49c   : > { %v2376_v53 = vpop.permute.xlu0 %2375 }
 0x49e   : > { %4951 = vmatmul.msk.f32.gmra.mxu3 %vm2731_vm11, %v2689_v40  ;;  %v2659_v40 = vsel %vm2652_vm10, %v2626_v47, %v8870_v37  ;;  %v8885_v47 = vld [vmem:[#allocation33_spill] sm:$0xff] }
 0x49f   : > { %v2692_v21 = vsel %vm2685_vm12, %v2659_v40, %v2372_v11  ;;  %v8887_v11 = vld [vmem:[#allocation27_spill] sm:$0xff] }
 0x4a0   : > { %v2563_v37 = vsel %vm2553_vm7, %v2530_v42, %v8887_v11  ;;  %v8901_v42 = vld [vmem:[#allocation53_spill] sm:$0xff] }
 0x4a1   : > { %v2596_v13 = vsel %vm2586_vm9, %v2563_v37, %v8888_v50 }
 0x4a4   : > { %v2382_v37 = vpop.permute.xlu0 %2381 }
 0x4a6   : > { %4952 = vmatmul.msk.f32.gmra.mxu3 %vm2731_vm11, %v2690_v6  ;;  %v2463_v6 = vsel %vm353_vm2, %v5108_v26, %v8874_v16  ;;  %v2378_v26 = vpop.permute.xlu1 %2377  ;;  %v8891_v16 = vld [vmem:[#allocation45_spill] sm:$0xff] }
 0x4a7   : > { %v2496_v48 = vsel %vm2487_vm5, %v2463_v6, %v8876_v54  ;;  %v8893_v54 = vld [vmem:[#allocation44_spill] sm:$0xff] }
 0x4a8   : > { %v2529_v58 = vsel %vm2520_vm6, %v2496_v48, %v8879_v55  ;;  %v2531_v48 = vsel %vm2520_vm6, %v2498_v35, %v8893_v54  ;;  %v8896_v55 = vld [vmem:[#allocation42_spill] sm:$0xff] }
 0x4a9   : > { %v2562_v4 = vsel %vm2553_vm7, %v2529_v58, %v8880_v39  ;;  %v2564_v10 = vsel %vm2553_vm7, %v2531_v48, %v8894_v23  ;;  %v2380_v39 = vpop.permute.xlu2 %2379  ;;  %v5113_v48 = vld [vmem:[#allocation2 + $0x98] sm:$0xff]  ;;  %v8911_v23 = vld [vmem:[#allocation49_spill] sm:$0xff] }
 0x4aa   : > { %v2597_v58 = vsel %vm2586_vm9, %v2564_v10, %v8896_v55  ;;  %v2468_v10 = vsel %vm353_vm2, %v5113_v48, %v8911_v23  ;;  %v8913_v55 = vld [vmem:[#allocation36_spill] sm:$0xff]  ;;  %v8928_v23 = vld [vmem:[#allocation89_spill] sm:$0xff] }
 0x4ae   : > { %4953 = vmatmul.msk.f32.gmra.mxu3 %vm2731_vm11, %v2691_v44  ;;  %v2595_v44 = vsel %vm2586_vm9, %v2562_v4, %v8882_v2  ;;  %v8897_v4 = vld [vmem:[#allocation59_spill] sm:$0xff]  ;;  %v8899_v2 = vld [vmem:[#allocation34_spill] sm:$0xff] }
 0x4af   : > { %v2628_v38 = vsel %vm2619_vm8, %v2595_v44, %v8885_v47  ;;  %v2630_v60 = vsel %vm2619_vm8, %v2597_v58, %v8897_v4  ;;  %v5112_v47 = vld [vmem:[#allocation2 + $0x90] sm:$0xff]  ;;  %v2501_v58 = vsel %vm2487_vm5, %v2468_v10, %v8913_v55  ;;  %v8914_v4 = vld [vmem:[#allocation65_spill] sm:$0xff] }
 0x4b0   : > { %v2661_v34 = vsel %vm2652_vm10, %v2628_v38, %v8886_v9  ;;  %v2663_v56 = vsel %vm2652_vm10, %v2630_v60, %v8898_v12  ;;  %v8902_v38 = vld [vmem:[#allocation30_spill] sm:$0xff]  ;;  %v2534_v60 = vsel %vm2520_vm6, %v2501_v58, %v8914_v4  ;;  %v8915_v12 = vld [vmem:[#allocation67_spill] sm:$0xff]  ;;  %v8930_v58 = vld [vmem:[#allocation80_spill] sm:$0xff] }
 0x4b1   : > { %v2694_v40 = vsel %vm2685_vm12, %v2661_v34, %v2376_v53  ;;  %v2696_v41 = vsel %vm2685_vm12, %v2663_v56, %v2380_v39  ;;  %v2467_v9 = vsel %vm353_vm2, %v5112_v47, %v8902_v38  ;;  %v8903_v34 = vld [vmem:[#allocation52_spill] sm:$0xff]  ;;  %v2567_v56 = vsel %vm2553_vm7, %v2534_v60, %v8915_v12  ;;  %v8919_v38 = vld [vmem:[#allocation83_spill] sm:$0xff]  ;;  %v8931_v4 = vld [vmem:[#allocation97_spill] sm:$0xff] }
 0x4b2   : > { %v3038_v55 = vld [vmem:[#allocation3 + $0x1] sm:$0xff]  ;;  %v5116_v12 = vld [vmem:[#allocation2 + $0xc0] sm:$0xff] }
 0x4b3   : > { %3327 = vrot.lane.b32.xlu0 %v3038_v55, %s5159_s22  ;;  %v8945_v55 = vld [vmem:[#allocation94_spill] sm:$0xff] }
 0x4b6   : > { %4954 = vmatmul.msk.f32.gmra.mxu3 %vm2731_vm11, %v2692_v21  ;;  %v8889_v21 = vld [vmem:[#allocation55_spill] sm:$0xff] }
 0x4b7   : > { %v2629_v0 = vsel %vm2619_vm8, %v2596_v13, %v8889_v21  ;;  %v8905_v13 = vld [vmem:[#allocation57_spill] sm:$0xff] }
 0x4b8   : > { %v2662_v6 = vsel %vm2652_vm10, %v2629_v0, %v8891_v16  ;;  %v8906_v0 = vld [vmem:[#allocation58_spill] sm:$0xff]  ;;  %v8908_v16 = vld [vmem:[#allocation48_spill] sm:$0xff] }
 0x4b9   : > { %v2695_v51 = vsel %vm2685_vm12, %v2662_v6, %v2378_v26 }
 0x4be   : > { %4955 = vmatmul.msk.f32.gmra.mxu3 %vm2731_vm11, %v2693_v61  ;;  %v2466_v61 = vsel %vm353_vm2, %v5111_v31, %v8895_v27  ;;  %v2384_v31 = vpop.permute.xlu1 %2383  ;;  %v8912_v27 = vld [vmem:[#allocation63_spill] sm:$0xff] }
 0x4bf   : > { %v2499_v44 = vsel %vm2487_vm5, %v2466_v61, %v8899_v2  ;;  %v5114_v2 = vld [vmem:[#allocation2 + $0xa8] sm:$0xff] }
 0x4c0   : > { %v2532_v1 = vsel %vm2520_vm6, %v2499_v44, %v8900_v52  ;;  %v8916_v44 = vld [vmem:[#allocation56_spill] sm:$0xff]  ;;  %v8917_v52 = vld [vmem:[#allocation54_spill] sm:$0xff] }
 0x4c1   : > { %v2565_v53 = vsel %vm2553_vm7, %v2532_v1, %v8901_v42  ;;  %v2600_v1 = vsel %vm2586_vm9, %v2567_v56, %v8917_v52  ;;  %v2386_v42 = vpop.permute.xlu2 %2385  ;;  %v8932_v56 = vld [vmem:[#allocation70_spill] sm:$0xff] }
 0x4c2   : > { %v2598_v11 = vsel %vm2586_vm9, %v2565_v53, %v8903_v34  ;;  %v8918_v53 = vld [vmem:[#allocation64_spill] sm:$0xff]  ;;  %v8920_v34 = vld [vmem:[#allocation85_spill] sm:$0xff] }
 0x4c3   : > { %v2631_v21 = vsel %vm2619_vm8, %v2598_v11, %v8905_v13  ;;  %v8922_v13 = vld [vmem:[#allocation74_spill] sm:$0xff] }
 0x4c4   : > { %v2664_v29 = vsel %vm2652_vm10, %v2631_v21, %v8907_v62 }
 0x4c5   : > { %v2697_v26 = vsel %vm2685_vm12, %v2664_v29, %v2382_v37  ;;  %v8924_v29 = vld [vmem:[#allocation82_spill] sm:$0xff] }
 0x4c6   : > { %4956 = vmatmul.msk.f32.gmra.mxu3 %vm2731_vm11, %v2694_v40  ;;  %v8904_v40 = vld [vmem:[#allocation50_spill] sm:$0xff] }
 0x4c7   : > { %v2500_v50 = vsel %vm2487_vm5, %v2467_v9, %v8904_v40  ;;  %v2633_v9 = vsel %vm2619_vm8, %v2600_v1, %v8919_v38  ;;  %v8921_v40 = vld [vmem:[#allocation60_spill] sm:$0xff]  ;;  %v8934_v1 = vld [vmem:[#allocation66_spill] sm:$0xff] }
 0x4c8   : > { %v2533_v15 = vsel %vm2520_vm6, %v2500_v50, %v8906_v0  ;;  %v2666_v11 = vsel %vm2652_vm10, %v2633_v9, %v8920_v34  ;;  %v5115_v0 = vld [vmem:[#allocation2 + $0xb0] sm:$0xff]  ;;  %v3039_v9 = vld [vmem:[#allocation3 + $0x9] sm:$0xff] }
 0x4c9   : > { %v2566_v6 = vsel %vm2553_vm7, %v2533_v15, %v8908_v16  ;;  %v2699_v37 = vsel %vm2685_vm12, %v2666_v11, %v2386_v42  ;;  %v8923_v15 = vld [vmem:[#allocation51_spill] sm:$0xff]  ;;  %v8925_v16 = vld [vmem:[#allocation62_spill] sm:$0xff]  ;;  %v8936_v34 = vld [vmem:[#allocation88_spill] sm:$0xff]  ;;  %3329 = vrot.lane.b32.xlu1 %v3039_v9, %s5159_s22 }
 0x4ca   : > { %v2599_v35 = vsel %vm2586_vm9, %v2566_v6, %v8909_v46  ;;  %v2470_v62 = vsel %vm353_vm2, %v5115_v0, %v8923_v15  ;;  %v8926_v46 = vld [vmem:[#allocation79_spill] sm:$0xff]  ;;  %v2392_v0 = vpop.permute.xlu2 %2391  ;;  %v8939_v15 = vld [vmem:[#allocation101_spill] sm:$0xff]  ;;  %v8951_v9 = vld [vmem:[#allocation110_spill] sm:$0xff] }
 0x4cb   : > { %v2503_v6 = vsel %vm2487_vm5, %v2470_v62, %v8925_v16  ;;  %v8941_v16 = vld [vmem:[#allocation76_spill] sm:$0xff] }
 0x4ce   : > { %4957 = vmatmul.msk.f32.gmra.mxu3 %vm2731_vm11, %v2695_v51  ;;  %v8910_v51 = vld [vmem:[#allocation73_spill] sm:$0xff] }
 0x4cf   : > { %v2632_v54 = vsel %vm2619_vm8, %v2599_v35, %v8910_v51  ;;  %v2536_v35 = vsel %vm2520_vm6, %v2503_v6, %v8926_v46  ;;  %v2388_v51 = vpop.permute.xlu0 %2387 }
 0x4d0   : > { %v2665_v61 = vsel %vm2652_vm10, %v2632_v54, %v8912_v27  ;;  %v8927_v54 = vld [vmem:[#allocation75_spill] sm:$0xff] }
 0x4d1   : > { %v2698_v39 = vsel %vm2685_vm12, %v2665_v61, %v2384_v31  ;;  %v8929_v31 = vld [vmem:[#allocation69_spill] sm:$0xff] }
 0x4d2   : > { %v2569_v27 = vsel %vm2553_vm7, %v2536_v35, %v8929_v31  ;;  %v8942_v35 = vld [vmem:[#allocation81_spill] sm:$0xff]  ;;  %v5118_v31 = vld [vmem:[#allocation2 + $0xd8] sm:$0xff] }
 0x4d6   : > { %4958 = vmatmul.msk.f32.gmra.mxu3 %vm2731_vm11, %v2696_v41  ;;  %v2469_v41 = vsel %vm353_vm2, %v5114_v2, %v8916_v44  ;;  %v2471_v2 = vsel %vm353_vm2, %v5116_v12, %v8932_v56  ;;  %v2390_v44 = vpop.permute.xlu1 %2389  ;;  %v8947_v56 = vld [vmem:[#allocation99_spill] sm:$0xff] }
 0x4d7   : > { %v2502_v47 = vsel %vm2487_vm5, %v2469_v41, %v8918_v53  ;;  %v8933_v41 = vld [vmem:[#allocation87_spill] sm:$0xff]  ;;  %v2504_v42 = vsel %vm2487_vm5, %v2471_v2, %v8934_v1 }
 0x4d8   : > { %v2535_v50 = vsel %vm2520_vm6, %v2502_v47, %v8921_v40  ;;  %v8935_v47 = vld [vmem:[#allocation86_spill] sm:$0xff]  ;;  %v8937_v40 = vld [vmem:[#allocation77_spill] sm:$0xff] }
 0x4d9   : > { %v2568_v21 = vsel %vm2553_vm7, %v2535_v50, %v8922_v13  ;;  %v2537_v38 = vsel %vm2520_vm6, %v2504_v42, %v8935_v47  ;;  %v8938_v13 = vld [vmem:[#allocation84_spill] sm:$0xff]  ;;  %v8950_v47 = vld [vmem:[#allocation90_spill] sm:$0xff] }
 0x4da   : > { %v2570_v11 = vsel %vm2553_vm7, %v2537_v38, %v8936_v34 }
 0x4de   : > { %4959 = vmatmul.msk.f32.gmra.mxu3 %vm2731_vm11, %v2697_v26  ;;  %v2601_v26 = vsel %vm2586_vm9, %v2568_v21, %v8924_v29  ;;  %v2603_v21 = vsel %vm2586_vm9, %v2570_v11, %v8938_v13  ;;  %v8940_v29 = vld [vmem:[#allocation103_spill] sm:$0xff] }
 0x4df   : > { %v2634_v48 = vsel %vm2619_vm8, %v2601_v26, %v8927_v54  ;;  %v2636_v62 = vsel %vm2619_vm8, %v2603_v21, %v8939_v15  ;;  %v7072_v54 = vld [vmem:[%s8681_s6] ss:$0 sm:$0xff]  ;;  %v8952_v11 = vld [vmem:[#allocation115_spill] sm:$0xff] }
 0x4e0   : > { %v2667_v10 = vsel %vm2652_vm10, %v2634_v48, %v8928_v23  ;;  %v2669_v26 = vsel %vm2652_vm10, %v2636_v62, %v8940_v29  ;;  %v8943_v48 = vld [vmem:[#allocation95_spill] sm:$0xff]  ;;  %v8954_v29 = vld [vmem:[#allocation105_spill] sm:$0xff] }
 0x4e1   : > { %v2700_v61 = vsel %vm2685_vm12, %v2667_v10, %v2388_v51  ;;  %v2702_v46 = vsel %vm2685_vm12, %v2669_v26, %v2392_v0  ;;  %v8953_v13 = vld [vmem:[#allocation91_spill] sm:$0xff]  ;;  %v2396_v0 = vpop.permute.xlu1 %2395 }
 0x4e6   : > { %4960 = vmatmul.msk.f32.gmra.mxu3 %vm2731_vm11, %v2698_v39  ;;  %v2602_v39 = vsel %vm2586_vm9, %v2569_v27, %v8930_v58  ;;  %v8944_v27 = vld [vmem:[#allocation72_spill] sm:$0xff] }
 0x4e7   : > { %v2635_v60 = vsel %vm2619_vm8, %v2602_v39, %v8931_v4  ;;  %v2394_v39 = vpop.permute.xlu0 %2393 }
 0x4e8   : > { %v2668_v52 = vsel %vm2652_vm10, %v2635_v60, %v8933_v41  ;;  %v8946_v60 = vld [vmem:[#allocation92_spill] sm:$0xff] }
 0x4e9   : > { %v2701_v53 = vsel %vm2685_vm12, %v2668_v52, %v2390_v44  ;;  %v8948_v44 = vld [vmem:[#allocation100_spill] sm:$0xff]  ;;  %v8949_v52 = vld [vmem:[#allocation113_spill] sm:$0xff] }
 0x4ee   : > { %4961 = vmatmul.msk.f32.gmra.mxu3 %vm2731_vm11, %v2699_v37  ;;  %v5117_v37 = vld [vmem:[#allocation2 + $0xc8] sm:$0xff] }
 0x4ef   : > { %v2472_v50 = vsel %vm353_vm2, %v5117_v37, %v8937_v40 }
 0x4f0   : > { %v2505_v6 = vsel %vm2487_vm5, %v2472_v50, %v8941_v16  ;;  %v5119_v50 = vld [vmem:[#allocation2 + $0xe0] sm:$0xff]  ;;  %v8955_v16 = vld [vmem:[#allocation78_spill] sm:$0xff] }
 0x4f1   : > { %v2538_v51 = vsel %vm2520_vm6, %v2505_v6, %v8942_v35  ;;  %v2474_v21 = vsel %vm353_vm2, %v5119_v50, %v8953_v13  ;;  %v8966_v50 = vld [vmem:[#allocation124_spill] sm:$0xff] }
 0x4f2   : > { %v2571_v23 = vsel %vm2553_vm7, %v2538_v51, %v8943_v48  ;;  %v2507_v6 = vsel %vm2487_vm5, %v2474_v21, %v8955_v16  ;;  %v8956_v51 = vld [vmem:[#allocation107_spill] sm:$0xff]  ;;  %v8967_v21 = vld [vmem:[#allocation104_spill] sm:$0xff] }
 0x4f3   : > { %v2604_v58 = vsel %vm2586_vm9, %v2571_v23, %v8945_v55  ;;  %v2540_v48 = vsel %vm2520_vm6, %v2507_v6, %v8956_v51  ;;  %v8957_v23 = vld [vmem:[#allocation109_spill] sm:$0xff]  ;;  %v8970_v51 = vld [vmem:[#allocation131_spill] sm:$0xff] }
 0x4f4   : > { %v2637_v2 = vsel %vm2619_vm8, %v2604_v58, %v8947_v56  ;;  %v8959_v58 = vld [vmem:[#allocation96_spill] sm:$0xff]  ;;  %v8969_v6 = vld [vmem:[#allocation117_spill] sm:$0xff] }
 0x4f5   : > { %v2670_v1 = vsel %vm2652_vm10, %v2637_v2, %v8949_v52  ;;  %v8961_v2 = vld [vmem:[#allocation125_spill] sm:$0xff] }
 0x4f6   : > { %4962 = vmatmul.msk.f32.gmra.mxu3 %vm2731_vm11, %v2700_v61  ;;  %v2473_v61 = vsel %vm353_vm2, %v5118_v31, %v8944_v27  ;;  %v5120_v27 = vld [vmem:[#allocation2 + $0xf0] sm:$0xff] }
 0x4f7   : > { %v2506_v12 = vsel %vm2487_vm5, %v2473_v61, %v8946_v60  ;;  %v8958_v61 = vld [vmem:[#allocation98_spill] sm:$0xff] }
 0x4f8   : > { %v2539_v41 = vsel %vm2520_vm6, %v2506_v12, %v8948_v44  ;;  %v2475_v55 = vsel %vm353_vm2, %v5120_v27, %v8958_v61  ;;  %v8960_v12 = vld [vmem:[#allocation106_spill] sm:$0xff] }
 0x4f9   : > { %v2572_v38 = vsel %vm2553_vm7, %v2539_v41, %v8950_v47  ;;  %v2508_v56 = vsel %vm2487_vm5, %v2475_v55, %v8960_v12  ;;  %v8962_v41 = vld [vmem:[#allocation127_spill] sm:$0xff]  ;;  %v8963_v47 = vld [vmem:[#allocation102_spill] sm:$0xff]  ;;  %v5122_v12 = vld [vmem:[#allocation2 + $0x108] sm:$0xff] }
 0x4fa   : > { %v2605_v34 = vsel %vm2586_vm9, %v2572_v38, %v8951_v9  ;;  %v2541_v38 = vsel %vm2520_vm6, %v2508_v56, %v8963_v47  ;;  %v8964_v9 = vld [vmem:[#allocation116_spill] sm:$0xff]  ;;  %v8972_v55 = vld [vmem:[#allocation122_spill] sm:$0xff] }
 0x4fb   : > { %v2638_v37 = vsel %vm2619_vm8, %v2605_v34, %v8952_v11  ;;  %v2574_v34 = vsel %vm2553_vm7, %v2541_v38, %v8964_v9  ;;  %v5121_v11 = vld [vmem:[#allocation2 + $0xf8] sm:$0xff]  ;;  %v8974_v56 = vld [vmem:[#allocation112_spill] sm:$0xff] }
 0x4fc   : > { %v2671_v26 = vsel %vm2652_vm10, %v2638_v37, %v8954_v29  ;;  %v8965_v37 = vld [vmem:[#allocation93_spill] sm:$0xff]  ;;  %v2607_v13 = vsel %vm2586_vm9, %v2574_v34, %v8966_v50  ;;  %v8976_v47 = vld [vmem:[#allocation108_spill] sm:$0xff] }
 0x4fd   : > { %v2704_v35 = vsel %vm2685_vm12, %v2671_v26, %v2396_v0  ;;  %v2400_v26 = vpop.permute.xlu0 %2399 }
 0x4fe   : > { %4963 = vmatmul.msk.f32.gmra.mxu3 %vm2731_vm11, %v2701_v53  ;;  %v2703_v53 = vsel %vm2685_vm12, %v2670_v1, %v2394_v39 }
 0x506   : > { %4964 = vmatmul.msk.f32.gmra.mxu3 %vm2731_vm11, %v2702_v46 }
 0x509   : > { %v2845_v10 = vpop.f32.mrf.mxu3 }
 0x50a   : > { %v2846_v4 = vadd.f32 %v7072_v54, %v2845_v10  ;;  %v2573_v10 = vsel %vm2553_vm7, %v2540_v48, %v8957_v23 }
 0x50b   : > { %v2606_v39 = vsel %vm2586_vm9, %v2573_v10, %v8959_v58  ;;  %v8971_v10 = vld [vmem:[#allocation111_spill] sm:$0xff] }
 0x50c   : > { %v2941_v42 = vmax.f32 %v2846_v4, 0.0  ;;  %v2398_v4 = vpop.permute.xlu2 %2397  ;;  %v2639_v44 = vsel %vm2619_vm8, %v2606_v39, %v8961_v2  ;;  %v8973_v39 = vld [vmem:[#allocation139_spill] sm:$0xff]  ;;  %v2477_v2 = vsel %vm353_vm2, %v5122_v12, %v8974_v56  ;;  %v8985_v12 = vld [vmem:[#allocation114_spill] sm:$0xff] }
 0x50d   : > { %v2672_v52 = vsel %vm2652_vm10, %v2639_v44, %v8962_v41  ;;  %v2402_v44 = vpop.permute.xlu1 %2401  ;;  %v2510_v38 = vsel %vm2487_vm5, %v2477_v2, %v8976_v47  ;;  %v8986_v2 = vld [vmem:[#allocation136_spill] sm:$0xff]  ;;  %v8988_v47 = vld [vmem:[#allocation141_spill] sm:$0xff] }
 0x50e   : > { %2974 = vst.msk [vmem:[#allocation3 + $0x19] sm:$0xff] %vm353_vm2, %v2941_v42  ;;  %4965 = vmatmul.msk.f32.gmra.mxu3 %vm2731_vm11, %v2703_v53  ;;  %v2705_v53 = vsel %vm2685_vm12, %v2672_v52, %v2398_v4  ;;  %v8975_v52 = vld [vmem:[#allocation129_spill] sm:$0xff] }
 0x511   : > { %v2848_v40 = vpop.f32.mrf.mxu3 }
 0x512   : > { %v2849_v15 = vadd.f32 %v7072_v54, %v2848_v40  ;;  %v2476_v40 = vsel %vm353_vm2, %v5121_v11, %v8965_v37  ;;  %v8977_v11 = vld [vmem:[#allocation128_spill] sm:$0xff] }
 0x513   : > { %v2509_v0 = vsel %vm2487_vm5, %v2476_v40, %v8967_v21  ;;  %v2543_v37 = vsel %vm2520_vm6, %v2510_v38, %v8977_v11  ;;  %v8978_v40 = vld [vmem:[#allocation130_spill] sm:$0xff] }
 0x514   : > { %v2942_v62 = vmax.f32 %v2849_v15, 0.0  ;;  %v2576_v50 = vsel %vm2553_vm7, %v2543_v37, %v8978_v40  ;;  %v5123_v21 = vld [vmem:[#allocation2 + $0x110] sm:$0xff] }
 0x515   : > { %v7105_v46 = vld [vmem:[#allocation3 + $0x19] sm:$0xff] }
 0x516   : > { %2975 = vst.msk [vmem:[#allocation3 + $0x21] sm:$0xff] %vm353_vm2, %v2942_v62  ;;  %3331 = vrot.lane.b32.xlu2 %v7105_v46, %s5159_s22  ;;  %4966 = vmatmul.msk.f32.gmra.mxu3 %vm2731_vm11, %v2704_v35  ;;  %v8968_v62 = vld [vmem:[#allocation121_spill] sm:$0xff]  ;;  %v2640_v35 = vsel %vm2619_vm8, %v2607_v13, %v8969_v6  ;;  %v8981_v6 = vld [vmem:[#allocation143_spill] sm:$0xff]  ;;  %v8990_v37 = vld [vmem:[#allocation154_spill] sm:$0xff] }
 0x517   : > { %v2542_v29 = vsel %vm2520_vm6, %v2509_v0, %v8968_v62  ;;  %v2673_v48 = vsel %vm2652_vm10, %v2640_v35, %v8970_v51  ;;  %v8979_v0 = vld [vmem:[#allocation119_spill] sm:$0xff]  ;;  %v8980_v62 = vld [vmem:[#allocation126_spill] sm:$0xff] }
 0x518   : > { %v2706_v27 = vsel %vm2685_vm12, %v2673_v48, %v2400_v26  ;;  %v2404_v26 = vpop.permute.xlu2 %2403 }
 0x519   : > { %v2851_v31 = vpop.f32.mrf.mxu3 }
 0x51a   : > { %v2852_v60 = vadd.f32 %v7072_v54, %v2851_v31  ;;  %v2575_v31 = vsel %vm2553_vm7, %v2542_v29, %v8971_v10  ;;  %v2609_v29 = vsel %vm2586_vm9, %v2576_v50, %v8980_v62  ;;  %v8992_v62 = vld [vmem:[#allocation151_spill] sm:$0xff] }
 0x51b   : > { %v2608_v58 = vsel %vm2586_vm9, %v2575_v31, %v8972_v55  ;;  %v2642_v35 = vsel %vm2619_vm8, %v2609_v29, %v8981_v6  ;;  %v8983_v55 = vld [vmem:[#allocation123_spill] sm:$0xff] }
 0x51c   : > { %v2943_v1 = vmax.f32 %v2852_v60, 0.0  ;;  %v2641_v4 = vsel %vm2619_vm8, %v2608_v58, %v8973_v39  ;;  %v2675_v51 = vsel %vm2652_vm10, %v2642_v35, %v6617_v49  ;;  %v8984_v39 = vld [vmem:[#allocation137_spill] sm:$0xff] }
 0x51d   : > { %v7127_v42 = vld [vmem:[#allocation3 + $0x21] sm:$0xff]  ;;  %v2708_v31 = vsel %vm2685_vm12, %v2675_v51, %v2404_v26  ;;  %v5125_v35 = vld [vmem:[#allocation2 + $0x128] sm:$0xff] }
 0x51e   : > { %2976 = vst.msk [vmem:[#allocation3 + $0x31] sm:$0xff] %vm353_vm2, %v2943_v1  ;;  %3333 = vrot.lane.b32.xlu0 %v7127_v42, %s5159_s22  ;;  %4967 = vmatmul.msk.f32.gmra.mxu3 %vm2731_vm11, %v2705_v53  ;;  %v2674_v1 = vsel %vm2652_vm10, %v2641_v4, %v8975_v52  ;;  %v8993_v26 = vld [vmem:[#allocation155_spill] sm:$0xff]  ;;  %v8994_v51 = vld [vmem:[#allocation133_spill] sm:$0xff] }
 0x51f   : > { %v2707_v9 = vsel %vm2685_vm12, %v2674_v1, %v2402_v44  ;;  %v8987_v1 = vld [vmem:[#allocation134_spill] sm:$0xff] }
 0x521   : > { %v2854_v15 = vpop.f32.mrf.mxu3 }
 0x522   : > { %v2855_v16 = vadd.f32 %v7072_v54, %v2854_v15  ;;  %v2478_v15 = vsel %vm353_vm2, %v5123_v21, %v8979_v0  ;;  %v8991_v0 = vld [vmem:[#allocation132_spill] sm:$0xff] }
 0x524   : > { %v2944_v23 = vmax.f32 %v2855_v16, 0.0 }
 0x525   : > { %v7154_v61 = vld [vmem:[#allocation3 + $0x31] sm:$0xff] }
 0x526   : > { %2977 = vst.msk [vmem:[#allocation3 + $0x39] sm:$0xff] %vm353_vm2, %v2944_v23  ;;  %4968 = vmatmul.msk.f32.gmra.mxu3 %vm2731_vm11, %v2706_v27  ;;  %3335 = vrot.lane.b32.xlu1 %v7154_v61, %s5159_s22  ;;  %v8982_v23 = vld [vmem:[#allocation118_spill] sm:$0xff] }
 0x527   : > { %v2511_v10 = vsel %vm2487_vm5, %v2478_v15, %v8982_v23  ;;  %v2408_v23 = vpop.permute.xlu1 %2407 }
 0x528   : > { %v2544_v58 = vsel %vm2520_vm6, %v2511_v10, %v8983_v55 }
 0x529   : > { %v2857_v60 = vpop.f32.mrf.mxu3  ;;  %v2577_v49 = vsel %vm2553_vm7, %v2544_v58, %v8984_v39  ;;  %v8996_v39 = vld [vmem:[#allocation120_spill] sm:$0xff] }
 0x52a   : > { %v2858_v41 = vadd.f32 %v7072_v54, %v2857_v60  ;;  %v5124_v60 = vld [vmem:[#allocation2 + $0x120] sm:$0xff]  ;;  %v2610_v44 = vsel %vm2586_vm9, %v2577_v49, %v8986_v2  ;;  %v8998_v2 = vld [vmem:[#allocation150_spill] sm:$0xff] }
 0x52b   : > { %v2479_v56 = vsel %vm353_vm2, %v5124_v60, %v8985_v12  ;;  %v2643_v38 = vsel %vm2619_vm8, %v2610_v44, %v8988_v47  ;;  %v8997_v12 = vld [vmem:[#allocation148_spill] sm:$0xff]  ;;  %v9000_v47 = vld [vmem:[#allocation138_spill] sm:$0xff] }
 0x52c   : > { %v2945_v53 = vmax.f32 %v2858_v41, 0.0  ;;  %v2406_v41 = vpop.permute.xlu0 %2405  ;;  %v2676_v40 = vsel %vm2652_vm10, %v2643_v38, %v8990_v37  ;;  %v9001_v37 = vld [vmem:[#allocation147_spill] sm:$0xff] }
 0x52d   : > { %v7172_v34 = vld [vmem:[#allocation3 + $0x39] sm:$0xff] }
 0x52e   : > { %2978 = vst.msk [vmem:[#allocation3 + $0x49] sm:$0xff] %vm353_vm2, %v2945_v53  ;;  %4969 = vmatmul.msk.f32.gmra.mxu3 %vm2731_vm11, %v2707_v9  ;;  %3337 = vrot.lane.b32.xlu2 %v7172_v34, %s5159_s22  ;;  %v2512_v53 = vsel %vm2487_vm5, %v2479_v56, %v8987_v1  ;;  %v8989_v9 = vld [vmem:[#allocation142_spill] sm:$0xff]  ;;  %v8999_v1 = vld [vmem:[#allocation140_spill] sm:$0xff] }
 0x52f   : > { %v2545_v11 = vsel %vm2520_vm6, %v2512_v53, %v8989_v9  ;;  %v2410_v9 = vpop.permute.xlu2 %2409 }
 0x530   : > { %v2578_v15 = vsel %vm2553_vm7, %v2545_v11, %v8991_v0 }
 0x531   : > { %v2860_v13 = vpop.f32.mrf.mxu3  ;;  %v2611_v29 = vsel %vm2586_vm9, %v2578_v15, %v8992_v62 }
 0x532   : > { %v2861_v16 = vadd.f32 %v7072_v54, %v2860_v13  ;;  %v2709_v13 = vsel %vm2685_vm12, %v2676_v40, %v2406_v41 }
 0x534   : > { %v2946_v48 = vmax.f32 %v2861_v16, 0.0  ;;  %v2644_v16 = vsel %vm2619_vm8, %v2611_v29, %v8993_v26  ;;  %v9002_v29 = vld [vmem:[#allocation144_spill] sm:$0xff] }
 0x535   : > { %v7194_v27 = vld [vmem:[#allocation3 + $0x49] sm:$0xff] }
 0x536   : > { %2979 = vst.msk [vmem:[#allocation3 + $0x51] sm:$0xff] %vm353_vm2, %v2946_v48  ;;  %4970 = vmatmul.msk.f32.gmra.mxu3 %vm2731_vm11, %v2708_v31  ;;  %3339 = vrot.lane.b32.xlu0 %v7194_v27, %s5159_s22  ;;  %v2480_v48 = vsel %vm353_vm2, %v5125_v35, %v8994_v51  ;;  %v8995_v31 = vld [vmem:[#allocation146_spill] sm:$0xff]  ;;  %v9004_v51 = vld [vmem:[#allocation145_spill] sm:$0xff] }
 0x537   : > { %v2677_v55 = vsel %vm2652_vm10, %v2644_v16, %v8995_v31  ;;  %v2513_v49 = vsel %vm2487_vm5, %v2480_v48, %v8996_v39  ;;  %v5127_v16 = vld [vmem:[#allocation2 + $0x140] sm:$0xff]  ;;  %v2412_v31 = vpop.permute.xlu0 %2411 }
 0x538   : > { %v2546_v56 = vsel %vm2520_vm6, %v2513_v49, %v8997_v12  ;;  %v9005_v49 = vld [vmem:[#allocation153_spill] sm:$0xff] }
 0x539   : > { %v2863_v4 = vpop.f32.mrf.mxu3  ;;  %v2579_v44 = vsel %vm2553_vm7, %v2546_v56, %v8998_v2  ;;  %v5128_v56 = vld [vmem:[#allocation2 + $0x150] sm:$0xff]  ;;  %v9006_v2 = vld [vmem:[#allocation152_spill] sm:$0xff] }
 0x53a   : > { %v2864_v52 = vadd.f32 %v7072_v54, %v2863_v4  ;;  %v2710_v4 = vsel %vm2685_vm12, %v2677_v55, %v2408_v23  ;;  %v2612_v38 = vsel %vm2586_vm9, %v2579_v44, %v9000_v47  ;;  %v2483_v44 = vsel %vm353_vm2, %v5128_v56, %v9006_v2  ;;  %v9007_v47 = vld [vmem:[#allocation149_spill] sm:$0xff] }
 0x53b   : > { %v9016_v56 = vld [vmem:[#allocation5_spill] sm:$0xff] }
 0x53c   : > { %v2947_v50 = vmax.f32 %v2864_v52, 0.0  ;;  %v5126_v52 = vld [vmem:[#allocation2 + $0x138] sm:$0xff] }
 0x53d   : > { %v7218_v21 = vld [vmem:[#allocation3 + $0x51] sm:$0xff]  ;;  %v2481_v53 = vsel %vm353_vm2, %v5126_v52, %v8999_v1 }
 0x53e   : > { %2980 = vst.msk [vmem:[#allocation3 + $0x61] sm:$0xff] %vm353_vm2, %v2947_v50  ;;  %4971 = vmatmul.msk.f32.gmra.mxu3 %vm2731_vm11, %v2709_v13  ;;  %3341 = vrot.lane.b32.xlu1 %v7218_v21, %s5159_s22  ;;  %v2514_v40 = vsel %vm2487_vm5, %v2481_v53, %v9001_v37  ;;  %v2645_v50 = vsel %vm2619_vm8, %v2612_v38, %v6682_v22  ;;  %v5129_v37 = vld [vmem:[#allocation2 + $0x158] sm:$0xff] }
 0x53f   : > { %v2678_v13 = vsel %vm2652_vm10, %v2645_v50, %v6690_v45  ;;  %v2547_v26 = vsel %vm2520_vm6, %v2514_v40, %v9002_v29  ;;  %v9003_v45 = vld [vmem:[#allocation135_spill] sm:$0xff]  ;;  %v2516_v38 = vsel %vm2487_vm5, %v2483_v44, %v9007_v47  ;;  %v2484_v40 = vsel %vm353_vm2, %v5129_v37, %v6662_v32  ;;  %v9018_v47 = vld [vmem:[#allocation164_spill] sm:$0xff] }
 0x540   : > { %v2711_v15 = vsel %vm2685_vm12, %v2678_v13, %v2410_v9  ;;  %v2580_v22 = vsel %vm2553_vm7, %v2547_v26, %v6653_v7  ;;  %v2416_v13 = vpop.permute.xlu2 %2415  ;;  %v9008_v26 = vld [vmem:[#allocation157_spill] sm:$0xff] }
 0x541   : > { %v2866_v6 = vpop.f32.mrf.mxu3  ;;  %v2613_v35 = vsel %vm2586_vm9, %v2580_v22, %v6680_v36 }
 0x542   : > { %v2867_v10 = vadd.f32 %v7072_v54, %v2866_v6  ;;  %v2482_v6 = vsel %vm353_vm2, %v5127_v16, %v9003_v45  ;;  %v2646_v7 = vsel %vm2619_vm8, %v2613_v35, %v6664_v3 }
 0x543   : > { %v2515_v48 = vsel %vm2487_vm5, %v2482_v6, %v9004_v51  ;;  %v9010_v6 = vld [vmem:[#allocation160_spill] sm:$0xff] }
 0x544   : > { %v2948_v58 = vmax.f32 %v2867_v10, 0.0  ;;  %v2548_v10 = vsel %vm2520_vm6, %v2515_v48, %v6669_v5  ;;  %v9011_v48 = vld [vmem:[#allocation161_spill] sm:$0xff] }
 0x545   : > { %v7238_v60 = vld [vmem:[#allocation3 + $0x61] sm:$0xff]  ;;  %v2581_v36 = vsel %vm2553_vm7, %v2548_v10, %v9005_v49  ;;  %v2418_v10 = vpop.permute.xlu0 %2417 }
 0x546   : > { %2981 = vst.msk [vmem:[#allocation3 + $0x69] sm:$0xff] %vm353_vm2, %v2948_v58  ;;  %4972 = vmatmul.msk.f32.gmra.mxu3 %vm2731_vm11, %v2710_v4  ;;  %3343 = vrot.lane.b32.xlu2 %v7238_v60, %s5159_s22  ;;  %v2679_v58 = vsel %vm2652_vm10, %v2646_v7, %v6710_v18  ;;  %v2614_v3 = vsel %vm2586_vm9, %v2581_v36, %v6671_v57 }
 0x547   : > { %v2712_v4 = vsel %vm2685_vm12, %v2679_v58, %v2412_v31  ;;  %v2647_v5 = vsel %vm2619_vm8, %v2614_v3, %v6764_v24  ;;  %v2549_v24 = vsel %vm2520_vm6, %v2516_v38, %v6694_v33  ;;  %v9014_v3 = vld [vmem:[#allocation166_spill] sm:$0xff] }
 0x548   : > { %v2680_v1 = vsel %vm2652_vm10, %v2647_v5, %v6736_v14  ;;  %v2582_v14 = vsel %vm2553_vm7, %v2549_v24, %v6708_v63  ;;  %v2517_v63 = vsel %vm2487_vm5, %v2484_v40, %v9008_v26  ;;  %v5131_v5 = vld [vmem:[#allocation2 + $0x170] sm:$0xff] }
 0x549   : > { %v2869_v41 = vpop.f32.mrf.mxu3  ;;  %v2615_v50 = vsel %vm2586_vm9, %v2582_v14, %v6718_v17  ;;  %v2550_v32 = vsel %vm2520_vm6, %v2517_v63, %v6692_v30  ;;  %v9019_v14 = vld [vmem:[#allocation165_spill] sm:$0xff] }
 0x54a   : > { %v2870_v11 = vadd.f32 %v7072_v54, %v2869_v41  ;;  %v2414_v41 = vpop.permute.xlu1 %2413  ;;  %v2583_v17 = vsel %vm2553_vm7, %v2550_v32, %v6749_v20  ;;  %v3070_v32 = vld [vmem:[#allocation3 + $0x2] sm:$0xff] }
 0x54b   : > { %v2713_v57 = vsel %vm2685_vm12, %v2680_v1, %v2414_v41  ;;  %v2616_v30 = vsel %vm2586_vm9, %v2583_v17, %v9011_v48  ;;  %v9017_v1 = vld [vmem:[#allocation158_spill] sm:$0xff] }
 0x54c   : > { %v2949_v0 = vmax.f32 %v2870_v11, 0.0 }
 0x54d   : > { %v7260_v62 = vld [vmem:[#allocation3 + $0x69] sm:$0xff] }
 0x54e   : > { %2982 = vst.msk [vmem:[#allocation3 + $0x79] sm:$0xff] %vm353_vm2, %v2949_v0  ;;  %4973 = vmatmul.msk.f32.gmra.mxu3 %vm2731_vm11, %v2711_v15  ;;  %3345 = vrot.lane.b32.xlu0 %v7260_v62, %s5159_s22  ;;  %v2648_v0 = vsel %vm2619_vm8, %v2615_v50, %v6766_v28  ;;  %v5130_v28 = vld [vmem:[#allocation2 + $0x168] sm:$0xff] }
 0x54f   : > { %v2681_v15 = vsel %vm2652_vm10, %v2648_v0, %v6789_v8  ;;  %v9009_v8 = vld [vmem:[#allocation156_spill] sm:$0xff]  ;;  %v7380_v50 = vld [vmem:[#allocation3 + $0x1a] sm:$0xff]  ;;  %v2422_v0 = vpop.permute.xlu2 %2421 }
 0x550   : > { %v2714_v22 = vsel %vm2685_vm12, %v2681_v15, %v2416_v13  ;;  %v2485_v45 = vsel %vm353_vm2, %v5130_v28, %v9009_v8 }
 0x551   : > { %v2872_v23 = vpop.f32.mrf.mxu3  ;;  %v2518_v35 = vsel %vm2487_vm5, %v2485_v45, %v9010_v6  ;;  %v3071_v6 = vld [vmem:[#allocation3 + $0xa] sm:$0xff] }
 0x552   : > { %v2873_v55 = vadd.f32 %v7072_v54, %v2872_v23  ;;  %v2551_v23 = vsel %vm2520_vm6, %v2518_v35, %v6769_v43  ;;  %v2420_v41 = vpop.permute.xlu1 %2419 }
 0x554   : > { %v2950_v39 = vmax.f32 %v2873_v55, 0.0  ;;  %v9012_v55 = vld [vmem:[#allocation167_spill] sm:$0xff] }
 0x555   : > { %v7286_v12 = vld [vmem:[#allocation3 + $0x79] sm:$0xff]  ;;  %v2649_v20 = vsel %vm2619_vm8, %v2616_v30, %v9012_v55 }
 0x556   : > { %2983 = vst.msk [vmem:[#allocation3 + $0x81] sm:$0xff] %vm353_vm2, %v2950_v39  ;;  %4974 = vmatmul.msk.f32.gmra.mxu3 %vm2731_vm11, %v2712_v4  ;;  %3347 = vrot.lane.b32.xlu1 %v7286_v12, %s5159_s22  ;;  %v2682_v7 = vsel %vm2652_vm10, %v2649_v20, %v6787_v19  ;;  %v9013_v39 = vld [vmem:[#allocation162_spill] sm:$0xff]  ;;  %v9015_v19 = vld [vmem:[#allocation159_spill] sm:$0xff] }
 0x557   : > { %v2584_v49 = vsel %vm2553_vm7, %v2551_v23, %v9013_v39  ;;  %v2715_v36 = vsel %vm2685_vm12, %v2682_v7, %v2418_v10  ;;  %v7415_v55 = vld [vmem:[#allocation3 + $0x3a] sm:$0xff] }
 0x558   : > { %v2617_v43 = vsel %vm2586_vm9, %v2584_v49, %v9014_v3  ;;  %v7427_v49 = vld [vmem:[#allocation3 + $0x62] sm:$0xff] }
 0x559   : > { %v2875_v18 = vpop.f32.mrf.mxu3  ;;  %v2650_v2 = vsel %vm2619_vm8, %v2617_v43, %v9016_v56  ;;  %v7444_v56 = vld [vmem:[#allocation3 + $0x6a] sm:$0xff] }
 0x55a   : > { %v2876_v52 = vadd.f32 %v7072_v54, %v2875_v18  ;;  %v2486_v18 = vsel %vm353_vm2, %v5131_v5, %v9015_v19  ;;  %v7439_v19 = vld [vmem:[#allocation3 + $0x52] sm:$0xff] }
 0x55c   : > { %v2951_v53 = vmax.f32 %v2876_v52, 0.0 }
 0x55d   : > { %v7304_v9 = vld [vmem:[#allocation3 + $0x81] sm:$0xff] }
 0x55e   : > { %2984 = vst.msk [vmem:[#allocation3 + $0x91] sm:$0xff] %vm353_vm2, %v2951_v53  ;;  %4975 = vmatmul.msk.f32.gmra.mxu3 %vm2731_vm11, %v2713_v57  ;;  %3349 = vrot.lane.b32.xlu2 %v7304_v9, %s5159_s22  ;;  %v2519_v53 = vsel %vm2487_vm5, %v2486_v18, %v9017_v1  ;;  %v2683_v57 = vsel %vm2652_vm10, %v2650_v2, %v6797_v59  ;;  %v9020_v59 = vld [vmem:[#allocation163_spill] sm:$0xff]  ;;  %v7455_v1 = vld [vmem:[#allocation3 + $0x7a] sm:$0xff] }
 0x55f   : > { %v2552_v38 = vsel %vm2520_vm6, %v2519_v53, %v9018_v47  ;;  %v2716_v37 = vsel %vm2685_vm12, %v2683_v57, %v2420_v41  ;;  %v7457_v53 = vld [vmem:[#allocation3 + $0x82] sm:$0xff] }
 0x561   : > { %v2878_v11 = vpop.f32.mrf.mxu3 }
 0x562   : > { %v2879_v33 = vadd.f32 %v7072_v54, %v2878_v11  ;;  %v2585_v11 = vsel %vm2553_vm7, %v2552_v38, %v9019_v14 }
 0x563   : > { %v2618_v13 = vsel %vm2586_vm9, %v2585_v11, %v9020_v59 }
 0x564   : > { %v2952_v29 = vmax.f32 %v2879_v33, 0.0 }
 0x565   : > { %v7326_v16 = vld [vmem:[#allocation3 + $0x91] sm:$0xff] }
 0x566   : > { %2985 = vst.msk [vmem:[#allocation3 + $0x99] sm:$0xff] %vm353_vm2, %v2952_v29  ;;  %4976 = vmatmul.msk.f32.gmra.mxu3 %vm2731_vm11, %v2714_v22  ;;  %3351 = vrot.lane.b32.xlu0 %v7326_v16, %s5159_s22  ;;  %v9021_v29 = vld [vmem:[#allocation4_spill] sm:$0xff] }
 0x567   : > { %v2651_v26 = vsel %vm2619_vm8, %v2618_v13, %v9021_v29 }
 0x568   : > { %v2684_v63 = vsel %vm2652_vm10, %v2651_v26, %v6811_v25 }
 0x569   : > { %v2881_v51 = vpop.f32.mrf.mxu3  ;;  %v2717_v17 = vsel %vm2685_vm12, %v2684_v63, %v2422_v0 }
 0x56a   : > { %v2882_v31 = vadd.f32 %v7072_v54, %v2881_v51  ;;  %v7404_v51 = vld [vmem:[#allocation3 + $0x22] sm:$0xff] }
 0x56c   : > { %v2953_v58 = vmax.f32 %v2882_v31, 0.0  ;;  %v7413_v31 = vld [vmem:[#allocation3 + $0x32] sm:$0xff] }
 0x56d   : > { %v7352_v4 = vld [vmem:[#allocation3 + $0x99] sm:$0xff] }
 0x56e   : > { %2986 = vst.msk [vmem:[#allocation3 + $0xa9] sm:$0xff] %vm353_vm2, %v2953_v58  ;;  %4977 = vmatmul.msk.f32.gmra.mxu3 %vm2731_vm11, %v2715_v36  ;;  %3353 = vrot.lane.b32.xlu1 %v7352_v4, %s5159_s22  ;;  %v7430_v36 = vld [vmem:[#allocation3 + $0x4a] sm:$0xff]  ;;  %v7470_v11 = vld [vmem:[#allocation3 + $0x92] sm:$0xff]  ;;  %v7480_v0 = vld [vmem:[#allocation3 + $0x9a] sm:$0xff] }
 0x571   : > { %v2884_v44 = vpop.f32.mrf.mxu3 }
 0x572   : > { %v2885_v52 = vadd.f32 %v7072_v54, %v2884_v44 }
 0x574   : > { %v2954_v24 = vmax.f32 %v2885_v52, 0.0 }
 0x575   : > { %v7374_v40 = vld [vmem:[#allocation3 + $0xa9] sm:$0xff] }
 0x576   : > { %2987 = vst.msk [vmem:[#allocation3 + $0xb1] sm:$0xff] %vm353_vm2, %v2954_v24  ;;  %4978 = vmatmul.msk.f32.gmra.mxu3 %vm2731_vm11, %v2716_v37  ;;  %3355 = vrot.lane.b32.xlu2 %v7374_v40, %s5159_s22  ;;  %v7477_v37 = vpop.permute.xlu2 %3331 }
 0x577   : > { %3459 = vrot.lane.b32.xlu1 %v7380_v50, %s5160_s23 }
 0x579   : > { %v2887_v33 = vpop.f32.mrf.mxu3 }
 0x57a   : > { %v2888_v15 = vadd.f32 %v7072_v54, %v2887_v33 }
 0x57c   : > { %v2955_v22 = vmax.f32 %v2888_v15, 0.0 }
 0x57d   : > { %v7392_v28 = vld [vmem:[#allocation3 + $0xb1] sm:$0xff] }
 0x57e   : > { %2988 = vst.msk [vmem:[#allocation3 + $0xc1] sm:$0xff] %vm353_vm2, %v2955_v22  ;;  %4979 = vmatmul.msk.f32.gmra.mxu3 %vm2731_vm11, %v2717_v17  ;;  %3357 = vrot.lane.b32.xlu0 %v7392_v28, %s5159_s22  ;;  %v3084_v14 = vld [vmem:[#allocation3 + $0xaa] sm:$0xff]  ;;  %v3085_v29 = vld [vmem:[#allocation3 + $0xb2] sm:$0xff] }
 0x57f   : > { %3455 = vrot.lane.b32.xlu2 %v3070_v32, %s5160_s23 }
 0x581   : > { %v2890_v8 = vpop.f32.mrf.mxu3 }
 0x582   : > { %v2891_v45 = vadd.f32 %v7072_v54, %v2890_v8 }
 0x584   : > { %v2956_v25 = vmax.f32 %v2891_v45, 0.0 }
 0x585   : > { %v7400_v35 = vld [vmem:[#allocation3 + $0xc1] sm:$0xff] }
 0x586   : > { %2989 = vst.msk [vmem:[#allocation3 + $0xc9] sm:$0xff] %vm353_vm2, %v2956_v25  ;;  %3457 = vrot.lane.b32.xlu0 %v3071_v6, %s5160_s23  ;;  %3359 = vrot.lane.b32.xlu1 %v7400_v35, %s5159_s22 }
 0x587   : > { %3461 = vrot.lane.b32.xlu2 %v7404_v51, %s5160_s23 }
 0x588   : > { %v7487_v26 = vpop.permute.xlu2 %3337 }
 0x589   : > { %v2893_v48 = vpop.f32.mrf.mxu3  ;;  %9022 = vst [vmem:[#allocation8_spill] sm:$0xff] %v7487_v26 }
 0x58a   : > { %v2894_v30 = vadd.f32 %v7072_v54, %v2893_v48 }
 0x58c   : > { %v2957_v23 = vmax.f32 %v2894_v30, 0.0  ;;  %v7497_v30 = vpop.permute.xlu1 %3329 }
 0x58d   : > { %v7411_v10 = vld [vmem:[#allocation3 + $0xc9] sm:$0xff] }
 0x58e   : > { %2990 = vst.msk [vmem:[#allocation3 + $0xd9] sm:$0xff] %vm353_vm2, %v2957_v23  ;;  %3463 = vrot.lane.b32.xlu0 %v7413_v31, %s5160_s23  ;;  %3465 = vrot.lane.b32.xlu1 %v7415_v55, %s5160_s23  ;;  %v3086_v8 = vld [vmem:[#allocation3 + $0xc2] sm:$0xff]  ;;  %v3087_v45 = vld [vmem:[#allocation3 + $0xca] sm:$0xff] }
 0x58f   : > { %3361 = vrot.lane.b32.xlu2 %v7411_v10, %s5159_s22 }
 0x591   : > { %v2896_v20 = vpop.f32.mrf.mxu3 }
 0x592   : > { %v2897_v7 = vadd.f32 %v7072_v54, %v2896_v20 }
 0x594   : > { %v2958_v58 = vmax.f32 %v2897_v7, 0.0 }
 0x595   : > { %v7425_v39 = vld [vmem:[#allocation3 + $0xd9] sm:$0xff] }
 0x596   : > { %2991 = vst.msk [vmem:[#allocation3 + $0xe1] sm:$0xff] %vm353_vm2, %v2958_v58  ;;  %3363 = vrot.lane.b32.xlu0 %v7425_v39, %s5159_s22  ;;  %3471 = vrot.lane.b32.xlu1 %v7427_v49, %s5160_s23  ;;  %v7499_v58 = vpop.permute.xlu0 %3327 }
 0x597   : > { %3467 = vrot.lane.b32.xlu2 %v7430_v36, %s5160_s23 }
 0x599   : > { %v2899_v3 = vpop.f32.mrf.mxu3 }
 0x59a   : > { %v2900_v43 = vadd.f32 %v7072_v54, %v2899_v3 }
 0x59c   : > { %v2959_v5 = vmax.f32 %v2900_v43, 0.0 }
 0x59d   : > { %v7441_v18 = vld [vmem:[#allocation3 + $0xe1] sm:$0xff] }
 0x59e   : > { %2992 = vst.msk [vmem:[#allocation3 + $0xf1] sm:$0xff] %vm353_vm2, %v2959_v5  ;;  %3469 = vrot.lane.b32.xlu0 %v7439_v19, %s5160_s23  ;;  %3365 = vrot.lane.b32.xlu1 %v7441_v18, %s5159_s22  ;;  %v3088_v3 = vld [vmem:[#allocation3 + $0xda] sm:$0xff] }
 0x59f   : > { %3473 = vrot.lane.b32.xlu2 %v7444_v56, %s5160_s23 }
 0x5a0   : > { %v7494_v6 = vpop.permute.xlu2 %3343 }
 0x5a1   : > { %v2902_v2 = vpop.f32.mrf.mxu3  ;;  %9023 = vst [vmem:[#allocation14_spill] sm:$0xff] %v7494_v6  ;;  %v7648_v6 = vld [vmem:[#allocation3 + $0xb0] sm:$0xff] }
 0x5a2   : > { %v2903_v44 = vadd.f32 %v7072_v54, %v2902_v2 }
 0x5a4   : > { %v2960_v41 = vmax.f32 %v2903_v44, 0.0 }
 0x5a5   : > { %v7453_v52 = vld [vmem:[#allocation3 + $0xf1] sm:$0xff] }
 0x5a6   : > { %2993 = vst.msk [vmem:[#allocation3 + $0xf9] sm:$0xff] %vm353_vm2, %v2960_v41  ;;  %3475 = vrot.lane.b32.xlu0 %v7455_v1, %s5160_s23  ;;  %3477 = vrot.lane.b32.xlu1 %v7457_v53, %s5160_s23  ;;  %v3089_v41 = vld [vmem:[#allocation3 + $0xe2] sm:$0xff] }
 0x5a7   : > { %3367 = vrot.lane.b32.xlu2 %v7453_v52, %s5159_s22 }
 0x5a9   : > { %v2905_v47 = vpop.f32.mrf.mxu3 }
 0x5aa   : > { %v2906_v38 = vadd.f32 %v7072_v54, %v2905_v47 }
 0x5ac   : > { %v2961_v57 = vmax.f32 %v2906_v38, 0.0  ;;  %v7508_v38 = vpop.permute.xlu1 %3335 }
 0x5ad   : > { %v7467_v24 = vld [vmem:[#allocation3 + $0xf9] sm:$0xff]  ;;  %9025 = vst [vmem:[#allocation13_spill] sm:$0xff] %v7508_v38 }
 0x5ae   : > { %2994 = vst.msk [vmem:[#allocation3 + $0x109] sm:$0xff] %vm353_vm2, %v2961_v57  ;;  %3369 = vrot.lane.b32.xlu0 %v7467_v24, %s5159_s22  ;;  %3483 = vrot.lane.b32.xlu1 %v3084_v14, %s5160_s23  ;;  %v3090_v7 = vld [vmem:[#allocation3 + $0xf2] sm:$0xff]  ;;  %v3091_v57 = vld [vmem:[#allocation3 + $0xfa] sm:$0xff]  ;;  %v7514_v14 = vpop.permute.xlu0 %3333 }
 0x5af   : > { %3479 = vrot.lane.b32.xlu2 %v7470_v11, %s5160_s23  ;;  %v7684_v26 = vld [vmem:[#allocation3 + $0xf8] sm:$0xff] }
 0x5b0   : > { %9060 = vst [vmem:[#allocation42_spill] sm:$0xff] %v7684_v26 }
 0x5b1   : > { %v2908_v59 = vpop.f32.mrf.mxu3 }
 0x5b2   : > { %v2909_v13 = vadd.f32 %v7072_v54, %v2908_v59 }
 0x5b4   : > { %v2962_v33 = vmax.f32 %v2909_v13, 0.0 }
 0x5b5   : > { %v3060_v15 = vld [vmem:[#allocation3 + $0x109] sm:$0xff] }
 0x5b6   : > { %2995 = vst.msk [vmem:[#allocation3 + $0x111] sm:$0xff] %vm353_vm2, %v2962_v33  ;;  %3481 = vrot.lane.b32.xlu0 %v7480_v0, %s5160_s23  ;;  %3371 = vrot.lane.b32.xlu1 %v3060_v15, %s5159_s22  ;;  %v7700_v38 = vld [vmem:[#allocation3 + $0x108] sm:$0xff] }
 0x5b7   : > { %3485 = vrot.lane.b32.xlu2 %v3085_v29, %s5160_s23  ;;  %9065 = vst [vmem:[#allocation53_spill] sm:$0xff] %v7700_v38 }
 0x5b8   : > { %v7505_v43 = vpop.permute.xlu2 %3349 }
 0x5b9   : > { %v2911_v63 = vpop.f32.mrf.mxu3  ;;  %9024 = vst [vmem:[#allocation6_spill] sm:$0xff] %v7505_v43  ;;  %v7593_v43 = vld [vmem:[#allocation3 + $0x48] sm:$0xff] }
 0x5ba   : > { %v2912_v22 = vadd.f32 %v7072_v54, %v2911_v63 }
 0x5bc   : > { %v2963_v32 = vmax.f32 %v2912_v22, 0.0 }
 0x5bd   : > { %v3061_v17 = vld [vmem:[#allocation3 + $0x111] sm:$0xff] }
 0x5be   : > { %2996 = vst.msk [vmem:[#allocation3 + $0x121] sm:$0xff] %vm353_vm2, %v2963_v32  ;;  %3487 = vrot.lane.b32.xlu0 %v3086_v8, %s5160_s23  ;;  %3489 = vrot.lane.b32.xlu1 %v3087_v45, %s5160_s23  ;;  %v3092_v63 = vld [vmem:[#allocation3 + $0x10a] sm:$0xff]  ;;  %v3093_v22 = vld [vmem:[#allocation3 + $0x112] sm:$0xff]  ;;  %v7519_v32 = vpop.permute.xlu1 %3341 }
 0x5bf   : > { %3373 = vrot.lane.b32.xlu2 %v3061_v17, %s5159_s22  ;;  %9027 = vst [vmem:[#allocation17_spill] sm:$0xff] %v7519_v32  ;;  %v7525_v17 = vpop.permute.xlu0 %3339  ;;  %v7664_v32 = vld [vmem:[#allocation3 + $0xc0] sm:$0xff] }
 0x5c0   : > { %9028 = vst [vmem:[#allocation18_spill] sm:$0xff] %v7525_v17  ;;  %v7668_v17 = vld [vmem:[#allocation3 + $0xc8] sm:$0xff] }
 0x5c1   : > { %v2914_v25 = vpop.f32.mrf.mxu3 }
 0x5c2   : > { %v2915_v48 = vadd.f32 %v7072_v54, %v2914_v25 }
 0x5c4   : > { %v2964_v23 = vmax.f32 %v2915_v48, 0.0 }
 0x5c5   : > { %v3062_v20 = vld [vmem:[#allocation3 + $0x121] sm:$0xff] }
 0x5c6   : > { %2997 = vst.msk [vmem:[#allocation3 + $0x129] sm:$0xff] %vm353_vm2, %v2964_v23  ;;  %3375 = vrot.lane.b32.xlu0 %v3062_v20, %s5159_s22  ;;  %3495 = vrot.lane.b32.xlu1 %v3090_v7, %s5160_s23 }
 0x5c7   : > { %3491 = vrot.lane.b32.xlu2 %v3088_v3, %s5160_s23 }
 0x5c8   : > { %v7530_v7 = vpop.permute.xlu1 %3347 }
 0x5c9   : > { %v2917_v5 = vpop.f32.mrf.mxu3  ;;  %9029 = vst [vmem:[#allocation29_spill] sm:$0xff] %v7530_v7  ;;  %v7630_v7 = vld [vmem:[#allocation3 + $0x90] sm:$0xff] }
 0x5ca   : > { %v2918_v2 = vadd.f32 %v7072_v54, %v2917_v5  ;;  %v7536_v5 = vpop.permute.xlu0 %3345 }
 0x5cb   : > { %9030 = vst [vmem:[#allocation9_spill] sm:$0xff] %v7536_v5 }
 0x5cc   : > { %v2965_v44 = vmax.f32 %v2918_v2, 0.0 }
 0x5cd   : > { %v3063_v47 = vld [vmem:[#allocation3 + $0x129] sm:$0xff] }
 0x5ce   : > { %2998 = vst.msk [vmem:[#allocation3 + $0x139] sm:$0xff] %vm353_vm2, %v2965_v44  ;;  %3493 = vrot.lane.b32.xlu0 %v3089_v41, %s5160_s23  ;;  %3377 = vrot.lane.b32.xlu1 %v3063_v47, %s5159_s22  ;;  %v3094_v3 = vld [vmem:[#allocation3 + $0x122] sm:$0xff] }
 0x5cf   : > { %3497 = vrot.lane.b32.xlu2 %v3091_v57, %s5160_s23  ;;  %v3095_v57 = vld [vmem:[#allocation3 + $0x12a] sm:$0xff] }
 0x5d0   : > { %v7516_v59 = vpop.permute.xlu2 %3355 }
 0x5d1   : > { %9026 = vst [vmem:[#allocation11_spill] sm:$0xff] %v7516_v59  ;;  %v2920_v13 = vpop.f32.mrf.mxu3 }
 0x5d2   : > { %v2921_v33 = vadd.f32 %v7072_v54, %v2920_v13 }
 0x5d4   : > { %v2966_v15 = vmax.f32 %v2921_v33, 0.0 }
 0x5d5   : > { %v3064_v29 = vld [vmem:[#allocation3 + $0x139] sm:$0xff] }
 0x5d6   : > { %2999 = vst.msk [vmem:[#allocation3 + $0x141] sm:$0xff] %vm353_vm2, %v2966_v15  ;;  %3499 = vrot.lane.b32.xlu0 %v3092_v63, %s5160_s23  ;;  %3501 = vrot.lane.b32.xlu1 %v3093_v22, %s5160_s23 }
 0x5d7   : > { %3379 = vrot.lane.b32.xlu2 %v3064_v29, %s5159_s22 }
 0x5d8   : > { %v7547_v29 = vpop.permute.xlu0 %3351 }
 0x5d9   : > { %v7527_v8 = vpop.permute.xlu2 %3455  ;;  %v2923_v45 = vpop.f32.mrf.mxu3  ;;  %9033 = vst [vmem:[#allocation10_spill] sm:$0xff] %v7547_v29  ;;  %v7591_v29 = vld [vmem:[#allocation3 + $0x30] sm:$0xff] }
 0x5da   : > { %v2924_v25 = vadd.f32 %v7072_v54, %v2923_v45 }
 0x5dc   : > { %v2967_v48 = vmax.f32 %v2924_v25, 0.0 }
 0x5dd   : > { %v3065_v23 = vld [vmem:[#allocation3 + $0x141] sm:$0xff] }
 0x5de   : > { %v3096_v20 = vld [vmem:[#allocation3 + $0x13a] sm:$0xff]  ;;  %3000 = vst.msk [vmem:[#allocation3 + $0x151] sm:$0xff] %vm353_vm2, %v2967_v48  ;;  %3381 = vrot.lane.b32.xlu0 %v3065_v23, %s5159_s22  ;;  %v3097_v15 = vld [vmem:[#allocation3 + $0x142] sm:$0xff] }
 0x5df   : > { %3507 = vrot.lane.b32.xlu1 %v3096_v20, %s5160_s23  ;;  %3503 = vrot.lane.b32.xlu2 %v3094_v3, %s5160_s23 }
 0x5e0   : > { %v7541_v33 = vpop.permute.xlu1 %3353 }
 0x5e1   : > { %v7538_v2 = vpop.permute.xlu2 %3461  ;;  %v2926_v44 = vpop.f32.mrf.mxu3  ;;  %9032 = vst [vmem:[#allocation31_spill] sm:$0xff] %v7541_v33 }
 0x5e2   : > { %9031 = vst [vmem:[#allocation26_spill] sm:$0xff] %v7538_v2  ;;  %v2927_v41 = vadd.f32 %v7072_v54, %v2926_v44  ;;  %v7704_v2 = vld [vmem:[#allocation3 + $0x110] sm:$0xff] }
 0x5e3   : > { %9067 = vst [vmem:[#allocation52_spill] sm:$0xff] %v7704_v2 }
 0x5e4   : > { %v2968_v47 = vmax.f32 %v2927_v41, 0.0 }
 0x5e5   : > { %v3066_v13 = vld [vmem:[#allocation3 + $0x151] sm:$0xff] }
 0x5e6   : > { %3001 = vst.msk [vmem:[#allocation3 + $0x159] sm:$0xff] %vm353_vm2, %v2968_v47  ;;  %3505 = vrot.lane.b32.xlu0 %v3095_v57, %s5160_s23 }
 0x5e7   : > { %3383 = vrot.lane.b32.xlu1 %v3066_v13, %s5159_s22  ;;  %3509 = vrot.lane.b32.xlu2 %v3097_v15, %s5160_s23  ;;  %v7563_v13 = vld [vmem:[#allocation3 + $0x18] sm:$0xff] }
 0x5e9   : > { %v7549_v63 = vpop.permute.xlu2 %3361  ;;  %v2929_v22 = vpop.f32.mrf.mxu3 }
 0x5ea   : > { %9034 = vst [vmem:[#allocation21_spill] sm:$0xff] %v7549_v63  ;;  %v2930_v45 = vadd.f32 %v7072_v54, %v2929_v22  ;;  %v7556_v3 = vpop.permute.xlu1 %3459  ;;  %v7565_v22 = vld [vmem:[#allocation3 + $0x20] sm:$0xff] }
 0x5eb   : > { %9037 = vst [vmem:[#allocation25_spill] sm:$0xff] %v7565_v22 }
 0x5ec   : > { %v2969_v25 = vmax.f32 %v2930_v45, 0.0 }
 0x5ed   : > { %v3067_v48 = vld [vmem:[#allocation3 + $0x159] sm:$0xff] }
 0x5ee   : > { %v3098_v23 = vld [vmem:[#allocation3 + $0x152] sm:$0xff]  ;;  %v3099_v20 = vld [vmem:[#allocation3 + $0x15a] sm:$0xff]  ;;  %3002 = vst.msk [vmem:[#allocation3 + $0x169] sm:$0xff] %vm353_vm2, %v2969_v25 }
 0x5ef   : > { %3511 = vrot.lane.b32.xlu0 %v3098_v23, %s5160_s23  ;;  %3513 = vrot.lane.b32.xlu1 %v3099_v20, %s5160_s23 }
 0x5f0   : > { %3385 = vrot.lane.b32.xlu2 %v3067_v48, %s5159_s22  ;;  %v7558_v44 = vpop.permute.xlu0 %3357 }
 0x5f1   : > { %9035 = vst [vmem:[#allocation7_spill] sm:$0xff] %v7558_v44  ;;  %v7560_v41 = vpop.permute.xlu2 %3467  ;;  %v2932_v47 = vpop.f32.mrf.mxu3 }
 0x5f2   : > { %9036 = vst [vmem:[#allocation23_spill] sm:$0xff] %v7560_v41  ;;  %v2933_v57 = vadd.f32 %v7072_v54, %v2932_v47  ;;  %v7666_v41 = vld [vmem:[#allocation3 + $0xd8] sm:$0xff] }
 0x5f3   : > { %9055 = vst [vmem:[#allocation45_spill] sm:$0xff] %v7666_v41 }
 0x5f4   : > { %v2970_v15 = vmax.f32 %v2933_v57, 0.0 }
 0x5f5   : > { %v3068_v45 = vld [vmem:[#allocation3 + $0x169] sm:$0xff] }
 0x5f6   : > { %3003 = vst.msk [vmem:[#allocation3 + $0x171] sm:$0xff] %vm353_vm2, %v2970_v15 }
 0x5f7   : > { %3583 = vrot.lane.b32.xlu1 %v7563_v13, %s5166_s13  ;;  %3387 = vrot.lane.b32.xlu0 %v3068_v45, %s5159_s22 }
 0x5f8   : > { %3585 = vrot.lane.b32.xlu2 %v7565_v22, %s5166_s13  ;;  %v7573_v25 = vpop.permute.xlu0 %3457  ;;  %v7575_v48 = vpop.permute.xlu1 %3359 }
 0x5f9   : > { %9038 = vst [vmem:[#allocation16_spill] sm:$0xff] %v7575_v48  ;;  %v7577_v23 = vpop.permute.xlu2 %3473  ;;  %v2935_v20 = vpop.f32.mrf.mxu3 }
 0x5fa   : > { %9039 = vst [vmem:[#allocation15_spill] sm:$0xff] %v7577_v23  ;;  %v2936_v47 = vadd.f32 %v7072_v54, %v2935_v20  ;;  %v7632_v23 = vld [vmem:[#allocation3 + $0x80] sm:$0xff] }
 0x5fc   : > { %v2971_v57 = vmax.f32 %v2936_v47, 0.0 }
 0x5fd   : > { %v3100_v63 = vld [vmem:[#allocation3 + $0x16a] sm:$0xff]  ;;  %v3101_v44 = vld [vmem:[#allocation3 + $0x172] sm:$0xff] }
 0x5fe   : > { %v3069_v59 = vld [vmem:[#allocation3 + $0x171] sm:$0xff]  ;;  %3004 = vst.msk [vmem:[#allocation3 + $0x181] sm:$0xff] %vm353_vm2, %v2971_v57 }
 0x5ff   : > { %3517 = vrot.lane.b32.xlu0 %v3101_v44, %s5160_s23  ;;  %3389 = vrot.lane.b32.xlu1 %v3069_v59, %s5159_s22  ;;  %v7595_v57 = vld [vmem:[#allocation3 + $0x38] sm:$0xff]  ;;  %v7612_v44 = vld [vmem:[#allocation3 + $0x68] sm:$0xff]  ;;  %v3131_v22 = vld [vmem:[#allocation3 + $0x170] sm:$0xff] }
 0x600   : > { %3515 = vrot.lane.b32.xlu2 %v3100_v63, %s5160_s23  ;;  %v7584_v15 = vpop.permute.xlu0 %3463  ;;  %v7586_v45 = vpop.permute.xlu1 %3465  ;;  %v7610_v63 = vld [vmem:[#allocation3 + $0x50] sm:$0xff] }
 0x601   : > { %9040 = vst [vmem:[#allocation22_spill] sm:$0xff] %v7584_v15  ;;  %v7588_v48 = vpop.permute.xlu2 %3367  ;;  %v2938_v33 = vpop.f32.mrf.mxu3  ;;  %v7686_v15 = vld [vmem:[#allocation3 + $0xf0] sm:$0xff] }
 0x602   : > { %9041 = vst [vmem:[#allocation41_spill] sm:$0xff] %v7586_v45  ;;  %v2939_v20 = vadd.f32 %v7072_v54, %v2938_v33  ;;  %v7682_v45 = vld [vmem:[#allocation3 + $0xe0] sm:$0xff] }
 0x603   : > { %9042 = vst [vmem:[#allocation43_spill] sm:$0xff] %v7588_v48 }
 0x604   : > { %v2972_v47 = vmax.f32 %v2939_v20, 0.0  ;;  %v7614_v20 = vld [vmem:[#allocation3 + $0x60] sm:$0xff]  ;;  %9059 = vst [vmem:[#allocation35_spill] sm:$0xff] %v7682_v45 }
 0x605   : > { %9061 = vst [vmem:[#allocation59_spill] sm:$0xff] %v7686_v15 }
 0x606   : > { %3005 = vst.msk [vmem:[#allocation3 + $0x189] sm:$0xff] %vm353_vm2, %v2972_v47 }
 0x607   : > { %3587 = vrot.lane.b32.xlu0 %v7591_v29, %s5166_s13  ;;  %3589 = vrot.lane.b32.xlu1 %v7595_v57, %s5166_s13 }
 0x608   : > { %3591 = vrot.lane.b32.xlu2 %v7593_v43, %s5166_s13  ;;  %v7604_v59 = vpop.permute.xlu0 %3363  ;;  %v7606_v54 = vpop.permute.xlu1 %3471 }
 0x609   : > { %9043 = vst [vmem:[#allocation19_spill] sm:$0xff] %v7604_v59  ;;  %v7608_v33 = vpop.permute.xlu2 %3479 }
 0x60a   : > { %9044 = vst [vmem:[#allocation32_spill] sm:$0xff] %v7606_v54  ;;  %v7646_v54 = vld [vmem:[#allocation3 + $0x98] sm:$0xff] }
 0x60b   : > { %9045 = vst [vmem:[#allocation12_spill] sm:$0xff] %v7608_v33  ;;  %v7628_v33 = vld [vmem:[#allocation3 + $0x78] sm:$0xff] }
 0x60f   : > { %3593 = vrot.lane.b32.xlu0 %v7610_v63, %s5166_s13  ;;  %3595 = vrot.lane.b32.xlu1 %v7614_v20, %s5166_s13 }
 0x610   : > { %3597 = vrot.lane.b32.xlu2 %v7612_v44, %s5166_s13  ;;  %v7622_v47 = vpop.permute.xlu0 %3469  ;;  %v7624_v48 = vpop.permute.xlu1 %3365 }
 0x611   : > { %9046 = vst [vmem:[#allocation40_spill] sm:$0xff] %v7622_v47  ;;  %v7626_v59 = vpop.permute.xlu2 %3485  ;;  %v7650_v47 = vld [vmem:[#allocation3 + $0xa8] sm:$0xff] }
 0x612   : > { %9047 = vst [vmem:[#allocation20_spill] sm:$0xff] %v7624_v48 }
 0x613   : > { %9048 = vst [vmem:[#allocation37_spill] sm:$0xff] %v7626_v59 }
 0x617   : > { %3599 = vrot.lane.b32.xlu0 %v7628_v33, %s5166_s13  ;;  %3601 = vrot.lane.b32.xlu1 %v7632_v23, %s5166_s13 }
 0x618   : > { %3603 = vrot.lane.b32.xlu2 %v7630_v7, %s5166_s13  ;;  %v7640_v5 = vpop.permute.xlu0 %3475  ;;  %v7642_v48 = vpop.permute.xlu1 %3477 }
 0x619   : > { %9049 = vst [vmem:[#allocation33_spill] sm:$0xff] %v7640_v5  ;;  %v7644_v59 = vpop.permute.xlu2 %3373 }
 0x61a   : > { %9050 = vst [vmem:[#allocation47_spill] sm:$0xff] %v7642_v48 }
 0x61b   : > { %9051 = vst [vmem:[#allocation27_spill] sm:$0xff] %v7644_v59 }
 0x61f   : > { %3605 = vrot.lane.b32.xlu0 %v7646_v54, %s5166_s13  ;;  %3607 = vrot.lane.b32.xlu1 %v7650_v47, %s5166_s13 }
 0x620   : > { %3609 = vrot.lane.b32.xlu2 %v7648_v6, %s5166_s13  ;;  %v7658_v5 = vpop.permute.xlu0 %3369  ;;  %v7660_v48 = vpop.permute.xlu1 %3483 }
 0x621   : > { %9052 = vst [vmem:[#allocation38_spill] sm:$0xff] %v7658_v5  ;;  %v7662_v59 = vpop.permute.xlu2 %3491 }
 0x622   : > { %9053 = vst [vmem:[#allocation55_spill] sm:$0xff] %v7660_v48 }
 0x623   : > { %9054 = vst [vmem:[#allocation28_spill] sm:$0xff] %v7662_v59 }
 0x627   : > { %3611 = vrot.lane.b32.xlu0 %v7664_v32, %s5166_s13  ;;  %3613 = vrot.lane.b32.xlu1 %v7668_v17, %s5166_s13 }
 0x628   : > { %3615 = vrot.lane.b32.xlu2 %v7666_v41, %s5166_s13  ;;  %v7676_v5 = vpop.permute.xlu0 %3481  ;;  %v7678_v48 = vpop.permute.xlu1 %3371  ;;  %v7702_v41 = vld [vmem:[#allocation3 + $0x120] sm:$0xff] }
 0x629   : > { %9056 = vst [vmem:[#allocation24_spill] sm:$0xff] %v7676_v5  ;;  %v7680_v59 = vpop.permute.xlu2 %3497 }
 0x62a   : > { %9057 = vst [vmem:[#allocation44_spill] sm:$0xff] %v7678_v48 }
 0x62b   : > { %9058 = vst [vmem:[#allocation46_spill] sm:$0xff] %v7680_v59 }
 0x62c   : > { %9066 = vst [vmem:[#allocation30_spill] sm:$0xff] %v7702_v41 }
 0x62f   : > { %3617 = vrot.lane.b32.xlu0 %v7682_v45, %s5166_s13  ;;  %3619 = vrot.lane.b32.xlu1 %v7686_v15, %s5166_s13  ;;  %v7718_v15 = vld [vmem:[#allocation3 + $0x128] sm:$0xff]  ;;  %v3032_v45 = vld [vmem:[#allocation3 + $0x138] sm:$0xff] }
 0x630   : > { %3621 = vrot.lane.b32.xlu2 %v7684_v26, %s5166_s13  ;;  %v7694_v5 = vpop.permute.xlu0 %3487  ;;  %v7696_v48 = vpop.permute.xlu1 %3489  ;;  %v3127_v26 = vld [vmem:[#allocation3 + $0x140] sm:$0xff]  ;;  %9071 = vst [vmem:[#allocation71_spill] sm:$0xff] %v7718_v15 }
 0x631   : > { %9062 = vst [vmem:[#allocation61_spill] sm:$0xff] %v7694_v5  ;;  %v7698_v59 = vpop.permute.xlu2 %3379 }
 0x632   : > { %9063 = vst [vmem:[#allocation34_spill] sm:$0xff] %v7696_v48 }
 0x633   : > { %9064 = vst [vmem:[#allocation39_spill] sm:$0xff] %v7698_v59 }
 0x637   : > { %3623 = vrot.lane.b32.xlu0 %v7700_v38, %s5166_s13  ;;  %3625 = vrot.lane.b32.xlu1 %v7704_v2, %s5166_s13  ;;  %v3128_v38 = vld [vmem:[#allocation3 + $0x150] sm:$0xff] }
 0x638   : > { %3627 = vrot.lane.b32.xlu2 %v7702_v41, %s5166_s13  ;;  %v7712_v5 = vpop.permute.xlu0 %3375  ;;  %v7714_v48 = vpop.permute.xlu1 %3495 }
 0x639   : > { %9068 = vst [vmem:[#allocation50_spill] sm:$0xff] %v7712_v5  ;;  %v7716_v59 = vpop.permute.xlu2 %3503 }
 0x63a   : > { %9069 = vst [vmem:[#allocation57_spill] sm:$0xff] %v7714_v48  ;;  %v3130_v48 = vld [vmem:[#allocation3 + $0x168] sm:$0xff] }
 0x63b   : > { %9070 = vst [vmem:[#allocation58_spill] sm:$0xff] %v7716_v59  ;;  %v3129_v59 = vld [vmem:[#allocation3 + $0x158] sm:$0xff] }
 0x63f   : > { %3629 = vrot.lane.b32.xlu0 %v7718_v15, %s5166_s13  ;;  %3631 = vrot.lane.b32.xlu1 %v3032_v45, %s5166_s13 }
 0x640   : > { %3633 = vrot.lane.b32.xlu2 %v3127_v26, %s5166_s13  ;;  %v7724_v41 = vpop.permute.xlu0 %3493  ;;  %v7726_v2 = vpop.permute.xlu1 %3377 }
 0x641   : > { %9072 = vst [vmem:[#allocation48_spill] sm:$0xff] %v7724_v41  ;;  %v7728_v5 = vpop.permute.xlu2 %3509  ;;  %v3133_v41 = vld [vmem:[#allocation3 + $0x188] sm:$0xff] }
 0x642   : > { %9073 = vst [vmem:[#allocation68_spill] sm:$0xff] %v7726_v2  ;;  %v3236_v2 = vld [vmem:[#allocation3 + $0x69] sm:$0xff] }
 0x643   : > { %9074 = vst [vmem:[#allocation73_spill] sm:$0xff] %v7728_v5  ;;  %v3132_v5 = vld [vmem:[#allocation3 + $0x180] sm:$0xff] }
 0x647   : > { %3635 = vrot.lane.b32.xlu0 %v3128_v38, %s5166_s13  ;;  %3637 = vrot.lane.b32.xlu1 %v3129_v59, %s5166_s13 }
 0x648   : > { %3639 = vrot.lane.b32.xlu2 %v3130_v48, %s5166_s13  ;;  %v7733_v26 = vpop.permute.xlu0 %3499  ;;  %v7735_v15 = vpop.permute.xlu1 %3501 }
 0x649   : > { %9075 = vst [vmem:[#allocation49_spill] sm:$0xff] %v7733_v26 }
 0x64a   : > { %9076 = vst [vmem:[#allocation63_spill] sm:$0xff] %v7735_v15  ;;  %v7737_v45 = vpop.permute.xlu2 %3385  ;;  %v3238_v15 = vld [vmem:[#allocation3 + $0x81] sm:$0xff] }
 0x64b   : > { %9077 = vst [vmem:[#allocation36_spill] sm:$0xff] %v7737_v45  ;;  %v3233_v45 = vld [vmem:[#allocation3 + $0x49] sm:$0xff] }
 0x64f   : > { %3641 = vrot.lane.b32.xlu0 %v3131_v22, %s5166_s13  ;;  %3643 = vrot.lane.b32.xlu1 %v3132_v5, %s5166_s13 }
 0x650   : > { %3645 = vrot.lane.b32.xlu2 %v3133_v41, %s5166_s13  ;;  %v7742_v48 = vpop.permute.xlu0 %3381 }
 0x651   : > { %9078 = vst [vmem:[#allocation65_spill] sm:$0xff] %v7742_v48  ;;  %v7744_v38 = vpop.permute.xlu1 %3507 }
 0x652   : > { %9079 = vst [vmem:[#allocation67_spill] sm:$0xff] %v7744_v38  ;;  %v7746_v59 = vpop.permute.xlu2 %3585 }
 0x657   : > { %3711 = vrot.lane.b32.xlu0 %v7105_v46, %s5165_s12  ;;  %3713 = vrot.lane.b32.xlu1 %v7127_v42, %s5165_s12 }
 0x658   : > { %3715 = vrot.lane.b32.xlu2 %v7154_v61, %s5165_s12  ;;  %v7754_v41 = vpop.permute.xlu0 %3505 }
 0x659   : > { %9080 = vst [vmem:[#allocation56_spill] sm:$0xff] %v7754_v41  ;;  %v7756_v22 = vpop.permute.xlu1 %3383 }
 0x65a   : > { %9081 = vst [vmem:[#allocation54_spill] sm:$0xff] %v7756_v22  ;;  %v7758_v5 = vpop.permute.xlu2 %3515 }
 0x65b   : > { %9082 = vst [vmem:[#allocation64_spill] sm:$0xff] %v7758_v5 }
 0x65f   : > { %3717 = vrot.lane.b32.xlu0 %v7172_v34, %s5165_s12  ;;  %3719 = vrot.lane.b32.xlu1 %v7194_v27, %s5165_s12 }
 0x660   : > { %3721 = vrot.lane.b32.xlu2 %v7218_v21, %s5165_s12 }
 0x661   : > { %v7766_v61 = vpop.permute.xlu0 %3511  ;;  %v7768_v46 = vpop.permute.xlu1 %3513 }
 0x662   : > { %9083 = vst [vmem:[#allocation83_spill] sm:$0xff] %v7766_v61  ;;  %v7770_v42 = vpop.permute.xlu2 %3591 }
 0x663   : > { %9084 = vst [vmem:[#allocation85_spill] sm:$0xff] %v7768_v46 }
 0x667   : > { %3723 = vrot.lane.b32.xlu0 %v7238_v60, %s5165_s12  ;;  %3725 = vrot.lane.b32.xlu1 %v7260_v62, %s5165_s12 }
 0x668   : > { %3727 = vrot.lane.b32.xlu2 %v7286_v12, %s5165_s12 }
 0x669   : > { %v7778_v21 = vpop.permute.xlu1 %3583  ;;  %v7782_v27 = vpop.permute.xlu0 %3387 }
 0x66a   : > { %v7780_v34 = vpop.permute.xlu2 %3597  ;;  %9085 = vst [vmem:[#allocation60_spill] sm:$0xff] %v7782_v27 }
 0x66f   : > { %3729 = vrot.lane.b32.xlu0 %v7304_v9, %s5165_s12  ;;  %3731 = vrot.lane.b32.xlu1 %v7326_v16, %s5165_s12 }
 0x670   : > { %3733 = vrot.lane.b32.xlu2 %v7352_v4, %s5165_s12 }
 0x671   : > { %v7792_v60 = vpop.permute.xlu0 %3517  ;;  %v7794_v62 = vpop.permute.xlu1 %3389 }
 0x672   : > { %v7790_v12 = vpop.permute.xlu2 %3603  ;;  %9086 = vst [vmem:[#allocation74_spill] sm:$0xff] %v7792_v60  ;;  %v3231_v60 = vld [vmem:[#allocation3 + $0x31] sm:$0xff] }
 0x673   : > { %9087 = vst [vmem:[#allocation51_spill] sm:$0xff] %v7794_v62  ;;  %v3232_v62 = vld [vmem:[#allocation3 + $0x39] sm:$0xff] }
 0x677   : > { %3735 = vrot.lane.b32.xlu0 %v7374_v40, %s5165_s12  ;;  %3737 = vrot.lane.b32.xlu1 %v7392_v28, %s5165_s12 }
 0x678   : > { %3739 = vrot.lane.b32.xlu2 %v7400_v35, %s5165_s12 }
 0x679   : > { %v7804_v9 = vpop.permute.xlu0 %3587  ;;  %v7806_v16 = vpop.permute.xlu1 %3589 }
 0x67a   : > { %v7802_v4 = vpop.permute.xlu2 %3609 }
 0x67f   : > { %3741 = vrot.lane.b32.xlu0 %v7411_v10, %s5165_s12  ;;  %3743 = vrot.lane.b32.xlu1 %v7425_v39, %s5165_s12 }
 0x680   : > { %3745 = vrot.lane.b32.xlu2 %v7441_v18, %s5165_s12 }
 0x681   : > { %v7816_v40 = vpop.permute.xlu0 %3593  ;;  %v7818_v28 = vpop.permute.xlu1 %3595 }
 0x682   : > { %v7814_v35 = vpop.permute.xlu2 %3615 }
 0x683   : > { %9088 = vst [vmem:[#allocation82_spill] sm:$0xff] %v7814_v35  ;;  %v3006_v35 = vld [vmem:[#allocation3] sm:$0xff] }
 0x687   : > { %3747 = vrot.lane.b32.xlu0 %v7453_v52, %s5165_s12  ;;  %3749 = vrot.lane.b32.xlu1 %v7467_v24, %s5165_s12 }
 0x688   : > { %3839 = vrot.lane.b32.xlu2 %v7380_v50, %s5167_s26 }
 0x689   : > { %v7828_v10 = vpop.permute.xlu0 %3599  ;;  %v7830_v39 = vpop.permute.xlu1 %3601 }
 0x68a   : > { %v7826_v18 = vpop.permute.xlu2 %3621 }
 0x68b   : > { %9089 = vst [vmem:[#allocation62_spill] sm:$0xff] %v7826_v18 }
 0x68f   : > { %3967 = vrot.lane.b32.xlu0 %v7591_v29, %s5161_s24  ;;  %4095 = vrot.lane.b32.xlu1 %v3231_v60, %s5168_s19 }
 0x690   : > { %4223 = vrot.lane.b32.xlu2 %v7413_v31, %s5169_s27 }
 0x691   : > { %v7839_v52 = vpop.permute.xlu0 %3605  ;;  %v7841_v24 = vpop.permute.xlu1 %3607 }
 0x692   : > { %v7837_v50 = vpop.permute.xlu2 %3627 }
 0x693   : > { %9090 = vst [vmem:[#allocation79_spill] sm:$0xff] %v7837_v50 }
 0x697   : > { %3841 = vrot.lane.b32.xlu0 %v7404_v51, %s5167_s26  ;;  %3969 = vrot.lane.b32.xlu1 %v7595_v57, %s5161_s24 }
 0x698   : > { %4097 = vrot.lane.b32.xlu2 %v3232_v62, %s5168_s19 }
 0x699   : > { %v7850_v27 = vpop.permute.xlu0 %3611  ;;  %v7852_v60 = vpop.permute.xlu1 %3613 }
 0x69a   : > { %v7848_v5 = vpop.permute.xlu2 %3633  ;;  %9092 = vst [vmem:[#allocation89_spill] sm:$0xff] %v7852_v60 }
 0x69b   : > { %9091 = vst [vmem:[#allocation75_spill] sm:$0xff] %v7848_v5 }
 0x69f   : > { %4225 = vrot.lane.b32.xlu0 %v7415_v55, %s5169_s27  ;;  %3843 = vrot.lane.b32.xlu1 %v7413_v31, %s5167_s26 }
 0x6a0   : > { %3971 = vrot.lane.b32.xlu2 %v7593_v43, %s5161_s24 }
 0x6a1   : > { %v7862_v51 = vpop.permute.xlu0 %3617  ;;  %v7864_v46 = vpop.permute.xlu1 %3619 }
 0x6a2   : > { %v7860_v62 = vpop.permute.xlu2 %3639  ;;  %9094 = vst [vmem:[#allocation80_spill] sm:$0xff] %v7862_v51 }
 0x6a3   : > { %9093 = vst [vmem:[#allocation69_spill] sm:$0xff] %v7860_v62  ;;  %v3234_v62 = vld [vmem:[#allocation3 + $0x51] sm:$0xff] }
 0x6a4   : > { %9095 = vst [vmem:[#allocation97_spill] sm:$0xff] %v7864_v46 }
 0x6a7   : > { %4099 = vrot.lane.b32.xlu0 %v3233_v45, %s5168_s19  ;;  %4227 = vrot.lane.b32.xlu1 %v7430_v36, %s5169_s27 }
 0x6a8   : > { %3845 = vrot.lane.b32.xlu2 %v7415_v55, %s5167_s26 }
 0x6a9   : > { %v7873_v22 = vpop.permute.xlu0 %3623  ;;  %v7875_v31 = vpop.permute.xlu1 %3625 }
 0x6aa   : > { %v7871_v61 = vpop.permute.xlu2 %3645  ;;  %9097 = vst [vmem:[#allocation87_spill] sm:$0xff] %v7873_v22  ;;  %v4576_v22 = vld [vmem:[%s8682_s7 + $0x8] sm:$0xff] }
 0x6ab   : > { %9096 = vst [vmem:[#allocation70_spill] sm:$0xff] %v7871_v61  ;;  %v3235_v61 = vld [vmem:[#allocation3 + $0x61] sm:$0xff] }
 0x6ac   : > { %9098 = vst [vmem:[#allocation66_spill] sm:$0xff] %v7875_v31 }
 0x6af   : > { %3973 = vrot.lane.b32.xlu0 %v7610_v63, %s5161_s24  ;;  %4101 = vrot.lane.b32.xlu1 %v3234_v62, %s5168_s19 }
 0x6b0   : > { %4229 = vrot.lane.b32.xlu2 %v7439_v19, %s5169_s27 }
 0x6b1   : > { %v7884_v45 = vpop.permute.xlu0 %3629  ;;  %v7886_v48 = vpop.permute.xlu1 %3631 }
 0x6b2   : > { %v7882_v55 = vpop.permute.xlu2 %3715  ;;  %9099 = vst [vmem:[#allocation86_spill] sm:$0xff] %v7884_v45  ;;  %v4582_v45 = vld [vmem:[%s8682_s7 + $0x38] sm:$0xff] }
 0x6b3   : > { %9100 = vst [vmem:[#allocation88_spill] sm:$0xff] %v7886_v48  ;;  %v4583_v48 = vld [vmem:[%s8682_s7 + $0x40] sm:$0xff] }
 0x6b4   : > { %4691 = vmatpush.msrb.mxu0 %v4583_v48 }
 0x6b6   : > { %4692 = vmatpush.msrb.mxu0 %v4582_v45  ;;  %v4578_v45 = vld [vmem:[%s8682_s7 + $0x18] sm:$0xff] }
 0x6b7   : > { %3847 = vrot.lane.b32.xlu0 %v7430_v36, %s5167_s26  ;;  %3975 = vrot.lane.b32.xlu1 %v7614_v20, %s5161_s24 }
 0x6b8   : > { %4103 = vrot.lane.b32.xlu2 %v3235_v61, %s5168_s19 }
 0x6b9   : > { %v7895_v5 = vpop.permute.xlu0 %3635  ;;  %v7897_v62 = vpop.permute.xlu1 %3637 }
 0x6ba   : > { %v7893_v38 = vpop.permute.xlu2 %3721  ;;  %9101 = vst [vmem:[#allocation77_spill] sm:$0xff] %v7895_v5 }
 0x6bb   : > { %9102 = vst [vmem:[#allocation84_spill] sm:$0xff] %v7897_v62 }
 0x6bf   : > { %4231 = vrot.lane.b32.xlu0 %v7427_v49, %s5169_s27  ;;  %3849 = vrot.lane.b32.xlu1 %v7439_v19, %s5167_s26 }
 0x6c0   : > { %3977 = vrot.lane.b32.xlu2 %v7612_v44, %s5161_s24 }
 0x6c1   : > { %v7907_v36 = vpop.permute.xlu0 %3641  ;;  %v7909_v41 = vpop.permute.xlu1 %3643 }
 0x6c2   : > { %v7905_v61 = vpop.permute.xlu2 %3727  ;;  %9103 = vst [vmem:[#allocation101_spill] sm:$0xff] %v7907_v36 }
 0x6c3   : > { %9104 = vst [vmem:[#allocation103_spill] sm:$0xff] %v7909_v41  ;;  %v3237_v41 = vld [vmem:[#allocation3 + $0x79] sm:$0xff] }
 0x6c7   : > { %4105 = vrot.lane.b32.xlu0 %v3236_v2, %s5168_s19  ;;  %4233 = vrot.lane.b32.xlu1 %v7444_v56, %s5169_s27 }
 0x6c8   : > { %3851 = vrot.lane.b32.xlu2 %v7427_v49, %s5167_s26 }
 0x6c9   : > { %v7918_v5 = vpop.permute.xlu0 %3711  ;;  %v7920_v19 = vpop.permute.xlu1 %3713 }
 0x6ca   : > { %v7916_v62 = vpop.permute.xlu2 %3733 }
 0x6cf   : > { %3979 = vrot.lane.b32.xlu0 %v7628_v33, %s5161_s24  ;;  %4107 = vrot.lane.b32.xlu1 %v3237_v41, %s5168_s19  ;;  %v4581_v41 = vld [vmem:[%s8682_s7 + $0x30] sm:$0xff] }
 0x6d0   : > { %4235 = vrot.lane.b32.xlu2 %v7455_v1, %s5169_s27  ;;  %4693 = vmatpush.msrb.mxu0 %v4581_v41  ;;  %v4577_v41 = vld [vmem:[%s8682_s7 + $0x10] sm:$0xff] }
 0x6d1   : > { %v7929_v2 = vpop.permute.xlu0 %3717  ;;  %v7931_v36 = vpop.permute.xlu1 %3719 }
 0x6d2   : > { %v7927_v49 = vpop.permute.xlu2 %3739 }
 0x6d3   : > { %9105 = vst [vmem:[#allocation76_spill] sm:$0xff] %v7927_v49  ;;  %v3242_v49 = vld [vmem:[#allocation3 + $0xb1] sm:$0xff] }
 0x6d7   : > { %3853 = vrot.lane.b32.xlu0 %v7444_v56, %s5167_s26  ;;  %3981 = vrot.lane.b32.xlu1 %v7632_v23, %s5161_s24  ;;  %v4579_v56 = vld [vmem:[%s8682_s7 + $0x20] sm:$0xff] }
 0x6d8   : > { %4109 = vrot.lane.b32.xlu2 %v3238_v15, %s5168_s19  ;;  %v4580_v15 = vld [vmem:[%s8682_s7 + $0x28] sm:$0xff] }
 0x6d9   : > { %v7949_v26 = vpop.permute.xlu0 %3723  ;;  %v7951_v48 = vpop.permute.xlu1 %3725  ;;  %4694 = vmatpush.msrb.mxu0 %v4580_v15 }
 0x6da   : > { %v7947_v50 = vpop.permute.xlu2 %3745 }
 0x6db   : > { %9106 = vst [vmem:[#allocation81_spill] sm:$0xff] %v7947_v50  ;;  %4695 = vmatpush.msrb.mxu0 %v4579_v56  ;;  %v3176_v50 = vld [vmem:[#allocation3 + $0x92] sm:$0xff] }
 0x6dd   : > { %4696 = vmatpush.msrb.mxu0 %v4578_v45  ;;  %v3239_v45 = vld [vmem:[#allocation3 + $0x91] sm:$0xff] }
 0x6df   : > { %4237 = vrot.lane.b32.xlu0 %v7457_v53, %s5169_s27  ;;  %3855 = vrot.lane.b32.xlu1 %v7455_v1, %s5167_s26  ;;  %v4575_v53 = vld [vmem:[%s8682_s7] sm:$0xff]  ;;  %v3175_v1 = vld [vmem:[#allocation3 + $0x82] sm:$0xff] }
 0x6e0   : > { %3983 = vrot.lane.b32.xlu2 %v7630_v7, %s5161_s24  ;;  %4697 = vmatpush.msrb.mxu0 %v4577_v41 }
 0x6e1   : > { %v7971_v56 = vpop.permute.xlu0 %3729  ;;  %v7973_v31 = vpop.permute.xlu1 %3731 }
 0x6e2   : > { %v3840_v15 = vpop.permute.xlu2 %3839  ;;  %4698 = vmatpush.msrb.mxu0 %v4576_v22  ;;  %v3240_v22 = vld [vmem:[#allocation3 + $0x99] sm:$0xff] }
 0x6e4   : > { %4699 = vmatpush.msrb.mxu0 %v4575_v53 }
 0x6e7   : > { %4111 = vrot.lane.b32.xlu0 %v3239_v45, %s5168_s19  ;;  %4239 = vrot.lane.b32.xlu1 %v7470_v11, %s5169_s27  ;;  %v3241_v11 = vld [vmem:[#allocation3 + $0xa9] sm:$0xff] }
 0x6e8   : > { %3857 = vrot.lane.b32.xlu2 %v3175_v1, %s5167_s26 }
 0x6e9   : > { %v7985_v18 = vpop.permute.xlu0 %3735  ;;  %v7987_v46 = vpop.permute.xlu1 %3737 }
 0x6ea   : > { %v4224_v41 = vpop.permute.xlu2 %4223 }
 0x6ef   : > { %3985 = vrot.lane.b32.xlu0 %v7646_v54, %s5161_s24  ;;  %4113 = vrot.lane.b32.xlu1 %v3240_v22, %s5168_s19  ;;  %v4319_v22 = vsel %vm353_vm2, %v3006_v35, %v7499_v58 }
 0x6f0   : > { %4241 = vrot.lane.b32.xlu2 %v7480_v0, %s5169_s27 }
 0x6f1   : > { %v7994_v1 = vpop.permute.xlu0 %3741  ;;  %v7996_v45 = vpop.permute.xlu1 %3743 }
 0x6f2   : > { %v4098_v53 = vpop.permute.xlu2 %4097  ;;  %9107 = vst [vmem:[#allocation95_spill] sm:$0xff] %v7994_v1  ;;  %v3273_v1 = vld [vmem:[#allocation3 + $0xaa] sm:$0xff] }
 0x6f3   : > { %9108 = vst [vmem:[#allocation72_spill] sm:$0xff] %v7996_v45  ;;  %v4351_v45 = vsel %vm2487_vm5, %v4319_v22, %v7527_v8 }
 0x6f7   : > { %3859 = vrot.lane.b32.xlu0 %v3176_v50, %s5167_s26  ;;  %3987 = vrot.lane.b32.xlu1 %v7650_v47, %s5161_s24  ;;  %v3177_v50 = vld [vmem:[#allocation3 + $0x9a] sm:$0xff] }
 0x6f8   : > { %4115 = vrot.lane.b32.xlu2 %v3241_v11, %s5168_s19  ;;  %v4383_v11 = vsel %vm2520_vm6, %v4351_v45, %v7778_v21  ;;  %v3007_v45 = vld [vmem:[#allocation3 + $0x8] sm:$0xff] }
 0x6f9   : > { %v8002_v51 = vpop.permute.xlu0 %3747  ;;  %v8004_v60 = vpop.permute.xlu1 %3749 }
 0x6fa   : > { %v3972_v0 = vpop.permute.xlu2 %3971  ;;  %9109 = vst [vmem:[#allocation94_spill] sm:$0xff] %v8002_v51  ;;  %v4415_v51 = vsel %vm2553_vm7, %v4383_v11, %v7918_v5  ;;  %v4320_v5 = vsel %vm353_vm2, %v3007_v45, %v7497_v30 }
 0x6fb   : > { %9110 = vst [vmem:[#allocation92_spill] sm:$0xff] %v8004_v60  ;;  %v4447_v58 = vsel %vm2586_vm9, %v4415_v51, %v3840_v15  ;;  %v3274_v51 = vld [vmem:[#allocation3 + $0xb2] sm:$0xff] }
 0x6ff   : > { %4243 = vrot.lane.b32.xlu0 %v3273_v1, %s5169_s27  ;;  %3861 = vrot.lane.b32.xlu1 %v3177_v50, %s5167_s26 }
 0x700   : > { %3989 = vrot.lane.b32.xlu2 %v7648_v6, %s5161_s24 }
 0x701   : > { %v3968_v60 = vpop.permute.xlu0 %3967  ;;  %v4096_v22 = vpop.permute.xlu1 %4095 }
 0x702   : > { %v3846_v35 = vpop.permute.xlu2 %3845  ;;  %v4479_v8 = vsel %vm2619_vm8, %v4447_v58, %v3968_v60  ;;  %v4352_v60 = vsel %vm2487_vm5, %v4320_v5, %v7573_v25  ;;  %v3243_v25 = vld [vmem:[#allocation3 + $0xc1] sm:$0xff] }
 0x703   : > { %v4511_v21 = vsel %vm2652_vm10, %v4479_v8, %v4096_v22  ;;  %v4384_v15 = vsel %vm2520_vm6, %v4352_v60, %v7746_v59  ;;  %v3244_v60 = vld [vmem:[#allocation3 + $0xc9] sm:$0xff] }
 0x704   : > { %v4543_v6 = vsel %vm2685_vm12, %v4511_v21, %v4224_v41  ;;  %v4416_v50 = vsel %vm2553_vm7, %v4384_v15, %v7920_v19  ;;  %v4321_v19 = vsel %vm353_vm2, %v7563_v13, %v7477_v37 }
 0x705   : > { %4980 = vmatmul.msk.f32.vlgmr.msrb.gmra.mxu0 %vm2731_vm11, %v4543_v6  ;;  %v4353_v6 = vsel %vm2487_vm5, %v4321_v19, %v7556_v3 }
 0x707   : > { %4117 = vrot.lane.b32.xlu0 %v3242_v49, %s5168_s19  ;;  %4245 = vrot.lane.b32.xlu1 %v3274_v51, %s5169_s27  ;;  %v3275_v49 = vld [vmem:[#allocation3 + $0xc2] sm:$0xff] }
 0x708   : > { %3863 = vrot.lane.b32.xlu2 %v3273_v1, %s5167_s26 }
 0x709   : > { %v3842_v11 = vpop.permute.xlu0 %3841  ;;  %v3970_v58 = vpop.permute.xlu1 %3969 }
 0x70a   : > { %v4230_v41 = vpop.permute.xlu2 %4229  ;;  %v4448_v30 = vsel %vm2586_vm9, %v4416_v50, %v3842_v11 }
 0x70b   : > { %v4480_v1 = vsel %vm2619_vm8, %v4448_v30, %v3970_v58  ;;  %v9112_v58 = vld [vmem:[#allocation26_spill] sm:$0xff]  ;;  %v3276_v30 = vld [vmem:[#allocation3 + $0xca] sm:$0xff] }
 0x70c   : > { %v4512_v22 = vsel %vm2652_vm10, %v4480_v1, %v4098_v53 }
 0x70f   : > { %3991 = vrot.lane.b32.xlu0 %v7664_v32, %s5161_s24  ;;  %4119 = vrot.lane.b32.xlu1 %v3243_v25, %s5168_s19  ;;  %v4385_v32 = vsel %vm2520_vm6, %v4353_v6, %v7804_v9  ;;  %v9114_v6 = vld [vmem:[#allocation13_spill] sm:$0xff] }
 0x710   : > { %4247 = vrot.lane.b32.xlu2 %v3275_v49, %s5169_s27  ;;  %v4417_v5 = vsel %vm2553_vm7, %v4385_v32, %v7882_v55  ;;  %v9111_v55 = vld [vmem:[#allocation25_spill] sm:$0xff] }
 0x711   : > { %v4226_v8 = vpop.permute.xlu0 %4225  ;;  %v3844_v21 = vpop.permute.xlu1 %3843  ;;  %v4322_v50 = vsel %vm353_vm2, %v9111_v55, %v7514_v14 }
 0x712   : > { %v4104_v59 = vpop.permute.xlu2 %4103  ;;  %v4544_v45 = vsel %vm2685_vm12, %v4512_v22, %v4226_v8  ;;  %v4449_v53 = vsel %vm2586_vm9, %v4417_v5, %v3844_v21 }
 0x713   : > { %4981 = vmatmul.msk.f32.gmra.mxu0 %vm2731_vm11, %v4544_v45  ;;  %v4481_v13 = vsel %vm2619_vm8, %v4449_v53, %v3972_v0  ;;  %v9113_v0 = vld [vmem:[#allocation45_spill] sm:$0xff] }
 0x714   : > { %v3245_v45 = vld [vmem:[#allocation3 + $0xd9] sm:$0xff] }
 0x717   : > { %3865 = vrot.lane.b32.xlu0 %v3274_v51, %s5167_s26  ;;  %3993 = vrot.lane.b32.xlu1 %v7668_v17, %s5161_s24  ;;  %v4354_v51 = vsel %vm2487_vm5, %v4322_v50, %v9112_v58  ;;  %v9117_v58 = vld [vmem:[#allocation8_spill] sm:$0xff] }
 0x718   : > { %4121 = vrot.lane.b32.xlu2 %v3244_v60, %s5168_s19  ;;  %v4386_v17 = vsel %vm2520_vm6, %v4354_v51, %v7806_v16 }
 0x719   : > { %v4100_v3 = vpop.permute.xlu0 %4099  ;;  %v4228_v9 = vpop.permute.xlu1 %4227  ;;  %v4418_v1 = vsel %vm2553_vm7, %v4386_v17, %v7929_v2  ;;  %v4323_v2 = vsel %vm353_vm2, %v7591_v29, %v9114_v6  ;;  %v9118_v17 = vld [vmem:[#allocation41_spill] sm:$0xff] }
 0x71a   : > { %v3978_v37 = vpop.permute.xlu2 %3977  ;;  %v4513_v15 = vsel %vm2652_vm10, %v4481_v13, %v4100_v3  ;;  %v4450_v25 = vsel %vm2586_vm9, %v4418_v1, %v3846_v35  ;;  %v3277_v35 = vld [vmem:[#allocation3 + $0xda] sm:$0xff] }
 0x71b   : > { %v4545_v11 = vsel %vm2685_vm12, %v4513_v15, %v4228_v9  ;;  %v3278_v15 = vld [vmem:[#allocation3 + $0xe2] sm:$0xff] }
 0x71c   : > { %4982 = vmatmul.msk.f32.gmra.mxu0 %vm2731_vm11, %v4545_v11  ;;  %v9116_v9 = vld [vmem:[#allocation35_spill] sm:$0xff] }
 0x71d   : > { %v3246_v11 = vld [vmem:[#allocation3 + $0xe1] sm:$0xff] }
 0x71f   : > { %4249 = vrot.lane.b32.xlu0 %v3276_v30, %s5169_s27  ;;  %3867 = vrot.lane.b32.xlu1 %v3275_v49, %s5167_s26  ;;  %v9115_v49 = vld [vmem:[#allocation22_spill] sm:$0xff] }
 0x720   : > { %3995 = vrot.lane.b32.xlu2 %v9113_v0, %s5161_s24  ;;  %v4355_v32 = vsel %vm2487_vm5, %v4323_v2, %v9115_v49  ;;  %v9121_v2 = vld [vmem:[#allocation23_spill] sm:$0xff]  ;;  %v3279_v49 = vld [vmem:[#allocation3 + $0xf2] sm:$0xff] }
 0x721   : > { %v3974_v8 = vpop.permute.xlu0 %3973  ;;  %v4102_v19 = vpop.permute.xlu1 %4101 }
 0x722   : > { %v3852_v14 = vpop.permute.xlu2 %3851  ;;  %v4482_v22 = vsel %vm2619_vm8, %v4450_v25, %v3974_v8  ;;  %v3247_v8 = vld [vmem:[#allocation3 + $0xf1] sm:$0xff] }
 0x723   : > { %v4514_v21 = vsel %vm2652_vm10, %v4482_v22, %v4102_v19 }
 0x724   : > { %v4546_v16 = vsel %vm2685_vm12, %v4514_v21, %v4230_v41  ;;  %v4387_v41 = vsel %vm2520_vm6, %v4355_v32, %v7770_v42 }
 0x725   : > { %4983 = vmatmul.msk.f32.gmra.mxu0 %vm2731_vm11, %v4546_v16  ;;  %v4419_v60 = vsel %vm2553_vm7, %v4387_v41, %v7931_v36  ;;  %v4324_v36 = vsel %vm353_vm2, %v7595_v57, %v9117_v58  ;;  %v9119_v57 = vld [vmem:[#allocation59_spill] sm:$0xff] }
 0x726   : > { %v4356_v0 = vsel %vm2487_vm5, %v4324_v36, %v9118_v17  ;;  %v3281_v17 = vld [vmem:[#allocation3 + $0x10a] sm:$0xff] }
 0x727   : > { %4123 = vrot.lane.b32.xlu0 %v3245_v45, %s5168_s19  ;;  %4251 = vrot.lane.b32.xlu1 %v3277_v35, %s5169_s27  ;;  %v4388_v1 = vsel %vm2520_vm6, %v4356_v0, %v7816_v40  ;;  %v9125_v0 = vld [vmem:[#allocation53_spill] sm:$0xff] }
 0x728   : > { %3869 = vrot.lane.b32.xlu2 %v3276_v30, %s5167_s26  ;;  %v4420_v25 = vsel %vm2553_vm7, %v4388_v1, %v7893_v38  ;;  %v9120_v38 = vld [vmem:[#allocation18_spill] sm:$0xff]  ;;  %v3249_v1 = vld [vmem:[#allocation3 + $0x109] sm:$0xff] }
 0x729   : > { %v3848_v53 = vpop.permute.xlu0 %3847  ;;  %v3976_v3 = vpop.permute.xlu1 %3975  ;;  %v4325_v6 = vsel %vm353_vm2, %v7593_v43, %v9120_v38  ;;  %v3250_v38 = vld [vmem:[#allocation3 + $0x111] sm:$0xff] }
 0x72a   : > { %v4236_v5 = vpop.permute.xlu2 %4235  ;;  %v4451_v29 = vsel %vm2586_vm9, %v4419_v60, %v3848_v53 }
 0x72b   : > { %v4483_v13 = vsel %vm2619_vm8, %v4451_v29, %v3976_v3 }
 0x72c   : > { %v4515_v50 = vsel %vm2652_vm10, %v4483_v13, %v4104_v59 }
 0x72f   : > { %3997 = vrot.lane.b32.xlu0 %v9116_v9, %s5161_s24  ;;  %4125 = vrot.lane.b32.xlu1 %v3246_v11, %s5168_s19  ;;  %v3248_v9 = vld [vmem:[#allocation3 + $0xf9] sm:$0xff] }
 0x730   : > { %4253 = vrot.lane.b32.xlu2 %v3278_v15, %s5169_s27  ;;  %v9123_v11 = vld [vmem:[#allocation17_spill] sm:$0xff] }
 0x731   : > { %v4232_v55 = vpop.permute.xlu0 %4231  ;;  %v3850_v51 = vpop.permute.xlu1 %3849 }
 0x732   : > { %v4110_v42 = vpop.permute.xlu2 %4109  ;;  %v4547_v30 = vsel %vm2685_vm12, %v4515_v50, %v4232_v55  ;;  %v4452_v59 = vsel %vm2586_vm9, %v4420_v25, %v3850_v51 }
 0x733   : > { %4984 = vmatmul.msk.f32.gmra.mxu0 %vm2731_vm11, %v4547_v30  ;;  %v4484_v21 = vsel %vm2619_vm8, %v4452_v59, %v3978_v37  ;;  %v9122_v37 = vld [vmem:[#allocation42_spill] sm:$0xff] }
 0x737   : > { %3871 = vrot.lane.b32.xlu0 %v3277_v35, %s5167_s26  ;;  %3999 = vrot.lane.b32.xlu1 %v9119_v57, %s5161_s24  ;;  %v4357_v35 = vsel %vm2487_vm5, %v4325_v6, %v9121_v2 }
 0x738   : > { %4127 = vrot.lane.b32.xlu2 %v3247_v8, %s5168_s19  ;;  %v4389_v32 = vsel %vm2520_vm6, %v4357_v35, %v7818_v28  ;;  %v9126_v8 = vld [vmem:[#allocation14_spill] sm:$0xff] }
 0x739   : > { %v4106_v19 = vpop.permute.xlu0 %4105  ;;  %v4234_v40 = vpop.permute.xlu1 %4233  ;;  %v4421_v41 = vsel %vm2553_vm7, %v4389_v32, %v7949_v26  ;;  %v4326_v26 = vsel %vm353_vm2, %v7610_v63, %v9123_v11 }
 0x73a   : > { %v3984_v22 = vpop.permute.xlu2 %3983  ;;  %v4516_v16 = vsel %vm2652_vm10, %v4484_v21, %v4106_v19  ;;  %v4453_v53 = vsel %vm2586_vm9, %v4421_v41, %v3852_v14  ;;  %v3280_v14 = vld [vmem:[#allocation3 + $0xfa] sm:$0xff]  ;;  %v9127_v21 = vld [vmem:[#allocation32_spill] sm:$0xff]  ;;  %v9130_v41 = vld [vmem:[#allocation15_spill] sm:$0xff] }
 0x73b   : > { %v4548_v45 = vsel %vm2685_vm12, %v4516_v16, %v4234_v40 }
 0x73c   : > { %4985 = vmatmul.msk.f32.gmra.mxu0 %vm2731_vm11, %v4548_v45 }
 0x73f   : > { %4255 = vrot.lane.b32.xlu0 %v3279_v49, %s5169_s27  ;;  %3873 = vrot.lane.b32.xlu1 %v3278_v15, %s5167_s26  ;;  %v9124_v15 = vld [vmem:[#allocation40_spill] sm:$0xff] }
 0x740   : > { %4001 = vrot.lane.b32.xlu2 %v9122_v37, %s5161_s24  ;;  %v4358_v55 = vsel %vm2487_vm5, %v4326_v26, %v9124_v15  ;;  %v3283_v26 = vld [vmem:[#allocation3 + $0x122] sm:$0xff] }
 0x741   : > { %v3980_v60 = vpop.permute.xlu0 %3979  ;;  %v4108_v29 = vpop.permute.xlu1 %4107  ;;  %v3251_v15 = vld [vmem:[#allocation3 + $0x121] sm:$0xff] }
 0x742   : > { %v3858_v43 = vpop.permute.xlu2 %3857  ;;  %v4485_v3 = vsel %vm2619_vm8, %v4453_v53, %v3980_v60  ;;  %v3282_v60 = vld [vmem:[#allocation3 + $0x112] sm:$0xff] }
 0x743   : > { %v4517_v13 = vsel %vm2652_vm10, %v4485_v3, %v4108_v29 }
 0x744   : > { %v4549_v28 = vsel %vm2685_vm12, %v4517_v13, %v4236_v5  ;;  %v4390_v5 = vsel %vm2520_vm6, %v4358_v55, %v7780_v34  ;;  %v9133_v55 = vld [vmem:[#allocation33_spill] sm:$0xff] }
 0x745   : > { %4986 = vmatmul.msk.f32.gmra.mxu0 %vm2731_vm11, %v4549_v28  ;;  %v4422_v36 = vsel %vm2553_vm7, %v4390_v5, %v7951_v48  ;;  %v4327_v48 = vsel %vm353_vm2, %v7614_v20, %v9126_v8  ;;  %v9128_v20 = vld [vmem:[#allocation52_spill] sm:$0xff] }
 0x746   : > { %v4359_v16 = vsel %vm2487_vm5, %v4327_v48, %v9127_v21  ;;  %v9136_v48 = vld [vmem:[#allocation47_spill] sm:$0xff] }
 0x747   : > { %4129 = vrot.lane.b32.xlu0 %v3248_v9, %s5168_s19  ;;  %4257 = vrot.lane.b32.xlu1 %v3280_v14, %s5169_s27  ;;  %v4391_v40 = vsel %vm2520_vm6, %v4359_v16, %v7828_v10  ;;  %v3252_v16 = vld [vmem:[#allocation3 + $0x129] sm:$0xff] }
 0x748   : > { %3875 = vrot.lane.b32.xlu2 %v3279_v49, %s5167_s26  ;;  %v4423_v45 = vsel %vm2553_vm7, %v4391_v40, %v7905_v61  ;;  %v9129_v61 = vld [vmem:[#allocation9_spill] sm:$0xff] }
 0x749   : > { %v3854_v58 = vpop.permute.xlu0 %3853  ;;  %v3982_v51 = vpop.permute.xlu1 %3981  ;;  %v4328_v37 = vsel %vm353_vm2, %v7612_v44, %v9129_v61  ;;  %v8247_v61 = vld [vmem:[%s8683_s8] ss:$0 sm:$0xff] }
 0x74a   : > { %v4242_v50 = vpop.permute.xlu2 %4241  ;;  %v4454_v63 = vsel %vm2586_vm9, %v4422_v36, %v3854_v58  ;;  %v4360_v53 = vsel %vm2487_vm5, %v4328_v37, %v9130_v41 }
 0x74b   : > { %v4486_v30 = vsel %vm2619_vm8, %v4454_v63, %v3982_v51  ;;  %v4392_v3 = vsel %vm2520_vm6, %v4360_v53, %v7830_v39 }
 0x74c   : > { %v4518_v59 = vsel %vm2652_vm10, %v4486_v30, %v4110_v42 }
 0x74f   : > { %4003 = vrot.lane.b32.xlu0 %v9125_v0, %s5161_s24  ;;  %4131 = vrot.lane.b32.xlu1 %v3249_v1, %s5168_s19 }
 0x750   : > { %4259 = vrot.lane.b32.xlu2 %v3281_v17, %s5169_s27 }
 0x751   : > { %v4238_v25 = vpop.permute.xlu0 %4237  ;;  %v3856_v57 = vpop.permute.xlu1 %3855 }
 0x752   : > { %v4116_v34 = vpop.permute.xlu2 %4115  ;;  %v4550_v19 = vsel %vm2685_vm12, %v4518_v59, %v4238_v25  ;;  %v4455_v42 = vsel %vm2586_vm9, %v4423_v45, %v3856_v57  ;;  %v9135_v25 = vld [vmem:[#allocation6_spill] sm:$0xff] }
 0x753   : > { %4987 = vmatmul.msk.f32.gmra.mxu0 %vm2731_vm11, %v4550_v19  ;;  %v4487_v35 = vsel %vm2619_vm8, %v4455_v42, %v3984_v22  ;;  %v4424_v22 = vsel %vm2553_vm7, %v4392_v3, %v7971_v56 }
 0x754   : > { %v4456_v29 = vsel %vm2586_vm9, %v4424_v22, %v3858_v43  ;;  %v9132_v43 = vld [vmem:[#allocation30_spill] sm:$0xff] }
 0x757   : > { %3877 = vrot.lane.b32.xlu0 %v3280_v14, %s5167_s26  ;;  %4005 = vrot.lane.b32.xlu1 %v9128_v20, %s5161_s24  ;;  %v9131_v14 = vld [vmem:[#allocation29_spill] sm:$0xff]  ;;  %v9137_v20 = vld [vmem:[#allocation10_spill] sm:$0xff] }
 0x758   : > { %4133 = vrot.lane.b32.xlu2 %v3250_v38, %s5168_s19  ;;  %v4329_v56 = vsel %vm353_vm2, %v7628_v33, %v9131_v14 }
 0x759   : > { %v4112_v2 = vpop.permute.xlu0 %4111  ;;  %v4240_v10 = vpop.permute.xlu1 %4239  ;;  %v4361_v5 = vsel %vm2487_vm5, %v4329_v56, %v9133_v55 }
 0x75a   : > { %v3990_v6 = vpop.permute.xlu2 %3989  ;;  %v4519_v49 = vsel %vm2652_vm10, %v4487_v35, %v4112_v2  ;;  %v4331_v2 = vsel %vm353_vm2, %v7630_v7, %v9137_v20  ;;  %v9138_v35 = vld [vmem:[#allocation12_spill] sm:$0xff]  ;;  %v9145_v20 = vld [vmem:[#allocation37_spill] sm:$0xff] }
 0x75b   : > { %v4551_v32 = vsel %vm2685_vm12, %v4519_v49, %v4240_v10  ;;  %v4363_v49 = vsel %vm2487_vm5, %v4331_v2, %v9138_v35  ;;  %v3253_v10 = vld [vmem:[#allocation3 + $0x139] sm:$0xff]  ;;  %v3255_v35 = vld [vmem:[#allocation3 + $0x151] sm:$0xff] }
 0x75c   : > { %4988 = vmatmul.msk.f32.gmra.mxu0 %vm2731_vm11, %v4551_v32  ;;  %v4395_v32 = vsel %vm2520_vm6, %v4363_v49, %v7841_v24 }
 0x75d   : > { %v4427_v7 = vsel %vm2553_vm7, %v4395_v32, %v7985_v18  ;;  %v9147_v32 = vld [vmem:[#allocation95_spill] sm:$0xff] }
 0x75f   : > { %4261 = vrot.lane.b32.xlu0 %v3282_v60, %s5169_s27  ;;  %3751 = vrot.lane.b32.xlu1 %v3249_v1, %s5165_s12 }
 0x760   : > { %3879 = vrot.lane.b32.xlu2 %v3281_v17, %s5167_s26  ;;  %v9134_v17 = vld [vmem:[#allocation71_spill] sm:$0xff] }
 0x761   : > { %v3986_v44 = vpop.permute.xlu0 %3985  ;;  %v4114_v9 = vpop.permute.xlu1 %4113 }
 0x762   : > { %v3864_v13 = vpop.permute.xlu2 %3863  ;;  %v4488_v28 = vsel %vm2619_vm8, %v4456_v29, %v3986_v44  ;;  %v3285_v44 = vld [vmem:[#allocation3 + $0x13a] sm:$0xff] }
 0x763   : > { %v4520_v11 = vsel %vm2652_vm10, %v4488_v28, %v4114_v9  ;;  %v4459_v37 = vsel %vm2586_vm9, %v4427_v7, %v3864_v13  ;;  %v9139_v28 = vld [vmem:[#allocation31_spill] sm:$0xff] }
 0x764   : > { %v4552_v39 = vsel %vm2685_vm12, %v4520_v11, %v4242_v50  ;;  %v4393_v50 = vsel %vm2520_vm6, %v4361_v5, %v7790_v12  ;;  %v4332_v9 = vsel %vm353_vm2, %v7646_v54, %v9139_v28  ;;  %v9140_v11 = vld [vmem:[#allocation24_spill] sm:$0xff]  ;;  %v3286_v5 = vld [vmem:[#allocation3 + $0x142] sm:$0xff] }
 0x765   : > { %4989 = vmatmul.msk.f32.gmra.mxu0 %vm2731_vm11, %v4552_v39  ;;  %v4425_v51 = vsel %vm2553_vm7, %v4393_v50, %v7973_v31  ;;  %v4330_v31 = vsel %vm353_vm2, %v7632_v23, %v9135_v25  ;;  %v3284_v23 = vld [vmem:[#allocation3 + $0x12a] sm:$0xff]  ;;  %v4364_v39 = vsel %vm2487_vm5, %v4332_v9, %v9140_v11  ;;  %v3222_v50 = vld [vmem:[#allocation3 + $0x140] sm:$0xff]  ;;  %v3224_v11 = vld [vmem:[#allocation3 + $0x158] sm:$0xff] }
 0x766   : > { %v4362_v57 = vsel %vm2487_vm5, %v4330_v31, %v9136_v48  ;;  %v5133_v28 = vld [vmem:[#allocation3 + $0xc0] sm:$0xff]  ;;  %v9148_v9 = vld [vmem:[#allocation16_spill] sm:$0xff] }
 0x767   : > { %4007 = vrot.lane.b32.xlu0 %v9132_v43, %s5161_s24  ;;  %4135 = vrot.lane.b32.xlu1 %v3251_v15, %s5168_s19  ;;  %v4394_v19 = vsel %vm2520_vm6, %v4362_v57, %v7839_v52 }
 0x768   : > { %4263 = vrot.lane.b32.xlu2 %v3283_v26, %s5169_s27  ;;  %v4426_v21 = vsel %vm2553_vm7, %v4394_v19, %v7916_v62 }
 0x769   : > { %v3860_v36 = vpop.permute.xlu0 %3859  ;;  %v3988_v33 = vpop.permute.xlu1 %3987 }
 0x76a   : > { %v4248_v58 = vpop.permute.xlu2 %4247  ;;  %v4457_v63 = vsel %vm2586_vm9, %v4425_v51, %v3860_v36 }
 0x76b   : > { %v4489_v30 = vsel %vm2619_vm8, %v4457_v63, %v3988_v33  ;;  %v9141_v63 = vld [vmem:[#allocation11_spill] sm:$0xff] }
 0x76c   : > { %v4521_v1 = vsel %vm2652_vm10, %v4489_v30, %v4116_v34  ;;  %v4333_v30 = vsel %vm353_vm2, %v7650_v47, %v9141_v63  ;;  %v3223_v47 = vld [vmem:[#allocation3 + $0x150] sm:$0xff] }
 0x76f   : > { %3753 = vrot.lane.b32.xlu0 %v3250_v38, %s5165_s12  ;;  %3881 = vrot.lane.b32.xlu1 %v3282_v60, %s5167_s26 }
 0x770   : > { %4009 = vrot.lane.b32.xlu2 %v9134_v17, %s5161_s24 }
 0x771   : > { %v4244_v12 = vpop.permute.xlu0 %4243  ;;  %v3862_v59 = vpop.permute.xlu1 %3861 }
 0x772   : > { %v8211_v0 = vpop.permute.xlu2 %4121  ;;  %v4553_v8 = vsel %vm2685_vm12, %v4521_v1, %v4244_v12  ;;  %v4458_v34 = vsel %vm2586_vm9, %v4426_v21, %v3862_v59  ;;  %v9142_v1 = vld [vmem:[#allocation55_spill] sm:$0xff] }
 0x773   : > { %4990 = vmatmul.msk.f32.gmra.mxu0 %vm2731_vm11, %v4553_v8  ;;  %v4490_v42 = vsel %vm2619_vm8, %v4458_v34, %v3990_v6  ;;  %v3221_v6 = vld [vmem:[#allocation3 + $0x138] sm:$0xff]  ;;  %v4365_v25 = vsel %vm2487_vm5, %v4333_v30, %v9142_v1  ;;  %v9143_v8 = vld [vmem:[#allocation76_spill] sm:$0xff] }
 0x774   : > { %v4397_v59 = vsel %vm2520_vm6, %v4365_v25, %v7850_v27 }
 0x775   : > { %v4429_v48 = vsel %vm2553_vm7, %v4397_v59, %v9143_v8  ;;  %v9153_v59 = vld [vmem:[#allocation34_spill] sm:$0xff] }
 0x777   : > { %4137 = vrot.lane.b32.xlu0 %v3252_v16, %s5168_s19  ;;  %4265 = vrot.lane.b32.xlu1 %v3284_v23, %s5169_s27 }
 0x778   : > { %3755 = vrot.lane.b32.xlu2 %v3251_v15, %s5165_s12 }
 0x779   : > { %v4118_v45 = vpop.permute.xlu0 %4117  ;;  %v4246_v38 = vpop.permute.xlu1 %4245 }
 0x77a   : > { %v8229_v40 = vpop.permute.xlu2 %3995  ;;  %v4522_v52 = vsel %vm2652_vm10, %v4490_v42, %v4118_v45  ;;  %v5132_v42 = vld [vmem:[#allocation3 + $0xb0] sm:$0xff] }
 0x77b   : > { %v4554_v62 = vsel %vm2685_vm12, %v4522_v52, %v4246_v38  ;;  %v9144_v52 = vld [vmem:[#allocation7_spill] sm:$0xff] }
 0x77c   : > { %4991 = vmatmul.msk.f32.gmra.mxu0 %vm2731_vm11, %v4554_v62  ;;  %v4334_v38 = vsel %vm353_vm2, %v5132_v42, %v9144_v52 }
 0x77d   : > { %v4366_v2 = vsel %vm2487_vm5, %v4334_v38, %v9145_v20 }
 0x77f   : > { %3883 = vrot.lane.b32.xlu0 %v3283_v26, %s5167_s26  ;;  %4011 = vrot.lane.b32.xlu1 %v3221_v6, %s5161_s24  ;;  %v4396_v26 = vsel %vm2520_vm6, %v4364_v39, %v7802_v4  ;;  %v9149_v39 = vld [vmem:[#allocation61_spill] sm:$0xff] }
 0x780   : > { %4139 = vrot.lane.b32.xlu2 %v3253_v10, %s5168_s19  ;;  %v4428_v43 = vsel %vm2553_vm7, %v4396_v26, %v7987_v46 }
 0x781   : > { %v3992_v24 = vpop.permute.xlu0 %3991  ;;  %v4120_v60 = vpop.permute.xlu1 %4119 }
 0x782   : > { %v8253_v41 = vpop.permute.xlu2 %3869  ;;  %v4491_v53 = vsel %vm2619_vm8, %v4459_v37, %v3992_v24  ;;  %v4701_v3 = vpop.f32.mrf.mxu0 }
 0x783   : > { %v4523_v22 = vsel %vm2652_vm10, %v4491_v53, %v4120_v60  ;;  %v4702_v29 = vadd.f32 %v8247_v61, %v4701_v3 }
 0x784   : > { %v4555_v18 = vsel %vm2685_vm12, %v4523_v22, %v4248_v58  ;;  %v3254_v58 = vld [vmem:[#allocation3 + $0x141] sm:$0xff] }
 0x785   : > { %v4797_v13 = vmax.f32 %v4702_v29, 0.0  ;;  %4992 = vmatmul.msk.f32.gmra.mxu0 %vm2731_vm11, %v4555_v18 }
 0x787   : > { %4829 = vst.msk [vmem:[%s8263_s18] sm:$0xff] %vm353_vm2, %v4797_v13  ;;  %4267 = vrot.lane.b32.xlu0 %v3285_v44, %s5169_s27  ;;  %3757 = vrot.lane.b32.xlu1 %v3252_v16, %s5165_s12 }
 0x788   : > { %3885 = vrot.lane.b32.xlu2 %v3284_v23, %s5167_s26 }
 0x789   : > { %v3866_v56 = vpop.permute.xlu0 %3865  ;;  %v3994_v54 = vpop.permute.xlu1 %3993 }
 0x78a   : > { %v4254_v14 = vpop.permute.xlu2 %4253  ;;  %v4460_v15 = vsel %vm2586_vm9, %v4428_v43, %v3866_v56 }
 0x78b   : > { %v4492_v55 = vsel %vm2619_vm8, %v4460_v15, %v3994_v54  ;;  %v9151_v15 = vld [vmem:[#allocation72_spill] sm:$0xff] }
 0x78c   : > { %v4524_v33 = vsel %vm2652_vm10, %v4492_v55, %v8211_v0 }
 0x78f   : > { %4013 = vrot.lane.b32.xlu0 %v3222_v50, %s5161_s24  ;;  %4141 = vrot.lane.b32.xlu1 %v3254_v58, %s5168_s19 }
 0x790   : > { %4269 = vrot.lane.b32.xlu2 %v3286_v5, %s5169_s27  ;;  %v4704_v4 = vpop.f32.mrf.mxu0 }
 0x791   : > { %v4705_v36 = vadd.f32 %v8247_v61, %v4704_v4  ;;  %v4250_v46 = vpop.permute.xlu0 %4249  ;;  %v3868_v17 = vpop.permute.xlu1 %3867 }
 0x792   : > { %v8287_v51 = vpop.permute.xlu2 %4127  ;;  %v4556_v12 = vsel %vm2685_vm12, %v4524_v33, %v4250_v46  ;;  %v4461_v0 = vsel %vm2586_vm9, %v4429_v48, %v3868_v17  ;;  %v5134_v17 = vld [vmem:[#allocation3 + $0xc8] sm:$0xff] }
 0x793   : > { %v4798_v31 = vmax.f32 %v4705_v36, 0.0  ;;  %4993 = vmatmul.msk.f32.gmra.mxu0 %vm2731_vm11, %v4556_v12  ;;  %v4493_v27 = vsel %vm2619_vm8, %v4461_v0, %v8229_v40  ;;  %v9146_v40 = vld [vmem:[#allocation89_spill] sm:$0xff]  ;;  %v9154_v0 = vld [vmem:[#allocation80_spill] sm:$0xff] }
 0x794   : > { %v4398_v49 = vsel %vm2520_vm6, %v4366_v2, %v9146_v40  ;;  %v9152_v12 = vld [vmem:[#allocation21_spill] sm:$0xff]  ;;  %v9156_v40 = vld [vmem:[#allocation19_spill] sm:$0xff] }
 0x795   : > { %4830 = vst.msk [vmem:[%s8263_s18 + $0x8] sm:$0xff] %vm353_vm2, %v4798_v31  ;;  %v4430_v6 = vsel %vm2553_vm7, %v4398_v49, %v9147_v32  ;;  %v4336_v1 = vsel %vm353_vm2, %v5134_v17, %v9152_v12  ;;  %v9157_v32 = vld [vmem:[#allocation28_spill] sm:$0xff]  ;;  %v3227_v17 = vld [vmem:[#allocation3 + $0x180] sm:$0xff] }
 0x796   : > { %v4462_v7 = vsel %vm2586_vm9, %v4430_v6, %v8253_v41  ;;  %v4335_v41 = vsel %vm353_vm2, %v5133_v28, %v9148_v9  ;;  %v4368_v8 = vsel %vm2487_vm5, %v4336_v1, %v9153_v59 }
 0x797   : > { %3759 = vrot.lane.b32.xlu0 %v3253_v10, %s5165_s12  ;;  %3887 = vrot.lane.b32.xlu1 %v3285_v44, %s5167_s26  ;;  %v3287_v10 = vld [vmem:[#allocation3 + $0x152] sm:$0xff]  ;;  %v4367_v26 = vsel %vm2487_vm5, %v4335_v41, %v9149_v39 }
 0x798   : > { %4015 = vrot.lane.b32.xlu2 %v3223_v47, %s5161_s24  ;;  %v3256_v44 = vld [vmem:[#allocation3 + $0x159] sm:$0xff]  ;;  %v4400_v47 = vsel %vm2520_vm6, %v4368_v8, %v9154_v0  ;;  %v3258_v39 = vld [vmem:[#allocation3 + $0x171] sm:$0xff] }
 0x799   : > { %v4124_v19 = vpop.permute.xlu0 %4123  ;;  %v4707_v34 = vpop.f32.mrf.mxu0  ;;  %v5137_v0 = vld [vmem:[#allocation3 + $0xf0] sm:$0xff] }
 0x79a   : > { %v8308_v57 = vpop.permute.xlu2 %4001  ;;  %v4525_v21 = vsel %vm2652_vm10, %v4493_v27, %v4124_v19  ;;  %v4252_v16 = vpop.permute.xlu1 %4251  ;;  %v4708_v23 = vadd.f32 %v8247_v61, %v4707_v34  ;;  %v9155_v19 = vld [vmem:[#allocation81_spill] sm:$0xff]  ;;  %v3225_v34 = vld [vmem:[#allocation3 + $0x168] sm:$0xff] }
 0x79b   : > { %v4557_v45 = vsel %vm2685_vm12, %v4525_v21, %v4252_v16  ;;  %v4432_v27 = vsel %vm2553_vm7, %v4400_v47, %v9155_v19  ;;  %v3289_v21 = vld [vmem:[#allocation3 + $0x16a] sm:$0xff] }
 0x79c   : > { %4994 = vmatmul.msk.f32.gmra.mxu0 %vm2731_vm11, %v4557_v45  ;;  %v4799_v62 = vmax.f32 %v4708_v23, 0.0  ;;  %v3257_v16 = vld [vmem:[#allocation3 + $0x169] sm:$0xff] }
 0x79d   : > { %v9164_v47 = vld [vmem:[#allocation43_spill] sm:$0xff] }
 0x79e   : > { %4831 = vst.msk [vmem:[%s8263_s18 + $0x10] sm:$0xff] %vm353_vm2, %v4799_v62  ;;  %v4339_v19 = vsel %vm353_vm2, %v5137_v0, %v9164_v47  ;;  %v3230_v0 = vld [vmem:[#allocation3 + $0x1a0] sm:$0xff] }
 0x79f   : > { %4143 = vrot.lane.b32.xlu0 %v3255_v35, %s5168_s19  ;;  %4271 = vrot.lane.b32.xlu1 %v3287_v10, %s5169_s27 }
 0x7a0   : > { %3761 = vrot.lane.b32.xlu2 %v3254_v58, %s5165_s12 }
 0x7a1   : > { %v3998_v24 = vpop.permute.xlu0 %3997 }
 0x7a2   : > { %v8331_v37 = vpop.permute.xlu2 %3875  ;;  %v4494_v53 = vsel %vm2619_vm8, %v4462_v7, %v3998_v24  ;;  %v4126_v60 = vpop.permute.xlu1 %4125  ;;  %v3226_v7 = vld [vmem:[#allocation3 + $0x170] sm:$0xff] }
 0x7a3   : > { %v4710_v3 = vpop.f32.mrf.mxu0  ;;  %v4526_v22 = vsel %vm2652_vm10, %v4494_v53, %v4126_v60  ;;  %v9159_v53 = vld [vmem:[#allocation94_spill] sm:$0xff] }
 0x7a4   : > { %v4711_v29 = vadd.f32 %v8247_v61, %v4710_v3  ;;  %v4558_v18 = vsel %vm2685_vm12, %v4526_v22, %v4254_v14  ;;  %v9150_v14 = vld [vmem:[#allocation82_spill] sm:$0xff] }
 0x7a5   : > { %4995 = vmatmul.msk.f32.gmra.mxu0 %vm2731_vm11, %v4558_v18  ;;  %v4399_v56 = vsel %vm2520_vm6, %v4367_v26, %v9150_v14  ;;  %v5136_v26 = vld [vmem:[#allocation3 + $0xe0] sm:$0xff]  ;;  %v9160_v14 = vld [vmem:[#allocation20_spill] sm:$0xff] }
 0x7a6   : > { %v4800_v13 = vmax.f32 %v4711_v29, 0.0  ;;  %v4431_v55 = vsel %vm2553_vm7, %v4399_v56, %v9151_v15  ;;  %v3290_v56 = vld [vmem:[#allocation3 + $0x172] sm:$0xff] }
 0x7a7   : > { %3889 = vrot.lane.b32.xlu0 %v3286_v5, %s5167_s26  ;;  %4017 = vrot.lane.b32.xlu1 %v3224_v11, %s5161_s24  ;;  %v3288_v5 = vld [vmem:[#allocation3 + $0x15a] sm:$0xff] }
 0x7a8   : > { %4832 = vst.msk [vmem:[%s8263_s18 + $0x18] sm:$0xff] %vm353_vm2, %v4800_v13  ;;  %4145 = vrot.lane.b32.xlu2 %v3256_v44, %s5168_s19 }
 0x7a9   : > { %v3872_v54 = vpop.permute.xlu0 %3871 }
 0x7aa   : > { %v4260_v43 = vpop.permute.xlu2 %4259  ;;  %v4000_v50 = vpop.permute.xlu1 %3999  ;;  %v4463_v58 = vsel %vm2586_vm9, %v4431_v55, %v3872_v54  ;;  %v9161_v54 = vld [vmem:[#allocation48_spill] sm:$0xff] }
 0x7ab   : > { %v4495_v4 = vsel %vm2619_vm8, %v4463_v58, %v4000_v50 }
 0x7ac   : > { %v4527_v30 = vsel %vm2652_vm10, %v4495_v4, %v8287_v51  ;;  %v9163_v4 = vld [vmem:[#allocation92_spill] sm:$0xff] }
 0x7af   : > { %4273 = vrot.lane.b32.xlu0 %v3288_v5, %s5169_s27  ;;  %3763 = vrot.lane.b32.xlu1 %v3255_v35, %s5165_s12  ;;  %v5135_v35 = vld [vmem:[#allocation3 + $0xd8] sm:$0xff] }
 0x7b0   : > { %3891 = vrot.lane.b32.xlu2 %v3287_v10, %s5167_s26  ;;  %v4713_v36 = vpop.f32.mrf.mxu0  ;;  %v4337_v49 = vsel %vm353_vm2, %v5135_v35, %v9156_v40 }
 0x7b1   : > { %v4714_v46 = vadd.f32 %v8247_v61, %v4713_v36  ;;  %v4256_v63 = vpop.permute.xlu0 %4255  ;;  %v4369_v6 = vsel %vm2487_vm5, %v4337_v49, %v9157_v32  ;;  %v3292_v32 = vld [vmem:[#allocation3 + $0x18a] sm:$0xff] }
 0x7b2   : > { %v8357_v33 = vpop.permute.xlu2 %4133  ;;  %v3874_v25 = vpop.permute.xlu1 %3873  ;;  %v4559_v31 = vsel %vm2685_vm12, %v4527_v30, %v4256_v63  ;;  %v3259_v30 = vld [vmem:[#allocation3 + $0x181] sm:$0xff] }
 0x7b3   : > { %v4801_v48 = vmax.f32 %v4714_v46, 0.0  ;;  %4996 = vmatmul.msk.f32.gmra.mxu0 %vm2731_vm11, %v4559_v31  ;;  %v4464_v51 = vsel %vm2586_vm9, %v4432_v27, %v3874_v25 }
 0x7b4   : > { %v4496_v42 = vsel %vm2619_vm8, %v4464_v51, %v8308_v57  ;;  %v9158_v57 = vld [vmem:[#allocation97_spill] sm:$0xff] }
 0x7b5   : > { %4833 = vst.msk [vmem:[%s8263_s18 + $0x20] sm:$0xff] %vm353_vm2, %v4801_v48  ;;  %v4401_v24 = vsel %vm2520_vm6, %v4369_v6, %v9158_v57  ;;  %v9165_v51 = vld [vmem:[#allocation57_spill] sm:$0xff]  ;;  %v3228_v6 = vld [vmem:[#allocation3 + $0x188] sm:$0xff]  ;;  %v9167_v57 = vld [vmem:[#allocation38_spill] sm:$0xff] }
 0x7b6   : > { %v4433_v60 = vsel %vm2553_vm7, %v4401_v24, %v9159_v53  ;;  %v9168_v53 = vld [vmem:[#allocation46_spill] sm:$0xff] }
 0x7b7   : > { %4019 = vrot.lane.b32.xlu0 %v3225_v34, %s5161_s24  ;;  %4147 = vrot.lane.b32.xlu1 %v3257_v16, %s5168_s19  ;;  %v4465_v3 = vsel %vm2586_vm9, %v4433_v60, %v8331_v37  ;;  %v4338_v37 = vsel %vm353_vm2, %v5136_v26, %v9160_v14  ;;  %v9166_v34 = vld [vmem:[#allocation87_spill] sm:$0xff] }
 0x7b8   : > { %4275 = vrot.lane.b32.xlu2 %v3289_v21, %s5169_s27  ;;  %v4370_v15 = vsel %vm2487_vm5, %v4338_v37, %v9161_v54 }
 0x7b9   : > { %v4130_v45 = vpop.permute.xlu0 %4129  ;;  %v4716_v62 = vpop.f32.mrf.mxu0 }
 0x7ba   : > { %v8377_v23 = vpop.permute.xlu2 %3879  ;;  %v4528_v52 = vsel %vm2652_vm10, %v4496_v42, %v4130_v45  ;;  %v4258_v38 = vpop.permute.xlu1 %4257  ;;  %v4717_v20 = vadd.f32 %v8247_v61, %v4716_v62  ;;  %v3291_v45 = vld [vmem:[#allocation3 + $0x182] sm:$0xff] }
 0x7bb   : > { %v4560_v2 = vsel %vm2685_vm12, %v4528_v52, %v4258_v38 }
 0x7bc   : > { %4997 = vmatmul.msk.f32.gmra.mxu0 %vm2731_vm11, %v4560_v2  ;;  %v4802_v10 = vmax.f32 %v4717_v20, 0.0 }
 0x7be   : > { %4834 = vst.msk [vmem:[%s8263_s18 + $0x28] sm:$0xff] %vm353_vm2, %v4802_v10 }
 0x7bf   : > { %3765 = vrot.lane.b32.xlu0 %v3256_v44, %s5165_s12  ;;  %3893 = vrot.lane.b32.xlu1 %v3288_v5, %s5167_s26 }
 0x7c0   : > { %4021 = vrot.lane.b32.xlu2 %v3226_v7, %s5161_s24  ;;  %v5138_v7 = vld [vmem:[#allocation3 + $0xf8] sm:$0xff] }
 0x7c1   : > { %v4004_v29 = vpop.permute.xlu0 %4003  ;;  %v4340_v24 = vsel %vm353_vm2, %v5138_v7, %v9167_v57 }
 0x7c2   : > { %v4264_v22 = vpop.permute.xlu2 %4263  ;;  %v4497_v18 = vsel %vm2619_vm8, %v4465_v3, %v4004_v29  ;;  %v4132_v13 = vpop.permute.xlu1 %4131  ;;  %v4372_v60 = vsel %vm2487_vm5, %v4340_v24, %v9168_v53 }
 0x7c3   : > { %v4719_v28 = vpop.f32.mrf.mxu0  ;;  %v4529_v9 = vsel %vm2652_vm10, %v4497_v18, %v4132_v13 }
 0x7c4   : > { %v4720_v41 = vadd.f32 %v8247_v61, %v4719_v28  ;;  %v4561_v44 = vsel %vm2685_vm12, %v4529_v9, %v4260_v43  ;;  %v9162_v43 = vld [vmem:[#allocation62_spill] sm:$0xff] }
 0x7c5   : > { %4998 = vmatmul.msk.f32.gmra.mxu0 %vm2731_vm11, %v4561_v44  ;;  %v4402_v55 = vsel %vm2520_vm6, %v4370_v15, %v9162_v43  ;;  %v3229_v44 = vld [vmem:[#allocation3 + $0x198] sm:$0xff] }
 0x7c6   : > { %v4803_v11 = vmax.f32 %v4720_v41, 0.0  ;;  %v4434_v5 = vsel %vm2553_vm7, %v4402_v55, %v9163_v4  ;;  %v3261_v15 = vld [vmem:[#allocation3 + $0x199] sm:$0xff]  ;;  %v9170_v4 = vld [vmem:[#allocation44_spill] sm:$0xff] }
 0x7c7   : > { %4149 = vrot.lane.b32.xlu0 %v3258_v39, %s5168_s19  ;;  %4277 = vrot.lane.b32.xlu1 %v3290_v56, %s5169_s27  ;;  %v3293_v55 = vld [vmem:[#allocation3 + $0x19a] sm:$0xff] }
 0x7c8   : > { %4835 = vst.msk [vmem:[%s8263_s18 + $0x30] sm:$0xff] %vm353_vm2, %v4803_v11  ;;  %3767 = vrot.lane.b32.xlu2 %v3257_v16, %s5165_s12 }
 0x7c9   : > { %v3878_v58 = vpop.permute.xlu0 %3877 }
 0x7ca   : > { %v8416_v50 = vpop.permute.xlu2 %4009  ;;  %v4006_v36 = vpop.permute.xlu1 %4005  ;;  %v4466_v46 = vsel %vm2586_vm9, %v4434_v5, %v3878_v58  ;;  %v5139_v58 = vld [vmem:[#allocation3 + $0x108] sm:$0xff] }
 0x7cb   : > { %v4498_v63 = vsel %vm2619_vm8, %v4466_v46, %v4006_v36  ;;  %v4341_v5 = vsel %vm353_vm2, %v5139_v58, %v9170_v4 }
 0x7cc   : > { %v4530_v59 = vsel %vm2652_vm10, %v4498_v63, %v8357_v33  ;;  %v9172_v63 = vld [vmem:[#allocation79_spill] sm:$0xff] }
 0x7cf   : > { %3895 = vrot.lane.b32.xlu0 %v3289_v21, %s5167_s26  ;;  %4023 = vrot.lane.b32.xlu1 %v3227_v17, %s5161_s24  ;;  %v4371_v21 = vsel %vm2487_vm5, %v4339_v19, %v9165_v51 }
 0x7d0   : > { %4151 = vrot.lane.b32.xlu2 %v3259_v30, %s5168_s19  ;;  %v4722_v12 = vpop.f32.mrf.mxu0  ;;  %v4403_v16 = vsel %vm2520_vm6, %v4371_v21, %v9166_v34 }
 0x7d1   : > { %v4723_v1 = vadd.f32 %v8247_v61, %v4722_v12  ;;  %v4262_v31 = vpop.permute.xlu0 %4261 }
 0x7d2   : > { %v8426_v25 = vpop.permute.xlu2 %3755  ;;  %v3752_v8 = vpop.permute.xlu1 %3751  ;;  %v4562_v48 = vsel %vm2685_vm12, %v4530_v59, %v4262_v31 }
 0x7d3   : > { %v4804_v27 = vmax.f32 %v4723_v1, 0.0  ;;  %4999 = vmatmul.msk.f32.gmra.mxu0 %vm2731_vm11, %v4562_v48  ;;  %v4435_v33 = vsel %vm2553_vm7, %v4403_v16, %v3752_v8  ;;  %v3262_v48 = vld [vmem:[#allocation3 + $0x1a1] sm:$0xff]  ;;  %v5140_v16 = vld [vmem:[#allocation3 + $0x110] sm:$0xff] }
 0x7d4   : > { %v4467_v38 = vsel %vm2586_vm9, %v4435_v33, %v8377_v23  ;;  %v3260_v23 = vld [vmem:[#allocation3 + $0x189] sm:$0xff] }
 0x7d5   : > { %4836 = vst.msk [vmem:[%s8263_s18 + $0x38] sm:$0xff] %vm353_vm2, %v4804_v27  ;;  %v9173_v33 = vld [vmem:[#allocation27_spill] sm:$0xff] }
 0x7d7   : > { %4279 = vrot.lane.b32.xlu0 %v3291_v45, %s5169_s27  ;;  %3769 = vrot.lane.b32.xlu1 %v3258_v39, %s5165_s12 }
 0x7d8   : > { %3897 = vrot.lane.b32.xlu2 %v3290_v56, %s5167_s26 }
 0x7d9   : > { %v4008_v52 = vpop.permute.xlu0 %4007  ;;  %v4725_v2 = vpop.f32.mrf.mxu0 }
 0x7da   : > { %v8444_v42 = vpop.permute.xlu2 %4139  ;;  %v4499_v62 = vsel %vm2619_vm8, %v4467_v38, %v4008_v52  ;;  %v4136_v20 = vpop.permute.xlu1 %4135  ;;  %v4726_v40 = vadd.f32 %v8247_v61, %v4725_v2  ;;  %v9174_v38 = vld [vmem:[#allocation63_spill] sm:$0xff]  ;;  %v9175_v2 = vld [vmem:[#allocation86_spill] sm:$0xff] }
 0x7db   : > { %v4531_v35 = vsel %vm2652_vm10, %v4499_v62, %v4136_v20  ;;  %v3294_v20 = vld [vmem:[#allocation3 + $0x1a2] sm:$0xff] }
 0x7dc   : > { %v4563_v49 = vsel %vm2685_vm12, %v4531_v35, %v4264_v22  ;;  %v4805_v10 = vmax.f32 %v4726_v40, 0.0  ;;  %v9169_v22 = vld [vmem:[#allocation66_spill] sm:$0xff] }
 0x7dd   : > { %5000 = vmatmul.msk.f32.gmra.mxu0 %vm2731_vm11, %v4563_v49  ;;  %v4404_v29 = vsel %vm2520_vm6, %v4372_v60, %v9169_v22  ;;  %v9176_v22 = vld [vmem:[#allocation50_spill] sm:$0xff] }
 0x7de   : > { %4837 = vst.msk [vmem:[%s8263_s18 + $0x40] sm:$0xff] %vm353_vm2, %v4805_v10 }
 0x7df   : > { %4025 = vrot.lane.b32.xlu0 %v3228_v6, %s5161_s24  ;;  %4153 = vrot.lane.b32.xlu1 %v3260_v23, %s5168_s19 }
 0x7e0   : > { %4281 = vrot.lane.b32.xlu2 %v3292_v32, %s5169_s27 }
 0x7e1   : > { %v3754_v3 = vpop.permute.xlu0 %3753 }
 0x7e2   : > { %v3882_v18 = vpop.permute.xlu1 %3881  ;;  %v4728_v13 = vpop.f32.mrf.mxu0  ;;  %v4436_v9 = vsel %vm2553_vm7, %v4404_v29, %v3754_v3  ;;  %v5141_v3 = vld [vmem:[#allocation3 + $0x120] sm:$0xff] }
 0x7e3   : > { %v3886_v28 = vpop.permute.xlu2 %3885  ;;  %v4729_v41 = vadd.f32 %v8247_v61, %v4728_v13  ;;  %v4468_v39 = vsel %vm2586_vm9, %v4436_v9, %v3882_v18  ;;  %v4343_v29 = vsel %vm353_vm2, %v5141_v3, %v9176_v22  ;;  %v9177_v18 = vld [vmem:[#allocation58_spill] sm:$0xff]  ;;  %v9178_v9 = vld [vmem:[#allocation88_spill] sm:$0xff]  ;;  %v9186_v3 = vld [vmem:[#allocation73_spill] sm:$0xff] }
 0x7e4   : > { %v4500_v14 = vsel %vm2619_vm8, %v4468_v39, %v8416_v50  ;;  %v9171_v50 = vld [vmem:[#allocation49_spill] sm:$0xff]  ;;  %v4375_v13 = vsel %vm2487_vm5, %v4343_v29, %v9177_v18 }
 0x7e5   : > { %v4806_v11 = vmax.f32 %v4729_v41, 0.0  ;;  %v4373_v36 = vsel %vm2487_vm5, %v4341_v5, %v9171_v50  ;;  %v4407_v41 = vsel %vm2520_vm6, %v4375_v13, %v9178_v9  ;;  %v5142_v5 = vld [vmem:[#allocation3 + $0x128] sm:$0xff]  ;;  %v9179_v50 = vld [vmem:[#allocation68_spill] sm:$0xff] }
 0x7e6   : > { %v9187_v13 = vld [vmem:[#allocation84_spill] sm:$0xff] }
 0x7e7   : > { %4838 = vst.msk [vmem:[%s8263_s18 + $0x48] sm:$0xff] %vm353_vm2, %v4806_v11  ;;  %3771 = vrot.lane.b32.xlu0 %v3259_v30, %s5165_s12  ;;  %3899 = vrot.lane.b32.xlu1 %v3291_v45, %s5167_s26  ;;  %v4405_v30 = vsel %vm2520_vm6, %v4373_v36, %v9172_v63  ;;  %v4342_v45 = vsel %vm353_vm2, %v5140_v16, %v9173_v33  ;;  %v5143_v16 = vld [vmem:[#allocation3 + $0x138] sm:$0xff]  ;;  %v9182_v33 = vld [vmem:[#allocation39_spill] sm:$0xff] }
 0x7e8   : > { %4027 = vrot.lane.b32.xlu2 %v3229_v44, %s5161_s24  ;;  %v4437_v1 = vsel %vm2553_vm7, %v4405_v30, %v8426_v25  ;;  %v4374_v62 = vsel %vm2487_vm5, %v4342_v45, %v9174_v38  ;;  %v4344_v36 = vsel %vm353_vm2, %v5142_v5, %v9179_v50  ;;  %v9181_v30 = vld [vmem:[#allocation75_spill] sm:$0xff]  ;;  %v4345_v45 = vsel %vm353_vm2, %v5143_v16, %v9182_v33  ;;  %v9188_v5 = vld [vmem:[#allocation54_spill] sm:$0xff]  ;;  %v9192_v33 = vld [vmem:[#allocation85_spill] sm:$0xff] }
 0x7e9   : > { %v4138_v26 = vpop.permute.xlu0 %4137  ;;  %v4406_v35 = vsel %vm2520_vm6, %v4374_v62, %v9175_v2  ;;  %v9183_v38 = vld [vmem:[#allocation67_spill] sm:$0xff] }
 0x7ea   : > { %v4532_v37 = vsel %vm2652_vm10, %v4500_v14, %v4138_v26  ;;  %v4266_v56 = vpop.permute.xlu1 %4265  ;;  %v4377_v62 = vsel %vm2487_vm5, %v4345_v45, %v9183_v38 }
 0x7eb   : > { %v4564_v54 = vsel %vm2685_vm12, %v4532_v37, %v4266_v56  ;;  %v4270_v43 = vpop.permute.xlu2 %4269 }
 0x7ec   : > { %5001 = vmatmul.msk.f32.gmra.mxu0 %vm2731_vm11, %v4564_v54 }
 0x7ef   : > { %4155 = vrot.lane.b32.xlu0 %v3261_v15, %s5168_s19  ;;  %4283 = vrot.lane.b32.xlu1 %v3293_v55, %s5169_s27 }
 0x7f0   : > { %3773 = vrot.lane.b32.xlu2 %v3260_v23, %s5165_s12  ;;  %v4731_v46 = vpop.f32.mrf.mxu0 }
 0x7f1   : > { %v4732_v17 = vadd.f32 %v8247_v61, %v4731_v46  ;;  %v3884_v12 = vpop.permute.xlu0 %3883  ;;  %v9180_v46 = vld [vmem:[#allocation56_spill] sm:$0xff] }
 0x7f2   : > { %v4012_v31 = vpop.permute.xlu1 %4011  ;;  %v4469_v8 = vsel %vm2586_vm9, %v4437_v1, %v3884_v12  ;;  %v4376_v63 = vsel %vm2487_vm5, %v4344_v36, %v9180_v46  ;;  %v9189_v36 = vld [vmem:[#allocation83_spill] sm:$0xff] }
 0x7f3   : > { %v4807_v59 = vmax.f32 %v4732_v17, 0.0  ;;  %v4501_v47 = vsel %vm2619_vm8, %v4469_v8, %v4012_v31  ;;  %v4016_v19 = vpop.permute.xlu2 %4015  ;;  %v4408_v17 = vsel %vm2520_vm6, %v4376_v63, %v9181_v30  ;;  %v9190_v63 = vld [vmem:[#allocation69_spill] sm:$0xff] }
 0x7f4   : > { %v4533_v25 = vsel %vm2652_vm10, %v4501_v47, %v8444_v42 }
 0x7f5   : > { %4839 = vst.msk [vmem:[%s8263_s18 + $0x50] sm:$0xff] %vm353_vm2, %v4807_v59 }
 0x7f7   : > { %3901 = vrot.lane.b32.xlu0 %v3292_v32, %s5167_s26  ;;  %4029 = vrot.lane.b32.xlu1 %v3230_v0, %s5161_s24 }
 0x7f8   : > { %4157 = vrot.lane.b32.xlu2 %v3262_v48, %s5168_s19 }
 0x7f9   : > { %v4268_v27 = vpop.permute.xlu0 %4267  ;;  %v4734_v34 = vpop.f32.mrf.mxu0 }
 0x7fa   : > { %v4565_v51 = vsel %vm2685_vm12, %v4533_v25, %v4268_v27  ;;  %v3758_v21 = vpop.permute.xlu1 %3757  ;;  %v4735_v52 = vadd.f32 %v8247_v61, %v4734_v34 }
 0x7fb   : > { %5002 = vmatmul.msk.f32.gmra.mxu0 %vm2731_vm11, %v4565_v51  ;;  %v4438_v40 = vsel %vm2553_vm7, %v4406_v35, %v3758_v21  ;;  %v3762_v49 = vpop.permute.xlu2 %3761 }
 0x7fc   : > { %v4808_v42 = vmax.f32 %v4735_v52, 0.0  ;;  %v4470_v32 = vsel %vm2586_vm9, %v4438_v40, %v3886_v28  ;;  %v4440_v1 = vsel %vm2553_vm7, %v4408_v17, %v3762_v49 }
 0x7fe   : > { %4840 = vst.msk [vmem:[%s8263_s18 + $0x58] sm:$0xff] %vm353_vm2, %v4808_v42 }
 0x7ff   : > { %4285 = vrot.lane.b32.xlu0 %v3294_v20, %s5169_s27  ;;  %v9184_v20 = vld [vmem:[#allocation77_spill] sm:$0xff] }
 0x800   : > { %v4409_v2 = vsel %vm2520_vm6, %v4377_v62, %v9184_v20 }
 0x801   : > { %v4014_v10 = vpop.permute.xlu0 %4013 }
 0x802   : > { %v4502_v6 = vsel %vm2619_vm8, %v4470_v32, %v4014_v10  ;;  %v4142_v23 = vpop.permute.xlu1 %4141  ;;  %v4737_v7 = vpop.f32.mrf.mxu0 }
 0x803   : > { %v4534_v57 = vsel %vm2652_vm10, %v4502_v6, %v4142_v23  ;;  %v4738_v24 = vadd.f32 %v8247_v61, %v4737_v7  ;;  %v4146_v39 = vpop.permute.xlu2 %4145 }
 0x804   : > { %v4566_v53 = vsel %vm2685_vm12, %v4534_v57, %v4270_v43  ;;  %v5144_v57 = vld [vmem:[#allocation3 + $0x140] sm:$0xff] }
 0x805   : > { %v4809_v60 = vmax.f32 %v4738_v24, 0.0  ;;  %5003 = vmatmul.msk.f32.gmra.mxu0 %vm2731_vm11, %v4566_v53  ;;  %v9185_v24 = vld [vmem:[#allocation65_spill] sm:$0xff] }
 0x806   : > { %v4346_v53 = vsel %vm353_vm2, %v5144_v57, %v9185_v24  ;;  %v9194_v57 = vld [vmem:[#allocation60_spill] sm:$0xff] }
 0x807   : > { %4841 = vst.msk [vmem:[%s8263_s18 + $0x60] sm:$0xff] %vm353_vm2, %v4809_v60  ;;  %v4378_v22 = vsel %vm2487_vm5, %v4346_v53, %v9186_v3  ;;  %v9195_v53 = vld [vmem:[#allocation64_spill] sm:$0xff] }
 0x809   : > { %v3760_v28 = vpop.permute.xlu0 %3759 }
 0x80a   : > { %v3888_v44 = vpop.permute.xlu1 %3887  ;;  %v4439_v11 = vsel %vm2553_vm7, %v4407_v41, %v3760_v28  ;;  %v4410_v28 = vsel %vm2520_vm6, %v4378_v22, %v9187_v13  ;;  %v9196_v22 = vld [vmem:[#allocation103_spill] sm:$0xff] }
 0x80b   : > { %v4471_v26 = vsel %vm2586_vm9, %v4439_v11, %v3888_v44  ;;  %v3892_v4 = vpop.permute.xlu2 %3891 }
 0x80c   : > { %v4503_v54 = vsel %vm2619_vm8, %v4471_v26, %v4016_v19 }
 0x810   : > { %v4740_v14 = vpop.f32.mrf.mxu0 }
 0x811   : > { %v4741_v37 = vadd.f32 %v8247_v61, %v4740_v14  ;;  %v4144_v56 = vpop.permute.xlu0 %4143 }
 0x812   : > { %v4535_v15 = vsel %vm2652_vm10, %v4503_v54, %v4144_v56  ;;  %v4272_v43 = vpop.permute.xlu1 %4271 }
 0x813   : > { %v4810_v55 = vmax.f32 %v4741_v37, 0.0  ;;  %v4567_v58 = vsel %vm2685_vm12, %v4535_v15, %v4272_v43  ;;  %v4276_v19 = vpop.permute.xlu2 %4275 }
 0x814   : > { %5004 = vmatmul.msk.f32.gmra.mxu0 %vm2731_vm11, %v4567_v58 }
 0x815   : > { %4842 = vst.msk [vmem:[%s8263_s18 + $0x68] sm:$0xff] %vm353_vm2, %v4810_v55 }
 0x819   : > { %v3890_v12 = vpop.permute.xlu0 %3889  ;;  %v4743_v59 = vpop.f32.mrf.mxu0 }
 0x81a   : > { %v4018_v31 = vpop.permute.xlu1 %4017  ;;  %v4472_v8 = vsel %vm2586_vm9, %v4440_v1, %v3890_v12  ;;  %v4744_v48 = vadd.f32 %v8247_v61, %v4743_v59 }
 0x81b   : > { %v4504_v47 = vsel %vm2619_vm8, %v4472_v8, %v4018_v31  ;;  %v4022_v10 = vpop.permute.xlu2 %4021 }
 0x81c   : > { %v4811_v0 = vmax.f32 %v4744_v48, 0.0  ;;  %v4536_v25 = vsel %vm2652_vm10, %v4504_v47, %v4146_v39 }
 0x81e   : > { %4843 = vst.msk [vmem:[%s8263_s18 + $0x70] sm:$0xff] %vm353_vm2, %v4811_v0 }
 0x821   : > { %v4274_v27 = vpop.permute.xlu0 %4273 }
 0x822   : > { %v4568_v51 = vsel %vm2685_vm12, %v4536_v25, %v4274_v27  ;;  %v3764_v21 = vpop.permute.xlu1 %3763  ;;  %v4746_v34 = vpop.f32.mrf.mxu0 }
 0x823   : > { %v4747_v52 = vadd.f32 %v8247_v61, %v4746_v34  ;;  %5005 = vmatmul.msk.f32.gmra.mxu0 %vm2731_vm11, %v4568_v51  ;;  %v4441_v42 = vsel %vm2553_vm7, %v4409_v2, %v3764_v21  ;;  %v3768_v11 = vpop.permute.xlu2 %3767  ;;  %v5146_v21 = vld [vmem:[#allocation3 + $0x158] sm:$0xff]  ;;  %v9191_v34 = vld [vmem:[#allocation36_spill] sm:$0xff] }
 0x824   : > { %v4473_v49 = vsel %vm2586_vm9, %v4441_v42, %v3892_v4  ;;  %v5145_v4 = vld [vmem:[#allocation3 + $0x150] sm:$0xff]  ;;  %v4348_v16 = vsel %vm353_vm2, %v5146_v21, %v9191_v34 }
 0x825   : > { %v4812_v35 = vmax.f32 %v4747_v52, 0.0  ;;  %v4347_v50 = vsel %vm353_vm2, %v5145_v4, %v9188_v5  ;;  %v4380_v45 = vsel %vm2487_vm5, %v4348_v16, %v9192_v33  ;;  %v9193_v52 = vld [vmem:[#allocation101_spill] sm:$0xff]  ;;  %v9199_v5 = vld [vmem:[#allocation70_spill] sm:$0xff] }
 0x826   : > { %v4379_v46 = vsel %vm2487_vm5, %v4347_v50, %v9189_v36  ;;  %v4412_v38 = vsel %vm2520_vm6, %v4380_v45, %v9193_v52 }
 0x827   : > { %4844 = vst.msk [vmem:[%s8263_s18 + $0x78] sm:$0xff] %vm353_vm2, %v4812_v35  ;;  %v4411_v30 = vsel %vm2520_vm6, %v4379_v46, %v9190_v63 }
 0x828   : > { %v4443_v12 = vsel %vm2553_vm7, %v4411_v30, %v3768_v11 }
 0x829   : > { %v4020_v40 = vpop.permute.xlu0 %4019 }
 0x82a   : > { %v4505_v32 = vsel %vm2619_vm8, %v4473_v49, %v4020_v40  ;;  %v4148_v6 = vpop.permute.xlu1 %4147 }
 0x82b   : > { %v4537_v23 = vsel %vm2652_vm10, %v4505_v32, %v4148_v6  ;;  %v4152_v58 = vpop.permute.xlu2 %4151 }
 0x82c   : > { %v4569_v7 = vsel %vm2685_vm12, %v4537_v23, %v4276_v19 }
 0x82d   : > { %5006 = vmatmul.msk.f32.gmra.mxu0 %vm2731_vm11, %v4569_v7  ;;  %v5147_v7 = vld [vmem:[#allocation3 + $0x168] sm:$0xff] }
 0x82e   : > { %v4349_v24 = vsel %vm353_vm2, %v5147_v7, %v9194_v57 }
 0x830   : > { %v4749_v60 = vpop.f32.mrf.mxu0 }
 0x831   : > { %v4750_v29 = vadd.f32 %v8247_v61, %v4749_v60  ;;  %v3766_v18 = vpop.permute.xlu0 %3765  ;;  %v4381_v60 = vsel %vm2487_vm5, %v4349_v24, %v9195_v53 }
 0x832   : > { %v3894_v9 = vpop.permute.xlu1 %3893  ;;  %v4442_v44 = vsel %vm2553_vm7, %v4410_v28, %v3766_v18 }
 0x833   : > { %v4813_v41 = vmax.f32 %v4750_v29, 0.0  ;;  %v4474_v39 = vsel %vm2586_vm9, %v4442_v44, %v3894_v9  ;;  %v3898_v47 = vpop.permute.xlu2 %3897  ;;  %v4413_v29 = vsel %vm2520_vm6, %v4381_v60, %v9196_v22 }
 0x834   : > { %v4506_v14 = vsel %vm2619_vm8, %v4474_v39, %v4022_v10 }
 0x835   : > { %4845 = vst.msk [vmem:[%s8263_s18 + $0x80] sm:$0xff] %vm353_vm2, %v4813_v41 }
 0x839   : > { %v4150_v26 = vpop.permute.xlu0 %4149  ;;  %v4752_v54 = vpop.f32.mrf.mxu0 }
 0x83a   : > { %v4538_v37 = vsel %vm2652_vm10, %v4506_v14, %v4150_v26  ;;  %v4278_v56 = vpop.permute.xlu1 %4277  ;;  %v4753_v43 = vadd.f32 %v8247_v61, %v4752_v54  ;;  %v5148_v54 = vld [vmem:[#allocation3 + $0x170] sm:$0xff] }
 0x83b   : > { %v4570_v15 = vsel %vm2685_vm12, %v4538_v37, %v4278_v56  ;;  %v4282_v40 = vpop.permute.xlu2 %4281 }
 0x83c   : > { %5007 = vmatmul.msk.f32.gmra.mxu0 %vm2731_vm11, %v4570_v15  ;;  %v4814_v55 = vmax.f32 %v4753_v43, 0.0  ;;  %v9197_v15 = vld [vmem:[#allocation51_spill] sm:$0xff] }
 0x83d   : > { %v4350_v43 = vsel %vm353_vm2, %v5148_v54, %v9197_v15 }
 0x83e   : > { %4846 = vst.msk [vmem:[%s8263_s18 + $0x88] sm:$0xff] %vm353_vm2, %v4814_v55 }
 0x841   : > { %v3896_v17 = vpop.permute.xlu0 %3895 }
 0x842   : > { %v4024_v1 = vpop.permute.xlu1 %4023  ;;  %v4755_v31 = vpop.f32.mrf.mxu0  ;;  %v4475_v59 = vsel %vm2586_vm9, %v4443_v12, %v3896_v17 }
 0x843   : > { %v4756_v8 = vadd.f32 %v8247_v61, %v4755_v31  ;;  %v4507_v0 = vsel %vm2619_vm8, %v4475_v59, %v4024_v1  ;;  %v4028_v41 = vpop.permute.xlu2 %4027 }
 0x844   : > { %v4539_v27 = vsel %vm2652_vm10, %v4507_v0, %v4152_v58  ;;  %v9198_v58 = vld [vmem:[#allocation74_spill] sm:$0xff] }
 0x845   : > { %v4815_v48 = vmax.f32 %v4756_v8, 0.0  ;;  %v4382_v4 = vsel %vm2487_vm5, %v4350_v43, %v9198_v58 }
 0x846   : > { %v4414_v50 = vsel %vm2520_vm6, %v4382_v4, %v9199_v5 }
 0x847   : > { %4847 = vst.msk [vmem:[%s8263_s18 + $0x90] sm:$0xff] %vm353_vm2, %v4815_v48 }
 0x849   : > { %v4280_v19 = vpop.permute.xlu0 %4279 }
 0x84a   : > { %v4571_v25 = vsel %vm2685_vm12, %v4539_v27, %v4280_v19  ;;  %v3770_v51 = vpop.permute.xlu1 %3769 }
 0x84b   : > { %5008 = vmatmul.msk.f32.gmra.mxu0 %vm2731_vm11, %v4571_v25  ;;  %v4444_v62 = vsel %vm2553_vm7, %v4412_v38, %v3770_v51  ;;  %v3774_v55 = vpop.permute.xlu2 %3773 }
 0x84c   : > { %v4476_v42 = vsel %vm2586_vm9, %v4444_v62, %v3898_v47  ;;  %v4446_v63 = vsel %vm2553_vm7, %v4414_v50, %v3774_v55 }
 0x850   : > { %v4758_v20 = vpop.f32.mrf.mxu0 }
 0x851   : > { %v4759_v2 = vadd.f32 %v8247_v61, %v4758_v20  ;;  %v4026_v35 = vpop.permute.xlu0 %4025 }
 0x852   : > { %v4508_v49 = vsel %vm2619_vm8, %v4476_v42, %v4026_v35  ;;  %v4154_v10 = vpop.permute.xlu1 %4153 }
 0x853   : > { %v4816_v32 = vmax.f32 %v4759_v2, 0.0  ;;  %v4540_v6 = vsel %vm2652_vm10, %v4508_v49, %v4154_v10  ;;  %v4158_v59 = vpop.permute.xlu2 %4157 }
 0x854   : > { %v4572_v23 = vsel %vm2685_vm12, %v4540_v6, %v4282_v40 }
 0x855   : > { %4848 = vst.msk [vmem:[%s8263_s18 + $0x98] sm:$0xff] %vm353_vm2, %v4816_v32  ;;  %5009 = vmatmul.msk.f32.gmra.mxu0 %vm2731_vm11, %v4572_v23 }
 0x859   : > { %v3772_v3 = vpop.permute.xlu0 %3771 }
 0x85a   : > { %v3900_v18 = vpop.permute.xlu1 %3899  ;;  %v4761_v13 = vpop.f32.mrf.mxu0  ;;  %v4445_v28 = vsel %vm2553_vm7, %v4413_v29, %v3772_v3 }
 0x85b   : > { %v4762_v9 = vadd.f32 %v8247_v61, %v4761_v13  ;;  %v4477_v11 = vsel %vm2586_vm9, %v4445_v28, %v3900_v18 }
 0x85c   : > { %v4509_v26 = vsel %vm2619_vm8, %v4477_v11, %v4028_v41 }
 0x85d   : > { %v4817_v44 = vmax.f32 %v4762_v9, 0.0 }
 0x85f   : > { %4849 = vst.msk [vmem:[%s8263_s18 + $0xa0] sm:$0xff] %vm353_vm2, %v4817_v44 }
 0x861   : > { %v4156_v39 = vpop.permute.xlu0 %4155 }
 0x862   : > { %v4541_v14 = vsel %vm2652_vm10, %v4509_v26, %v4156_v39  ;;  %v4284_v37 = vpop.permute.xlu1 %4283 }
 0x863   : > { %v4573_v56 = vsel %vm2685_vm12, %v4541_v14, %v4284_v37 }
 0x864   : > { %5010 = vmatmul.msk.f32.gmra.mxu0 %vm2731_vm11, %v4573_v56 }
 0x869   : > { %v3902_v36 = vpop.permute.xlu0 %3901  ;;  %v4764_v46 = vpop.f32.mrf.mxu0 }
 0x86a   : > { %v4765_v30 = vadd.f32 %v8247_v61, %v4764_v46  ;;  %v4478_v17 = vsel %vm2586_vm9, %v4446_v63, %v3902_v36  ;;  %v4030_v12 = vpop.permute.xlu1 %4029 }
 0x86b   : > { %v4510_v31 = vsel %vm2619_vm8, %v4478_v17, %v4030_v12 }
 0x86c   : > { %v4818_v1 = vmax.f32 %v4765_v30, 0.0  ;;  %v4542_v8 = vsel %vm2652_vm10, %v4510_v31, %v4158_v59 }
 0x86e   : > { %4850 = vst.msk [vmem:[%s8263_s18 + $0xa8] sm:$0xff] %vm353_vm2, %v4818_v1 }
 0x871   : > { %v4286_v48 = vpop.permute.xlu0 %4285 }
 0x872   : > { %v4574_v0 = vsel %vm2685_vm12, %v4542_v8, %v4286_v48 }
 0x873   : > { %5011 = vmatmul.msk.f32.gmra.mxu0 %vm2731_vm11, %v4574_v0 }
 0x878   : > { %v4767_v47 = vpop.f32.mrf.mxu0 }
 0x879   : > { %v4768_v19 = vadd.f32 %v8247_v61, %v4767_v47 }
 0x87b   : > { %v4819_v27 = vmax.f32 %v4768_v19, 0.0 }
 0x87d   : > { %4851 = vst.msk [vmem:[%s8263_s18 + $0xb0] sm:$0xff] %vm353_vm2, %v4819_v27 }
 0x882   : > { %v4770_v25 = vpop.f32.mrf.mxu0 }
 0x883   : > { %v4771_v51 = vadd.f32 %v8247_v61, %v4770_v25 }
 0x885   : > { %v4820_v21 = vmax.f32 %v4771_v51, 0.0 }
 0x887   : > { %4852 = vst.msk [vmem:[%s8263_s18 + $0xb8] sm:$0xff] %vm353_vm2, %v4820_v21 }
 0x891   : > { %v4773_v34 = vpop.f32.mrf.mxu0 }
 0x892   : > { %v4774_v16 = vadd.f32 %v8247_v61, %v4773_v34 }
 0x894   : > { %v4821_v33 = vmax.f32 %v4774_v16, 0.0 }
 0x896   : > { %4853 = vst.msk [vmem:[%s8263_s18 + $0xc0] sm:$0xff] %vm353_vm2, %v4821_v33 }
 0x8a0   : > { %v4776_v45 = vpop.f32.mrf.mxu0 }
 0x8a1   : > { %v4777_v52 = vadd.f32 %v8247_v61, %v4776_v45 }
 0x8a3   : > { %v4822_v38 = vmax.f32 %v4777_v52, 0.0 }
 0x8a5   : > { %4854 = vst.msk [vmem:[%s8263_s18 + $0xc8] sm:$0xff] %vm353_vm2, %v4822_v38 }
 0x8aa   : > { %v4779_v62 = vpop.f32.mrf.mxu0 }
 0x8ab   : > { %v4780_v20 = vadd.f32 %v8247_v61, %v4779_v62 }
 0x8ad   : > { %v4823_v2 = vmax.f32 %v4780_v20, 0.0 }
 0x8af   : > { %4855 = vst.msk [vmem:[%s8263_s18 + $0xd0] sm:$0xff] %vm353_vm2, %v4823_v2 }
 0x8b9   : > { %v4782_v35 = vpop.f32.mrf.mxu0 }
 0x8ba   : > { %v4783_v42 = vadd.f32 %v8247_v61, %v4782_v35 }
 0x8bc   : > { %v4824_v40 = vmax.f32 %v4783_v42, 0.0 }
 0x8be   : > { %4856 = vst.msk [vmem:[%s8263_s18 + $0xd8] sm:$0xff] %vm353_vm2, %v4824_v40 }
 0x8c8   : > { %v4785_v49 = vpop.f32.mrf.mxu0 }
 0x8c9   : > { %v4786_v10 = vadd.f32 %v8247_v61, %v4785_v49 }
 0x8cb   : > { %v4825_v32 = vmax.f32 %v4786_v10, 0.0 }
 0x8cd   : > { %4857 = vst.msk [vmem:[%s8263_s18 + $0xe0] sm:$0xff] %vm353_vm2, %v4825_v32 }
 0x8d2   : > { %v4788_v6 = vpop.f32.mrf.mxu0 }
 0x8d3   : > { %v4789_v23 = vadd.f32 %v8247_v61, %v4788_v6 }
 0x8d5   : > { %v4826_v7 = vmax.f32 %v4789_v23, 0.0 }
 0x8d7   : > { %4858 = vst.msk [vmem:[%s8263_s18 + $0xe8] sm:$0xff] %vm353_vm2, %v4826_v7 }
 0x8e1   : > { %v4791_v57 = vpop.f32.mrf.mxu0 }
 0x8e2   : > { %v4792_v24 = vadd.f32 %v8247_v61, %v4791_v57 }
 0x8e4   : > { %v4827_v53 = vmax.f32 %v4792_v24, 0.0 }
 0x8e6   : > { %4859 = vst.msk [vmem:[%s8263_s18 + $0xf0] sm:$0xff] %vm353_vm2, %v4827_v53 }
 0x8f0   : > { %v4794_v60 = vpop.f32.mrf.mxu0 }
 0x8f1   : > { %v4795_v3 = vadd.f32 %v8247_v61, %v4794_v60 }
 0x8f3   : > { %v4828_v22 = vmax.f32 %v4795_v3, 0.0 }
 0x8f5   : > { %4860 = vst.msk [vmem:[%s8263_s18 + $0xf8] sm:$0xff] %vm353_vm2, %v4828_v22 }
 0x8f6 PF: > { %s19_s30 = sadd.s32 1, %s5155_s30  }
 0x8f7   : > { %p16_p4 = scmp.ge.s32.totalorder %s19_s30, 4  }
 0x8f9   :  { %18 = sbr.rel (!%p16_p4) target bundleno = 1 (0x1), region = 93 }

</bundles_post_ra>
